<compile_context>
chip_gen: v5e
topology: v5e:2x2
jax: 0.10.0
libtpu: 0.0.40
codegen_flags: <defaults>
</compile_context>

<pallas_src>
import math

import jax
import jax.numpy as jnp
from jax.experimental import pallas as pl
from jax.experimental.pallas import tpu as pltpu


def _softplus(v):
    return math.log1p(math.exp(v))


def _decay(tau_param, tau_scale, dt):
    # exp(-dt / (softplus(param) * tau))
    return math.exp(-dt / (_softplus(tau_param) * tau_scale))


# --------------------------------------------------------------------------
# Fused kernel: recurrent hidden layer + readout-head recurrence, per chunk.
# --------------------------------------------------------------------------
def make_fused_kernel(chunk, alpha_h, beta_h, threshold=1.0):
    def kernel(hff_ref, w_rec_ref, w_out_ref, alpha_r_ref, beta_r_ref,
               spkrec_ref, memr_ref,
               spk_s, syn_s, mem_s, synr_s, memr_s, prevblk_s):
        c = pl.program_id(0)

        @pl.when(c == 0)
        def _init():
            spk_s[...] = jnp.zeros_like(spk_s)
            syn_s[...] = jnp.zeros_like(syn_s)
            mem_s[...] = jnp.zeros_like(mem_s)
            synr_s[...] = jnp.zeros_like(synr_s)
            memr_s[...] = jnp.zeros_like(memr_s)

        w_rec = w_rec_ref[...]          # (H, H) bf16, grid-invariant

        # carry hidden state in vregs inside the chunk (scratch touched once)
        spk = spk_s[...]                # (1, H) previous hidden spikes, f32
        syn = syn_s[...]
        mem = mem_s[...]

        # ---- serial hidden recurrence, unrolled over the chunk ----
        for j in range(chunk):
            # readout drive at this step uses the PREVIOUS hidden spikes:
            # stage them for one batched matmul after the loop
            prevblk_s[j:j + 1, :] = spk
            drive = hff_ref[j:j + 1, :] + jnp.dot(
                spk.astype(jnp.bfloat16), w_rec,
                preferred_element_type=jnp.float32)
            syn_new = alpha_h * syn + drive
            mem_new = (beta_h * mem + (1.0 - beta_h) * syn) * (1.0 - spk)
            spk_new = (mem_new > threshold).astype(jnp.float32)
            spkrec_ref[j:j + 1, :] = spk_new          # direct per-row store
            spk, syn, mem = spk_new, syn_new, mem_new

        spk_s[...] = spk
        syn_s[...] = syn
        mem_s[...] = mem

        # ---- fused readout heads (one matmul + tiny unrolled recurrence) ----
        drive_r = jnp.dot(prevblk_s[...], w_out_ref[...],
                          preferred_element_type=jnp.float32)   # (chunk, Rp)
        alpha_r = alpha_r_ref[...]      # (1, Rp) per-head decays (zero-padded)
        beta_r = beta_r_ref[...]
        syn_r = synr_s[...]
        mem_r = memr_s[...]
        for j in range(chunk):
            syn_r_new = alpha_r * syn_r + drive_r[j:j + 1, :]
            mem_r_new = beta_r * mem_r + (1.0 - beta_r) * syn_r  # reset='none'
            memr_ref[j:j + 1, :] = mem_r_new
            syn_r, mem_r = syn_r_new, mem_r_new

        synr_s[...] = syn_r
        memr_s[...] = mem_r

    return kernel


# --------------------------------------------------------------------------
# Wrapper
# --------------------------------------------------------------------------
def maxr2_forward(x, w_in, w_rec, b_rec, w_out,
                  alpha_h, beta_h, alpha_r, beta_r, chunk=32):
    T, input_size = x.shape
    hidden_size = w_in.shape[1]
    n_heads = w_out.shape[0]
    out_size = w_out.shape[2]
    R = n_heads * out_size
    Rp = max(128, ((R + 127) // 128) * 128)   # lane-dense readout width

    n_chunks = -(-T // chunk)
    Tp = n_chunks * chunk

    # ---- phase 0 (hoisted): feed-forward projection of the delayed input ----
    x_prev = jnp.concatenate(
        [jnp.zeros((1, input_size), x.dtype), x[:-1]], axis=0)
    h_ff = jnp.dot(x_prev, w_in, preferred_element_type=jnp.float32) + b_rec
    if Tp != T:
        h_ff = jnp.pad(h_ff, ((0, Tp - T), (0, 0)))

    # bf16 recurrent weights (once); spikes are {0,1} so the LHS cast is exact
    w_rec_bf16 = w_rec.astype(jnp.bfloat16)

    # all readout heads flattened into one lane-padded weight matrix
    w_out_flat = jnp.transpose(w_out, (1, 0, 2)).reshape(hidden_size, R)
    w_out_p = jnp.zeros((hidden_size, Rp), jnp.float32).at[:, :R].set(
        w_out_flat.astype(jnp.float32))

    alpha_vec = jnp.zeros((1, Rp), jnp.float32).at[0, :R].set(
        jnp.repeat(jnp.asarray(alpha_r, jnp.float32), out_size))
    beta_vec = jnp.zeros((1, Rp), jnp.float32).at[0, :R].set(
        jnp.repeat(jnp.asarray(beta_r, jnp.float32), out_size))

    kernel = make_fused_kernel(chunk, float(alpha_h), float(beta_h))
    spk_full, memr_full = pl.pallas_call(
        kernel,
        out_shape=(
            jax.ShapeDtypeStruct((Tp, hidden_size), jnp.float32),
            jax.ShapeDtypeStruct((Tp, Rp), jnp.float32),
        ),
        grid_spec=pltpu.PrefetchScalarGridSpec(
            num_scalar_prefetch=0,
            grid=(n_chunks,),
            in_specs=[
                pl.BlockSpec((chunk, hidden_size), lambda c: (c, 0)),
                pl.BlockSpec((hidden_size, hidden_size), lambda c: (0, 0)),
                pl.BlockSpec((hidden_size, Rp), lambda c: (0, 0)),
                pl.BlockSpec((1, Rp), lambda c: (0, 0)),
                pl.BlockSpec((1, Rp), lambda c: (0, 0)),
            ],
            out_specs=[
                pl.BlockSpec((chunk, hidden_size), lambda c: (c, 0)),
                pl.BlockSpec((chunk, Rp), lambda c: (c, 0)),
            ],
            scratch_shapes=[
                pltpu.VMEM((1, hidden_size), jnp.float32),    # spk_hidden
                pltpu.VMEM((1, hidden_size), jnp.float32),    # syn_hidden
                pltpu.VMEM((1, hidden_size), jnp.float32),    # mem_hidden
                pltpu.VMEM((1, Rp), jnp.float32),             # syn_readouts
                pltpu.VMEM((1, Rp), jnp.float32),             # mem_readouts
                pltpu.VMEM((chunk, hidden_size), jnp.float32),  # prev-spike blk
            ],
        ),
        compiler_params=pltpu.CompilerParams(
            dimension_semantics=("arbitrary",),   # sequential recurrence
            vmem_limit_bytes=32 * 1024 * 1024),
    )(h_ff, w_rec_bf16, w_out_p, alpha_vec, beta_vec)

    spk_rec = spk_full if Tp == T else spk_full[:T]
    memr = memr_full if Tp == T else memr_full[:T]
    mem_r = memr[:, :R].reshape(T, n_heads, out_size)
    pred = jnp.mean(mem_r, axis=1)                # (T, 2)
    return pred, spk_rec


if __name__ == "__main__":
    # small shapes consistent with the module's forward (single time-major seq)
    T = 64           # timesteps (x.shape[0] loop), multiple of chunk=32
    input_size = 16
    hidden_size = 128
    n_heads = 3      # nb_readout_heads
    dt = 0.004

    key = jax.random.PRNGKey(0)
    kx, kin, krec, kbrec, kout = jax.random.split(key, 5)

    x = jax.random.normal(kx, (T, input_size), jnp.float32)
    w_in = jax.random.uniform(kin, (input_size, hidden_size), jnp.float32,
                              -1.0, 1.0) / math.sqrt(input_size)
    w_rec = jax.random.uniform(krec, (hidden_size, hidden_size), jnp.float32,
                               -1.0, 1.0) / math.sqrt(hidden_size)
    b_rec = jax.random.uniform(kbrec, (1, hidden_size), jnp.float32,
                               -1.0, 1.0) / math.sqrt(hidden_size)
    w_out = jax.random.uniform(kout, (n_heads, hidden_size, 2), jnp.float32,
                               -1.0, 1.0) / math.sqrt(hidden_size)

    # decay constants: exp(-dt / (softplus(param) * tau))
    tau_mem_hidden, tau_syn_hidden = 0.02, 0.01
    mem_param_hidden, syn_param_hidden = 1.0, 1.0
    tau_mem_readouts = [0.05, 0.1, 0.2]
    tau_syn_readouts = [0.01, 0.02, 0.04]
    mem_param_readouts = [1.0, 1.0, 1.0]
    syn_param_readouts = [1.0, 1.0, 1.0]

    alpha_h = _decay(syn_param_hidden, tau_syn_hidden, dt)
    beta_h = _decay(mem_param_hidden, tau_mem_hidden, dt)
    alpha_r = [_decay(sp, ts, dt)
               for sp, ts in zip(syn_param_readouts, tau_syn_readouts)]
    beta_r = [_decay(mp, tm, dt)
              for mp, tm in zip(mem_param_readouts, tau_mem_readouts)]

    pred, spk_rec = maxr2_forward(x, w_in, w_rec, b_rec, w_out,
                                  alpha_h, beta_h, alpha_r, beta_r, chunk=32)
    jax.block_until_ready((pred, spk_rec))
    assert pred.shape == (T, 2) and spk_rec.shape == (T, hidden_size)
    assert bool(jnp.all(jnp.isfinite(pred))) and bool(jnp.all(jnp.isfinite(spk_rec)))
    print("KERNEL_OK")
</pallas_src>

<mosaic_0001>
module attributes {stable_mosaic.version = 11 : i64} {
  func.func @kernel(%arg0: i32, %arg1: memref<32x128xf32, #tpu.memory_space<vmem>>, %arg2: memref<128x128xbf16, #tpu.memory_space<vmem>>, %arg3: memref<128x128xf32, #tpu.memory_space<vmem>>, %arg4: memref<1x128xf32, #tpu.memory_space<vmem>>, %arg5: memref<1x128xf32, #tpu.memory_space<vmem>>, %arg6: memref<32x128xf32, #tpu.memory_space<vmem>>, %arg7: memref<32x128xf32, #tpu.memory_space<vmem>>, %arg8: memref<1x128xf32, #tpu.memory_space<vmem>>, %arg9: memref<1x128xf32, #tpu.memory_space<vmem>>, %arg10: memref<1x128xf32, #tpu.memory_space<vmem>>, %arg11: memref<1x128xf32, #tpu.memory_space<vmem>>, %arg12: memref<1x128xf32, #tpu.memory_space<vmem>>, %arg13: memref<32x128xf32, #tpu.memory_space<vmem>>) attributes {dimension_semantics = [#tpu.dimension_semantics<arbitrary>], iteration_bounds = array<i64: 2>, scalar_prefetch = 0 : i64, scratch_operands = 6 : i64, tpu.core_type = #tpu.core_type<tc>, window_params = [{transform_indices = @transform_0, window_bounds = array<i64: 32, 128>}, {pipeline_mode = #tpu.pipeline_mode<synchronous>, transform_indices = @transform_1, window_bounds = array<i64: 128, 128>}, {pipeline_mode = #tpu.pipeline_mode<synchronous>, transform_indices = @transform_2, window_bounds = array<i64: 128, 128>}, {pipeline_mode = #tpu.pipeline_mode<synchronous>, transform_indices = @transform_3, window_bounds = array<i64: 1, 128>}, {pipeline_mode = #tpu.pipeline_mode<synchronous>, transform_indices = @transform_4, window_bounds = array<i64: 1, 128>}, {transform_indices = @transform_5, window_bounds = array<i64: 32, 128>}, {transform_indices = @transform_6, window_bounds = array<i64: 32, 128>}]} {
    %c0_i32 = arith.constant 0 : i32
    %0 = arith.cmpi eq, %arg0, %c0_i32 : i32
    %1 = arith.extui %0 : i1 to i32
    %c0_i32_0 = arith.constant 0 : i32
    %2 = arith.cmpi ne, %1, %c0_i32_0 : i32
    scf.if %2 {
      %cst_479 = arith.constant 0.000000e+00 : f32
      %979 = vector.broadcast %cst_479 : f32 to vector<1x128xf32>
      %c0_480 = arith.constant 0 : index
      %c0_481 = arith.constant 0 : index
      %980 = vector.load %arg8[%c0_480, %c0_481] : memref<1x128xf32, #tpu.memory_space<vmem>>, vector<1x128xf32>
      tpu.vector_store %arg8[%c0_480, %c0_481], %979 {strides = array<i32>} : memref<1x128xf32, #tpu.memory_space<vmem>>, vector<1x128xf32>,
      %cst_482 = arith.constant 0.000000e+00 : f32
      %981 = vector.broadcast %cst_482 : f32 to vector<1x128xf32>
      %c0_483 = arith.constant 0 : index
      %c0_484 = arith.constant 0 : index
      %982 = vector.load %arg9[%c0_483, %c0_484] : memref<1x128xf32, #tpu.memory_space<vmem>>, vector<1x128xf32>
      tpu.vector_store %arg9[%c0_483, %c0_484], %981 {strides = array<i32>} : memref<1x128xf32, #tpu.memory_space<vmem>>, vector<1x128xf32>,
      %cst_485 = arith.constant 0.000000e+00 : f32
      %983 = vector.broadcast %cst_485 : f32 to vector<1x128xf32>
      %c0_486 = arith.constant 0 : index
      %c0_487 = arith.constant 0 : index
      %984 = vector.load %arg10[%c0_486, %c0_487] : memref<1x128xf32, #tpu.memory_space<vmem>>, vector<1x128xf32>
      tpu.vector_store %arg10[%c0_486, %c0_487], %983 {strides = array<i32>} : memref<1x128xf32, #tpu.memory_space<vmem>>, vector<1x128xf32>,
      %cst_488 = arith.constant 0.000000e+00 : f32
      %985 = vector.broadcast %cst_488 : f32 to vector<1x128xf32>
      %c0_489 = arith.constant 0 : index
      %c0_490 = arith.constant 0 : index
      %986 = vector.load %arg11[%c0_489, %c0_490] : memref<1x128xf32, #tpu.memory_space<vmem>>, vector<1x128xf32>
      tpu.vector_store %arg11[%c0_489, %c0_490], %985 {strides = array<i32>} : memref<1x128xf32, #tpu.memory_space<vmem>>, vector<1x128xf32>,
      %cst_491 = arith.constant 0.000000e+00 : f32
      %987 = vector.broadcast %cst_491 : f32 to vector<1x128xf32>
      %c0_492 = arith.constant 0 : index
      %c0_493 = arith.constant 0 : index
      %988 = vector.load %arg12[%c0_492, %c0_493] : memref<1x128xf32, #tpu.memory_space<vmem>>, vector<1x128xf32>
      tpu.vector_store %arg12[%c0_492, %c0_493], %987 {strides = array<i32>} : memref<1x128xf32, #tpu.memory_space<vmem>>, vector<1x128xf32>,
    } else {
    }
    %c0 = arith.constant 0 : index
    %c0_1 = arith.constant 0 : index
    %3 = vector.load %arg2[%c0, %c0_1] : memref<128x128xbf16, #tpu.memory_space<vmem>>, vector<128x128xbf16>
    %c0_2 = arith.constant 0 : index
    %c0_3 = arith.constant 0 : index
    %4 = vector.load %arg8[%c0_2, %c0_3] : memref<1x128xf32, #tpu.memory_space<vmem>>, vector<1x128xf32>
    %c0_4 = arith.constant 0 : index
    %c0_5 = arith.constant 0 : index
    %5 = vector.load %arg9[%c0_4, %c0_5] : memref<1x128xf32, #tpu.memory_space<vmem>>, vector<1x128xf32>
    %c0_6 = arith.constant 0 : index
    %c0_7 = arith.constant 0 : index
    %6 = vector.load %arg10[%c0_6, %c0_7] : memref<1x128xf32, #tpu.memory_space<vmem>>, vector<1x128xf32>
    %c0_8 = arith.constant 0 : index
    %c0_9 = arith.constant 0 : index
    %7 = vector.load %arg13[%c0_8, %c0_9] : memref<32x128xf32, #tpu.memory_space<vmem>>, vector<1x128xf32>
    tpu.vector_store %arg13[%c0_8, %c0_9], %4 {strides = array<i32>} : memref<32x128xf32, #tpu.memory_space<vmem>>, vector<1x128xf32>,
    %c0_10 = arith.constant 0 : index
    %c0_11 = arith.constant 0 : index
    %8 = vector.load %arg1[%c0_10, %c0_11] : memref<32x128xf32, #tpu.memory_space<vmem>>, vector<1x128xf32>
    %9 = arith.truncf %4 : vector<1x128xf32> to vector<1x128xbf16>
    %cst = arith.constant dense<0.000000e+00> : vector<1x128xf32>
    %10 = tpu.matmul %9, %3, %cst {dimension_numbers = #tpu.dot_dimension_numbers<[1], [0], [0], [1], [0, 0, 1, 1], [], []>} : vector<1x128xbf16>, vector<128x128xbf16>, vector<1x128xf32> -> vector<1x128xf32>
    %11 = arith.addf %8, %10 : vector<1x128xf32>
    %cst_12 = arith.constant 0.737429261 : f32
    %12 = vector.broadcast %cst_12 : f32 to vector<1x128xf32>
    %13 = arith.mulf %12, %5 : vector<1x128xf32>
    %14 = arith.addf %13, %11 : vector<1x128xf32>
    %cst_13 = arith.constant 0.858736991 : f32
    %15 = vector.broadcast %cst_13 : f32 to vector<1x128xf32>
    %16 = arith.mulf %15, %6 : vector<1x128xf32>
    %cst_14 = arith.constant 1.412630e-01 : f32
    %17 = vector.broadcast %cst_14 : f32 to vector<1x128xf32>
    %18 = arith.mulf %17, %5 : vector<1x128xf32>
    %19 = arith.addf %16, %18 : vector<1x128xf32>
    %cst_15 = arith.constant 1.000000e+00 : f32
    %20 = vector.broadcast %cst_15 : f32 to vector<1x128xf32>
    %21 = arith.subf %20, %4 : vector<1x128xf32>
    %22 = arith.mulf %19, %21 : vector<1x128xf32>
    %cst_16 = arith.constant 1.000000e+00 : f32
    %23 = vector.broadcast %cst_16 : f32 to vector<1x128xf32>
    %24 = arith.cmpf ogt, %22, %23 : vector<1x128xf32>
    %25 = arith.extui %24 : vector<1x128xi1> to vector<1x128xi32>
    %26 = arith.sitofp %25 : vector<1x128xi32> to vector<1x128xf32>
    %c0_17 = arith.constant 0 : index
    %c0_18 = arith.constant 0 : index
    %27 = vector.load %arg6[%c0_17, %c0_18] : memref<32x128xf32, #tpu.memory_space<vmem>>, vector<1x128xf32>
    tpu.vector_store %arg6[%c0_17, %c0_18], %26 {strides = array<i32>} : memref<32x128xf32, #tpu.memory_space<vmem>>, vector<1x128xf32>,
    %c1 = arith.constant 1 : index
    %c0_19 = arith.constant 0 : index
    %28 = vector.load %arg13[%c1, %c0_19] : memref<32x128xf32, #tpu.memory_space<vmem>>, vector<1x128xf32>
    tpu.vector_store %arg13[%c1, %c0_19], %26 {strides = array<i32>} : memref<32x128xf32, #tpu.memory_space<vmem>>, vector<1x128xf32>,
    %c1_20 = arith.constant 1 : index
    %c0_21 = arith.constant 0 : index
    %29 = vector.load %arg1[%c1_20, %c0_21] : memref<32x128xf32, #tpu.memory_space<vmem>>, vector<1x128xf32>
    %30 = arith.truncf %26 : vector<1x128xf32> to vector<1x128xbf16>
    %cst_22 = arith.constant dense<0.000000e+00> : vector<1x128xf32>
    %31 = tpu.matmul %30, %3, %cst_22 {dimension_numbers = #tpu.dot_dimension_numbers<[1], [0], [0], [1], [0, 0, 1, 1], [], []>} : vector<1x128xbf16>, vector<128x128xbf16>, vector<1x128xf32> -> vector<1x128xf32>
    %32 = arith.addf %29, %31 : vector<1x128xf32>
    %cst_23 = arith.constant 0.737429261 : f32
    %33 = vector.broadcast %cst_23 : f32 to vector<1x128xf32>
    %34 = arith.mulf %33, %14 : vector<1x128xf32>
    %35 = arith.addf %34, %32 : vector<1x128xf32>
    %cst_24 = arith.constant 0.858736991 : f32
    %36 = vector.broadcast %cst_24 : f32 to vector<1x128xf32>
    %37 = arith.mulf %36, %22 : vector<1x128xf32>
    %cst_25 = arith.constant 1.412630e-01 : f32
    %38 = vector.broadcast %cst_25 : f32 to vector<1x128xf32>
    %39 = arith.mulf %38, %14 : vector<1x128xf32>
    %40 = arith.addf %37, %39 : vector<1x128xf32>
    %cst_26 = arith.constant 1.000000e+00 : f32
    %41 = vector.broadcast %cst_26 : f32 to vector<1x128xf32>
    %42 = arith.subf %41, %26 : vector<1x128xf32>
    %43 = arith.mulf %40, %42 : vector<1x128xf32>
    %cst_27 = arith.constant 1.000000e+00 : f32
    %44 = vector.broadcast %cst_27 : f32 to vector<1x128xf32>
    %45 = arith.cmpf ogt, %43, %44 : vector<1x128xf32>
    %46 = arith.extui %45 : vector<1x128xi1> to vector<1x128xi32>
    %47 = arith.sitofp %46 : vector<1x128xi32> to vector<1x128xf32>
    %c1_28 = arith.constant 1 : index
    %c0_29 = arith.constant 0 : index
    %48 = vector.load %arg6[%c1_28, %c0_29] : memref<32x128xf32, #tpu.memory_space<vmem>>, vector<1x128xf32>
    tpu.vector_store %arg6[%c1_28, %c0_29], %47 {strides = array<i32>} : memref<32x128xf32, #tpu.memory_space<vmem>>, vector<1x128xf32>,
    %c2 = arith.constant 2 : index
    %c0_30 = arith.constant 0 : index
    %49 = vector.load %arg13[%c2, %c0_30] : memref<32x128xf32, #tpu.memory_space<vmem>>, vector<1x128xf32>
    tpu.vector_store %arg13[%c2, %c0_30], %47 {strides = array<i32>} : memref<32x128xf32, #tpu.memory_space<vmem>>, vector<1x128xf32>,
    %c2_31 = arith.constant 2 : index
    %c0_32 = arith.constant 0 : index
    %50 = vector.load %arg1[%c2_31, %c0_32] : memref<32x128xf32, #tpu.memory_space<vmem>>, vector<1x128xf32>
    %51 = arith.truncf %47 : vector<1x128xf32> to vector<1x128xbf16>
    %cst_33 = arith.constant dense<0.000000e+00> : vector<1x128xf32>
    %52 = tpu.matmul %51, %3, %cst_33 {dimension_numbers = #tpu.dot_dimension_numbers<[1], [0], [0], [1], [0, 0, 1, 1], [], []>} : vector<1x128xbf16>, vector<128x128xbf16>, vector<1x128xf32> -> vector<1x128xf32>
    %53 = arith.addf %50, %52 : vector<1x128xf32>
    %cst_34 = arith.constant 0.737429261 : f32
    %54 = vector.broadcast %cst_34 : f32 to vector<1x128xf32>
    %55 = arith.mulf %54, %35 : vector<1x128xf32>
    %56 = arith.addf %55, %53 : vector<1x128xf32>
    %cst_35 = arith.constant 0.858736991 : f32
    %57 = vector.broadcast %cst_35 : f32 to vector<1x128xf32>
    %58 = arith.mulf %57, %43 : vector<1x128xf32>
    %cst_36 = arith.constant 1.412630e-01 : f32
    %59 = vector.broadcast %cst_36 : f32 to vector<1x128xf32>
    %60 = arith.mulf %59, %35 : vector<1x128xf32>
    %61 = arith.addf %58, %60 : vector<1x128xf32>
    %cst_37 = arith.constant 1.000000e+00 : f32
    %62 = vector.broadcast %cst_37 : f32 to vector<1x128xf32>
    %63 = arith.subf %62, %47 : vector<1x128xf32>
    %64 = arith.mulf %61, %63 : vector<1x128xf32>
    %cst_38 = arith.constant 1.000000e+00 : f32
    %65 = vector.broadcast %cst_38 : f32 to vector<1x128xf32>
    %66 = arith.cmpf ogt, %64, %65 : vector<1x128xf32>
    %67 = arith.extui %66 : vector<1x128xi1> to vector<1x128xi32>
    %68 = arith.sitofp %67 : vector<1x128xi32> to vector<1x128xf32>
    %c2_39 = arith.constant 2 : index
    %c0_40 = arith.constant 0 : index
    %69 = vector.load %arg6[%c2_39, %c0_40] : memref<32x128xf32, #tpu.memory_space<vmem>>, vector<1x128xf32>
    tpu.vector_store %arg6[%c2_39, %c0_40], %68 {strides = array<i32>} : memref<32x128xf32, #tpu.memory_space<vmem>>, vector<1x128xf32>,
    %c3 = arith.constant 3 : index
    %c0_41 = arith.constant 0 : index
    %70 = vector.load %arg13[%c3, %c0_41] : memref<32x128xf32, #tpu.memory_space<vmem>>, vector<1x128xf32>
    tpu.vector_store %arg13[%c3, %c0_41], %68 {strides = array<i32>} : memref<32x128xf32, #tpu.memory_space<vmem>>, vector<1x128xf32>,
    %c3_42 = arith.constant 3 : index
    %c0_43 = arith.constant 0 : index
    %71 = vector.load %arg1[%c3_42, %c0_43] : memref<32x128xf32, #tpu.memory_space<vmem>>, vector<1x128xf32>
    %72 = arith.truncf %68 : vector<1x128xf32> to vector<1x128xbf16>
    %cst_44 = arith.constant dense<0.000000e+00> : vector<1x128xf32>
    %73 = tpu.matmul %72, %3, %cst_44 {dimension_numbers = #tpu.dot_dimension_numbers<[1], [0], [0], [1], [0, 0, 1, 1], [], []>} : vector<1x128xbf16>, vector<128x128xbf16>, vector<1x128xf32> -> vector<1x128xf32>
    %74 = arith.addf %71, %73 : vector<1x128xf32>
    %cst_45 = arith.constant 0.737429261 : f32
    %75 = vector.broadcast %cst_45 : f32 to vector<1x128xf32>
    %76 = arith.mulf %75, %56 : vector<1x128xf32>
    %77 = arith.addf %76, %74 : vector<1x128xf32>
    %cst_46 = arith.constant 0.858736991 : f32
    %78 = vector.broadcast %cst_46 : f32 to vector<1x128xf32>
    %79 = arith.mulf %78, %64 : vector<1x128xf32>
    %cst_47 = arith.constant 1.412630e-01 : f32
    %80 = vector.broadcast %cst_47 : f32 to vector<1x128xf32>
    %81 = arith.mulf %80, %56 : vector<1x128xf32>
    %82 = arith.addf %79, %81 : vector<1x128xf32>
    %cst_48 = arith.constant 1.000000e+00 : f32
    %83 = vector.broadcast %cst_48 : f32 to vector<1x128xf32>
    %84 = arith.subf %83, %68 : vector<1x128xf32>
    %85 = arith.mulf %82, %84 : vector<1x128xf32>
    %cst_49 = arith.constant 1.000000e+00 : f32
    %86 = vector.broadcast %cst_49 : f32 to vector<1x128xf32>
    %87 = arith.cmpf ogt, %85, %86 : vector<1x128xf32>
    %88 = arith.extui %87 : vector<1x128xi1> to vector<1x128xi32>
    %89 = arith.sitofp %88 : vector<1x128xi32> to vector<1x128xf32>
    %c3_50 = arith.constant 3 : index
    %c0_51 = arith.constant 0 : index
    %90 = vector.load %arg6[%c3_50, %c0_51] : memref<32x128xf32, #tpu.memory_space<vmem>>, vector<1x128xf32>
    tpu.vector_store %arg6[%c3_50, %c0_51], %89 {strides = array<i32>} : memref<32x128xf32, #tpu.memory_space<vmem>>, vector<1x128xf32>,
    %c4 = arith.constant 4 : index
    %c0_52 = arith.constant 0 : index
    %91 = vector.load %arg13[%c4, %c0_52] : memref<32x128xf32, #tpu.memory_space<vmem>>, vector<1x128xf32>
    tpu.vector_store %arg13[%c4, %c0_52], %89 {strides = array<i32>} : memref<32x128xf32, #tpu.memory_space<vmem>>, vector<1x128xf32>,
    %c4_53 = arith.constant 4 : index
    %c0_54 = arith.constant 0 : index
    %92 = vector.load %arg1[%c4_53, %c0_54] : memref<32x128xf32, #tpu.memory_space<vmem>>, vector<1x128xf32>
    %93 = arith.truncf %89 : vector<1x128xf32> to vector<1x128xbf16>
    %cst_55 = arith.constant dense<0.000000e+00> : vector<1x128xf32>
    %94 = tpu.matmul %93, %3, %cst_55 {dimension_numbers = #tpu.dot_dimension_numbers<[1], [0], [0], [1], [0, 0, 1, 1], [], []>} : vector<1x128xbf16>, vector<128x128xbf16>, vector<1x128xf32> -> vector<1x128xf32>
    %95 = arith.addf %92, %94 : vector<1x128xf32>
    %cst_56 = arith.constant 0.737429261 : f32
    %96 = vector.broadcast %cst_56 : f32 to vector<1x128xf32>
    %97 = arith.mulf %96, %77 : vector<1x128xf32>
    %98 = arith.addf %97, %95 : vector<1x128xf32>
    %cst_57 = arith.constant 0.858736991 : f32
    %99 = vector.broadcast %cst_57 : f32 to vector<1x128xf32>
    %100 = arith.mulf %99, %85 : vector<1x128xf32>
    %cst_58 = arith.constant 1.412630e-01 : f32
    %101 = vector.broadcast %cst_58 : f32 to vector<1x128xf32>
    %102 = arith.mulf %101, %77 : vector<1x128xf32>
    %103 = arith.addf %100, %102 : vector<1x128xf32>
    %cst_59 = arith.constant 1.000000e+00 : f32
    %104 = vector.broadcast %cst_59 : f32 to vector<1x128xf32>
    %105 = arith.subf %104, %89 : vector<1x128xf32>
    %106 = arith.mulf %103, %105 : vector<1x128xf32>
    %cst_60 = arith.constant 1.000000e+00 : f32
    %107 = vector.broadcast %cst_60 : f32 to vector<1x128xf32>
    %108 = arith.cmpf ogt, %106, %107 : vector<1x128xf32>
    %109 = arith.extui %108 : vector<1x128xi1> to vector<1x128xi32>
    %110 = arith.sitofp %109 : vector<1x128xi32> to vector<1x128xf32>
    %c4_61 = arith.constant 4 : index
    %c0_62 = arith.constant 0 : index
    %111 = vector.load %arg6[%c4_61, %c0_62] : memref<32x128xf32, #tpu.memory_space<vmem>>, vector<1x128xf32>
    tpu.vector_store %arg6[%c4_61, %c0_62], %110 {strides = array<i32>} : memref<32x128xf32, #tpu.memory_space<vmem>>, vector<1x128xf32>,
    %c5 = arith.constant 5 : index
    %c0_63 = arith.constant 0 : index
    %112 = vector.load %arg13[%c5, %c0_63] : memref<32x128xf32, #tpu.memory_space<vmem>>, vector<1x128xf32>
    tpu.vector_store %arg13[%c5, %c0_63], %110 {strides = array<i32>} : memref<32x128xf32, #tpu.memory_space<vmem>>, vector<1x128xf32>,
    %c5_64 = arith.constant 5 : index
    %c0_65 = arith.constant 0 : index
    %113 = vector.load %arg1[%c5_64, %c0_65] : memref<32x128xf32, #tpu.memory_space<vmem>>, vector<1x128xf32>
    %114 = arith.truncf %110 : vector<1x128xf32> to vector<1x128xbf16>
    %cst_66 = arith.constant dense<0.000000e+00> : vector<1x128xf32>
    %115 = tpu.matmul %114, %3, %cst_66 {dimension_numbers = #tpu.dot_dimension_numbers<[1], [0], [0], [1], [0, 0, 1, 1], [], []>} : vector<1x128xbf16>, vector<128x128xbf16>, vector<1x128xf32> -> vector<1x128xf32>
    %116 = arith.addf %113, %115 : vector<1x128xf32>
    %cst_67 = arith.constant 0.737429261 : f32
    %117 = vector.broadcast %cst_67 : f32 to vector<1x128xf32>
    %118 = arith.mulf %117, %98 : vector<1x128xf32>
    %119 = arith.addf %118, %116 : vector<1x128xf32>
    %cst_68 = arith.constant 0.858736991 : f32
    %120 = vector.broadcast %cst_68 : f32 to vector<1x128xf32>
    %121 = arith.mulf %120, %106 : vector<1x128xf32>
    %cst_69 = arith.constant 1.412630e-01 : f32
    %122 = vector.broadcast %cst_69 : f32 to vector<1x128xf32>
    %123 = arith.mulf %122, %98 : vector<1x128xf32>
    %124 = arith.addf %121, %123 : vector<1x128xf32>
    %cst_70 = arith.constant 1.000000e+00 : f32
    %125 = vector.broadcast %cst_70 : f32 to vector<1x128xf32>
    %126 = arith.subf %125, %110 : vector<1x128xf32>
    %127 = arith.mulf %124, %126 : vector<1x128xf32>
    %cst_71 = arith.constant 1.000000e+00 : f32
    %128 = vector.broadcast %cst_71 : f32 to vector<1x128xf32>
    %129 = arith.cmpf ogt, %127, %128 : vector<1x128xf32>
    %130 = arith.extui %129 : vector<1x128xi1> to vector<1x128xi32>
    %131 = arith.sitofp %130 : vector<1x128xi32> to vector<1x128xf32>
    %c5_72 = arith.constant 5 : index
    %c0_73 = arith.constant 0 : index
    %132 = vector.load %arg6[%c5_72, %c0_73] : memref<32x128xf32, #tpu.memory_space<vmem>>, vector<1x128xf32>
    tpu.vector_store %arg6[%c5_72, %c0_73], %131 {strides = array<i32>} : memref<32x128xf32, #tpu.memory_space<vmem>>, vector<1x128xf32>,
    %c6 = arith.constant 6 : index
    %c0_74 = arith.constant 0 : index
    %133 = vector.load %arg13[%c6, %c0_74] : memref<32x128xf32, #tpu.memory_space<vmem>>, vector<1x128xf32>
    tpu.vector_store %arg13[%c6, %c0_74], %131 {strides = array<i32>} : memref<32x128xf32, #tpu.memory_space<vmem>>, vector<1x128xf32>,
    %c6_75 = arith.constant 6 : index
    %c0_76 = arith.constant 0 : index
    %134 = vector.load %arg1[%c6_75, %c0_76] : memref<32x128xf32, #tpu.memory_space<vmem>>, vector<1x128xf32>
    %135 = arith.truncf %131 : vector<1x128xf32> to vector<1x128xbf16>
    %cst_77 = arith.constant dense<0.000000e+00> : vector<1x128xf32>
    %136 = tpu.matmul %135, %3, %cst_77 {dimension_numbers = #tpu.dot_dimension_numbers<[1], [0], [0], [1], [0, 0, 1, 1], [], []>} : vector<1x128xbf16>, vector<128x128xbf16>, vector<1x128xf32> -> vector<1x128xf32>
    %137 = arith.addf %134, %136 : vector<1x128xf32>
    %cst_78 = arith.constant 0.737429261 : f32
    %138 = vector.broadcast %cst_78 : f32 to vector<1x128xf32>
    %139 = arith.mulf %138, %119 : vector<1x128xf32>
    %140 = arith.addf %139, %137 : vector<1x128xf32>
    %cst_79 = arith.constant 0.858736991 : f32
    %141 = vector.broadcast %cst_79 : f32 to vector<1x128xf32>
    %142 = arith.mulf %141, %127 : vector<1x128xf32>
    %cst_80 = arith.constant 1.412630e-01 : f32
    %143 = vector.broadcast %cst_80 : f32 to vector<1x128xf32>
    %144 = arith.mulf %143, %119 : vector<1x128xf32>
    %145 = arith.addf %142, %144 : vector<1x128xf32>
    %cst_81 = arith.constant 1.000000e+00 : f32
    %146 = vector.broadcast %cst_81 : f32 to vector<1x128xf32>
    %147 = arith.subf %146, %131 : vector<1x128xf32>
    %148 = arith.mulf %145, %147 : vector<1x128xf32>
    %cst_82 = arith.constant 1.000000e+00 : f32
    %149 = vector.broadcast %cst_82 : f32 to vector<1x128xf32>
    %150 = arith.cmpf ogt, %148, %149 : vector<1x128xf32>
    %151 = arith.extui %150 : vector<1x128xi1> to vector<1x128xi32>
    %152 = arith.sitofp %151 : vector<1x128xi32> to vector<1x128xf32>
    %c6_83 = arith.constant 6 : index
    %c0_84 = arith.constant 0 : index
    %153 = vector.load %arg6[%c6_83, %c0_84] : memref<32x128xf32, #tpu.memory_space<vmem>>, vector<1x128xf32>
    tpu.vector_store %arg6[%c6_83, %c0_84], %152 {strides = array<i32>} : memref<32x128xf32, #tpu.memory_space<vmem>>, vector<1x128xf32>,
    %c7 = arith.constant 7 : index
    %c0_85 = arith.constant 0 : index
    %154 = vector.load %arg13[%c7, %c0_85] : memref<32x128xf32, #tpu.memory_space<vmem>>, vector<1x128xf32>
    tpu.vector_store %arg13[%c7, %c0_85], %152 {strides = array<i32>} : memref<32x128xf32, #tpu.memory_space<vmem>>, vector<1x128xf32>,
    %c7_86 = arith.constant 7 : index
    %c0_87 = arith.constant 0 : index
    %155 = vector.load %arg1[%c7_86, %c0_87] : memref<32x128xf32, #tpu.memory_space<vmem>>, vector<1x128xf32>
    %156 = arith.truncf %152 : vector<1x128xf32> to vector<1x128xbf16>
    %cst_88 = arith.constant dense<0.000000e+00> : vector<1x128xf32>
    %157 = tpu.matmul %156, %3, %cst_88 {dimension_numbers = #tpu.dot_dimension_numbers<[1], [0], [0], [1], [0, 0, 1, 1], [], []>} : vector<1x128xbf16>, vector<128x128xbf16>, vector<1x128xf32> -> vector<1x128xf32>
    %158 = arith.addf %155, %157 : vector<1x128xf32>
    %cst_89 = arith.constant 0.737429261 : f32
    %159 = vector.broadcast %cst_89 : f32 to vector<1x128xf32>
    %160 = arith.mulf %159, %140 : vector<1x128xf32>
    %161 = arith.addf %160, %158 : vector<1x128xf32>
    %cst_90 = arith.constant 0.858736991 : f32
    %162 = vector.broadcast %cst_90 : f32 to vector<1x128xf32>
    %163 = arith.mulf %162, %148 : vector<1x128xf32>
    %cst_91 = arith.constant 1.412630e-01 : f32
    %164 = vector.broadcast %cst_91 : f32 to vector<1x128xf32>
    %165 = arith.mulf %164, %140 : vector<1x128xf32>
    %166 = arith.addf %163, %165 : vector<1x128xf32>
    %cst_92 = arith.constant 1.000000e+00 : f32
    %167 = vector.broadcast %cst_92 : f32 to vector<1x128xf32>
    %168 = arith.subf %167, %152 : vector<1x128xf32>
    %169 = arith.mulf %166, %168 : vector<1x128xf32>
    %cst_93 = arith.constant 1.000000e+00 : f32
    %170 = vector.broadcast %cst_93 : f32 to vector<1x128xf32>
    %171 = arith.cmpf ogt, %169, %170 : vector<1x128xf32>
    %172 = arith.extui %171 : vector<1x128xi1> to vector<1x128xi32>
    %173 = arith.sitofp %172 : vector<1x128xi32> to vector<1x128xf32>
    %c7_94 = arith.constant 7 : index
    %c0_95 = arith.constant 0 : index
    %174 = vector.load %arg6[%c7_94, %c0_95] : memref<32x128xf32, #tpu.memory_space<vmem>>, vector<1x128xf32>
    tpu.vector_store %arg6[%c7_94, %c0_95], %173 {strides = array<i32>} : memref<32x128xf32, #tpu.memory_space<vmem>>, vector<1x128xf32>,
    %c8 = arith.constant 8 : index
    %c0_96 = arith.constant 0 : index
    %175 = vector.load %arg13[%c8, %c0_96] : memref<32x128xf32, #tpu.memory_space<vmem>>, vector<1x128xf32>
    tpu.vector_store %arg13[%c8, %c0_96], %173 {strides = array<i32>} : memref<32x128xf32, #tpu.memory_space<vmem>>, vector<1x128xf32>,
    %c8_97 = arith.constant 8 : index
    %c0_98 = arith.constant 0 : index
    %176 = vector.load %arg1[%c8_97, %c0_98] : memref<32x128xf32, #tpu.memory_space<vmem>>, vector<1x128xf32>
    %177 = arith.truncf %173 : vector<1x128xf32> to vector<1x128xbf16>
    %cst_99 = arith.constant dense<0.000000e+00> : vector<1x128xf32>
    %178 = tpu.matmul %177, %3, %cst_99 {dimension_numbers = #tpu.dot_dimension_numbers<[1], [0], [0], [1], [0, 0, 1, 1], [], []>} : vector<1x128xbf16>, vector<128x128xbf16>, vector<1x128xf32> -> vector<1x128xf32>
    %179 = arith.addf %176, %178 : vector<1x128xf32>
    %cst_100 = arith.constant 0.737429261 : f32
    %180 = vector.broadcast %cst_100 : f32 to vector<1x128xf32>
    %181 = arith.mulf %180, %161 : vector<1x128xf32>
    %182 = arith.addf %181, %179 : vector<1x128xf32>
    %cst_101 = arith.constant 0.858736991 : f32
    %183 = vector.broadcast %cst_101 : f32 to vector<1x128xf32>
    %184 = arith.mulf %183, %169 : vector<1x128xf32>
    %cst_102 = arith.constant 1.412630e-01 : f32
    %185 = vector.broadcast %cst_102 : f32 to vector<1x128xf32>
    %186 = arith.mulf %185, %161 : vector<1x128xf32>
    %187 = arith.addf %184, %186 : vector<1x128xf32>
    %cst_103 = arith.constant 1.000000e+00 : f32
    %188 = vector.broadcast %cst_103 : f32 to vector<1x128xf32>
    %189 = arith.subf %188, %173 : vector<1x128xf32>
    %190 = arith.mulf %187, %189 : vector<1x128xf32>
    %cst_104 = arith.constant 1.000000e+00 : f32
    %191 = vector.broadcast %cst_104 : f32 to vector<1x128xf32>
    %192 = arith.cmpf ogt, %190, %191 : vector<1x128xf32>
    %193 = arith.extui %192 : vector<1x128xi1> to vector<1x128xi32>
    %194 = arith.sitofp %193 : vector<1x128xi32> to vector<1x128xf32>
    %c8_105 = arith.constant 8 : index
    %c0_106 = arith.constant 0 : index
    %195 = vector.load %arg6[%c8_105, %c0_106] : memref<32x128xf32, #tpu.memory_space<vmem>>, vector<1x128xf32>
    tpu.vector_store %arg6[%c8_105, %c0_106], %194 {strides = array<i32>} : memref<32x128xf32, #tpu.memory_space<vmem>>, vector<1x128xf32>,
    %c9 = arith.constant 9 : index
    %c0_107 = arith.constant 0 : index
    %196 = vector.load %arg13[%c9, %c0_107] : memref<32x128xf32, #tpu.memory_space<vmem>>, vector<1x128xf32>
    tpu.vector_store %arg13[%c9, %c0_107], %194 {strides = array<i32>} : memref<32x128xf32, #tpu.memory_space<vmem>>, vector<1x128xf32>,
    %c9_108 = arith.constant 9 : index
    %c0_109 = arith.constant 0 : index
    %197 = vector.load %arg1[%c9_108, %c0_109] : memref<32x128xf32, #tpu.memory_space<vmem>>, vector<1x128xf32>
    %198 = arith.truncf %194 : vector<1x128xf32> to vector<1x128xbf16>
    %cst_110 = arith.constant dense<0.000000e+00> : vector<1x128xf32>
    %199 = tpu.matmul %198, %3, %cst_110 {dimension_numbers = #tpu.dot_dimension_numbers<[1], [0], [0], [1], [0, 0, 1, 1], [], []>} : vector<1x128xbf16>, vector<128x128xbf16>, vector<1x128xf32> -> vector<1x128xf32>
    %200 = arith.addf %197, %199 : vector<1x128xf32>
    %cst_111 = arith.constant 0.737429261 : f32
    %201 = vector.broadcast %cst_111 : f32 to vector<1x128xf32>
    %202 = arith.mulf %201, %182 : vector<1x128xf32>
    %203 = arith.addf %202, %200 : vector<1x128xf32>
    %cst_112 = arith.constant 0.858736991 : f32
    %204 = vector.broadcast %cst_112 : f32 to vector<1x128xf32>
    %205 = arith.mulf %204, %190 : vector<1x128xf32>
    %cst_113 = arith.constant 1.412630e-01 : f32
    %206 = vector.broadcast %cst_113 : f32 to vector<1x128xf32>
    %207 = arith.mulf %206, %182 : vector<1x128xf32>
    %208 = arith.addf %205, %207 : vector<1x128xf32>
    %cst_114 = arith.constant 1.000000e+00 : f32
    %209 = vector.broadcast %cst_114 : f32 to vector<1x128xf32>
    %210 = arith.subf %209, %194 : vector<1x128xf32>
    %211 = arith.mulf %208, %210 : vector<1x128xf32>
    %cst_115 = arith.constant 1.000000e+00 : f32
    %212 = vector.broadcast %cst_115 : f32 to vector<1x128xf32>
    %213 = arith.cmpf ogt, %211, %212 : vector<1x128xf32>
    %214 = arith.extui %213 : vector<1x128xi1> to vector<1x128xi32>
    %215 = arith.sitofp %214 : vector<1x128xi32> to vector<1x128xf32>
    %c9_116 = arith.constant 9 : index
    %c0_117 = arith.constant 0 : index
    %216 = vector.load %arg6[%c9_116, %c0_117] : memref<32x128xf32, #tpu.memory_space<vmem>>, vector<1x128xf32>
    tpu.vector_store %arg6[%c9_116, %c0_117], %215 {strides = array<i32>} : memref<32x128xf32, #tpu.memory_space<vmem>>, vector<1x128xf32>,
    %c10 = arith.constant 10 : index
    %c0_118 = arith.constant 0 : index
    %217 = vector.load %arg13[%c10, %c0_118] : memref<32x128xf32, #tpu.memory_space<vmem>>, vector<1x128xf32>
    tpu.vector_store %arg13[%c10, %c0_118], %215 {strides = array<i32>} : memref<32x128xf32, #tpu.memory_space<vmem>>, vector<1x128xf32>,
    %c10_119 = arith.constant 10 : index
    %c0_120 = arith.constant 0 : index
    %218 = vector.load %arg1[%c10_119, %c0_120] : memref<32x128xf32, #tpu.memory_space<vmem>>, vector<1x128xf32>
    %219 = arith.truncf %215 : vector<1x128xf32> to vector<1x128xbf16>
    %cst_121 = arith.constant dense<0.000000e+00> : vector<1x128xf32>
    %220 = tpu.matmul %219, %3, %cst_121 {dimension_numbers = #tpu.dot_dimension_numbers<[1], [0], [0], [1], [0, 0, 1, 1], [], []>} : vector<1x128xbf16>, vector<128x128xbf16>, vector<1x128xf32> -> vector<1x128xf32>
    %221 = arith.addf %218, %220 : vector<1x128xf32>
    %cst_122 = arith.constant 0.737429261 : f32
    %222 = vector.broadcast %cst_122 : f32 to vector<1x128xf32>
    %223 = arith.mulf %222, %203 : vector<1x128xf32>
    %224 = arith.addf %223, %221 : vector<1x128xf32>
    %cst_123 = arith.constant 0.858736991 : f32
    %225 = vector.broadcast %cst_123 : f32 to vector<1x128xf32>
    %226 = arith.mulf %225, %211 : vector<1x128xf32>
    %cst_124 = arith.constant 1.412630e-01 : f32
    %227 = vector.broadcast %cst_124 : f32 to vector<1x128xf32>
    %228 = arith.mulf %227, %203 : vector<1x128xf32>
    %229 = arith.addf %226, %228 : vector<1x128xf32>
    %cst_125 = arith.constant 1.000000e+00 : f32
    %230 = vector.broadcast %cst_125 : f32 to vector<1x128xf32>
    %231 = arith.subf %230, %215 : vector<1x128xf32>
    %232 = arith.mulf %229, %231 : vector<1x128xf32>
    %cst_126 = arith.constant 1.000000e+00 : f32
    %233 = vector.broadcast %cst_126 : f32 to vector<1x128xf32>
    %234 = arith.cmpf ogt, %232, %233 : vector<1x128xf32>
    %235 = arith.extui %234 : vector<1x128xi1> to vector<1x128xi32>
    %236 = arith.sitofp %235 : vector<1x128xi32> to vector<1x128xf32>
    %c10_127 = arith.constant 10 : index
    %c0_128 = arith.constant 0 : index
    %237 = vector.load %arg6[%c10_127, %c0_128] : memref<32x128xf32, #tpu.memory_space<vmem>>, vector<1x128xf32>
    tpu.vector_store %arg6[%c10_127, %c0_128], %236 {strides = array<i32>} : memref<32x128xf32, #tpu.memory_space<vmem>>, vector<1x128xf32>,
    %c11 = arith.constant 11 : index
    %c0_129 = arith.constant 0 : index
    %238 = vector.load %arg13[%c11, %c0_129] : memref<32x128xf32, #tpu.memory_space<vmem>>, vector<1x128xf32>
    tpu.vector_store %arg13[%c11, %c0_129], %236 {strides = array<i32>} : memref<32x128xf32, #tpu.memory_space<vmem>>, vector<1x128xf32>,
    %c11_130 = arith.constant 11 : index
    %c0_131 = arith.constant 0 : index
    %239 = vector.load %arg1[%c11_130, %c0_131] : memref<32x128xf32, #tpu.memory_space<vmem>>, vector<1x128xf32>
    %240 = arith.truncf %236 : vector<1x128xf32> to vector<1x128xbf16>
    %cst_132 = arith.constant dense<0.000000e+00> : vector<1x128xf32>
    %241 = tpu.matmul %240, %3, %cst_132 {dimension_numbers = #tpu.dot_dimension_numbers<[1], [0], [0], [1], [0, 0, 1, 1], [], []>} : vector<1x128xbf16>, vector<128x128xbf16>, vector<1x128xf32> -> vector<1x128xf32>
    %242 = arith.addf %239, %241 : vector<1x128xf32>
    %cst_133 = arith.constant 0.737429261 : f32
    %243 = vector.broadcast %cst_133 : f32 to vector<1x128xf32>
    %244 = arith.mulf %243, %224 : vector<1x128xf32>
    %245 = arith.addf %244, %242 : vector<1x128xf32>
    %cst_134 = arith.constant 0.858736991 : f32
    %246 = vector.broadcast %cst_134 : f32 to vector<1x128xf32>
    %247 = arith.mulf %246, %232 : vector<1x128xf32>
    %cst_135 = arith.constant 1.412630e-01 : f32
    %248 = vector.broadcast %cst_135 : f32 to vector<1x128xf32>
    %249 = arith.mulf %248, %224 : vector<1x128xf32>
    %250 = arith.addf %247, %249 : vector<1x128xf32>
    %cst_136 = arith.constant 1.000000e+00 : f32
    %251 = vector.broadcast %cst_136 : f32 to vector<1x128xf32>
    %252 = arith.subf %251, %236 : vector<1x128xf32>
    %253 = arith.mulf %250, %252 : vector<1x128xf32>
    %cst_137 = arith.constant 1.000000e+00 : f32
    %254 = vector.broadcast %cst_137 : f32 to vector<1x128xf32>
    %255 = arith.cmpf ogt, %253, %254 : vector<1x128xf32>
    %256 = arith.extui %255 : vector<1x128xi1> to vector<1x128xi32>
    %257 = arith.sitofp %256 : vector<1x128xi32> to vector<1x128xf32>
    %c11_138 = arith.constant 11 : index
    %c0_139 = arith.constant 0 : index
    %258 = vector.load %arg6[%c11_138, %c0_139] : memref<32x128xf32, #tpu.memory_space<vmem>>, vector<1x128xf32>
    tpu.vector_store %arg6[%c11_138, %c0_139], %257 {strides = array<i32>} : memref<32x128xf32, #tpu.memory_space<vmem>>, vector<1x128xf32>,
    %c12 = arith.constant 12 : index
    %c0_140 = arith.constant 0 : index
    %259 = vector.load %arg13[%c12, %c0_140] : memref<32x128xf32, #tpu.memory_space<vmem>>, vector<1x128xf32>
    tpu.vector_store %arg13[%c12, %c0_140], %257 {strides = array<i32>} : memref<32x128xf32, #tpu.memory_space<vmem>>, vector<1x128xf32>,
    %c12_141 = arith.constant 12 : index
    %c0_142 = arith.constant 0 : index
    %260 = vector.load %arg1[%c12_141, %c0_142] : memref<32x128xf32, #tpu.memory_space<vmem>>, vector<1x128xf32>
    %261 = arith.truncf %257 : vector<1x128xf32> to vector<1x128xbf16>
    %cst_143 = arith.constant dense<0.000000e+00> : vector<1x128xf32>
    %262 = tpu.matmul %261, %3, %cst_143 {dimension_numbers = #tpu.dot_dimension_numbers<[1], [0], [0], [1], [0, 0, 1, 1], [], []>} : vector<1x128xbf16>, vector<128x128xbf16>, vector<1x128xf32> -> vector<1x128xf32>
    %263 = arith.addf %260, %262 : vector<1x128xf32>
    %cst_144 = arith.constant 0.737429261 : f32
    %264 = vector.broadcast %cst_144 : f32 to vector<1x128xf32>
    %265 = arith.mulf %264, %245 : vector<1x128xf32>
    %266 = arith.addf %265, %263 : vector<1x128xf32>
    %cst_145 = arith.constant 0.858736991 : f32
    %267 = vector.broadcast %cst_145 : f32 to vector<1x128xf32>
    %268 = arith.mulf %267, %253 : vector<1x128xf32>
    %cst_146 = arith.constant 1.412630e-01 : f32
    %269 = vector.broadcast %cst_146 : f32 to vector<1x128xf32>
    %270 = arith.mulf %269, %245 : vector<1x128xf32>
    %271 = arith.addf %268, %270 : vector<1x128xf32>
    %cst_147 = arith.constant 1.000000e+00 : f32
    %272 = vector.broadcast %cst_147 : f32 to vector<1x128xf32>
    %273 = arith.subf %272, %257 : vector<1x128xf32>
    %274 = arith.mulf %271, %273 : vector<1x128xf32>
    %cst_148 = arith.constant 1.000000e+00 : f32
    %275 = vector.broadcast %cst_148 : f32 to vector<1x128xf32>
    %276 = arith.cmpf ogt, %274, %275 : vector<1x128xf32>
    %277 = arith.extui %276 : vector<1x128xi1> to vector<1x128xi32>
    %278 = arith.sitofp %277 : vector<1x128xi32> to vector<1x128xf32>
    %c12_149 = arith.constant 12 : index
    %c0_150 = arith.constant 0 : index
    %279 = vector.load %arg6[%c12_149, %c0_150] : memref<32x128xf32, #tpu.memory_space<vmem>>, vector<1x128xf32>
    tpu.vector_store %arg6[%c12_149, %c0_150], %278 {strides = array<i32>} : memref<32x128xf32, #tpu.memory_space<vmem>>, vector<1x128xf32>,
    %c13 = arith.constant 13 : index
    %c0_151 = arith.constant 0 : index
    %280 = vector.load %arg13[%c13, %c0_151] : memref<32x128xf32, #tpu.memory_space<vmem>>, vector<1x128xf32>
    tpu.vector_store %arg13[%c13, %c0_151], %278 {strides = array<i32>} : memref<32x128xf32, #tpu.memory_space<vmem>>, vector<1x128xf32>,
    %c13_152 = arith.constant 13 : index
    %c0_153 = arith.constant 0 : index
    %281 = vector.load %arg1[%c13_152, %c0_153] : memref<32x128xf32, #tpu.memory_space<vmem>>, vector<1x128xf32>
    %282 = arith.truncf %278 : vector<1x128xf32> to vector<1x128xbf16>
    %cst_154 = arith.constant dense<0.000000e+00> : vector<1x128xf32>
    %283 = tpu.matmul %282, %3, %cst_154 {dimension_numbers = #tpu.dot_dimension_numbers<[1], [0], [0], [1], [0, 0, 1, 1], [], []>} : vector<1x128xbf16>, vector<128x128xbf16>, vector<1x128xf32> -> vector<1x128xf32>
    %284 = arith.addf %281, %283 : vector<1x128xf32>
    %cst_155 = arith.constant 0.737429261 : f32
    %285 = vector.broadcast %cst_155 : f32 to vector<1x128xf32>
    %286 = arith.mulf %285, %266 : vector<1x128xf32>
    %287 = arith.addf %286, %284 : vector<1x128xf32>
    %cst_156 = arith.constant 0.858736991 : f32
    %288 = vector.broadcast %cst_156 : f32 to vector<1x128xf32>
    %289 = arith.mulf %288, %274 : vector<1x128xf32>
    %cst_157 = arith.constant 1.412630e-01 : f32
    %290 = vector.broadcast %cst_157 : f32 to vector<1x128xf32>
    %291 = arith.mulf %290, %266 : vector<1x128xf32>
    %292 = arith.addf %289, %291 : vector<1x128xf32>
    %cst_158 = arith.constant 1.000000e+00 : f32
    %293 = vector.broadcast %cst_158 : f32 to vector<1x128xf32>
    %294 = arith.subf %293, %278 : vector<1x128xf32>
    %295 = arith.mulf %292, %294 : vector<1x128xf32>
    %cst_159 = arith.constant 1.000000e+00 : f32
    %296 = vector.broadcast %cst_159 : f32 to vector<1x128xf32>
    %297 = arith.cmpf ogt, %295, %296 : vector<1x128xf32>
    %298 = arith.extui %297 : vector<1x128xi1> to vector<1x128xi32>
    %299 = arith.sitofp %298 : vector<1x128xi32> to vector<1x128xf32>
    %c13_160 = arith.constant 13 : index
    %c0_161 = arith.constant 0 : index
    %300 = vector.load %arg6[%c13_160, %c0_161] : memref<32x128xf32, #tpu.memory_space<vmem>>, vector<1x128xf32>
    tpu.vector_store %arg6[%c13_160, %c0_161], %299 {strides = array<i32>} : memref<32x128xf32, #tpu.memory_space<vmem>>, vector<1x128xf32>,
    %c14 = arith.constant 14 : index
    %c0_162 = arith.constant 0 : index
    %301 = vector.load %arg13[%c14, %c0_162] : memref<32x128xf32, #tpu.memory_space<vmem>>, vector<1x128xf32>
    tpu.vector_store %arg13[%c14, %c0_162], %299 {strides = array<i32>} : memref<32x128xf32, #tpu.memory_space<vmem>>, vector<1x128xf32>,
    %c14_163 = arith.constant 14 : index
    %c0_164 = arith.constant 0 : index
    %302 = vector.load %arg1[%c14_163, %c0_164] : memref<32x128xf32, #tpu.memory_space<vmem>>, vector<1x128xf32>
    %303 = arith.truncf %299 : vector<1x128xf32> to vector<1x128xbf16>
    %cst_165 = arith.constant dense<0.000000e+00> : vector<1x128xf32>
    %304 = tpu.matmul %303, %3, %cst_165 {dimension_numbers = #tpu.dot_dimension_numbers<[1], [0], [0], [1], [0, 0, 1, 1], [], []>} : vector<1x128xbf16>, vector<128x128xbf16>, vector<1x128xf32> -> vector<1x128xf32>
    %305 = arith.addf %302, %304 : vector<1x128xf32>
    %cst_166 = arith.constant 0.737429261 : f32
    %306 = vector.broadcast %cst_166 : f32 to vector<1x128xf32>
    %307 = arith.mulf %306, %287 : vector<1x128xf32>
    %308 = arith.addf %307, %305 : vector<1x128xf32>
    %cst_167 = arith.constant 0.858736991 : f32
    %309 = vector.broadcast %cst_167 : f32 to vector<1x128xf32>
    %310 = arith.mulf %309, %295 : vector<1x128xf32>
    %cst_168 = arith.constant 1.412630e-01 : f32
    %311 = vector.broadcast %cst_168 : f32 to vector<1x128xf32>
    %312 = arith.mulf %311, %287 : vector<1x128xf32>
    %313 = arith.addf %310, %312 : vector<1x128xf32>
    %cst_169 = arith.constant 1.000000e+00 : f32
    %314 = vector.broadcast %cst_169 : f32 to vector<1x128xf32>
    %315 = arith.subf %314, %299 : vector<1x128xf32>
    %316 = arith.mulf %313, %315 : vector<1x128xf32>
    %cst_170 = arith.constant 1.000000e+00 : f32
    %317 = vector.broadcast %cst_170 : f32 to vector<1x128xf32>
    %318 = arith.cmpf ogt, %316, %317 : vector<1x128xf32>
    %319 = arith.extui %318 : vector<1x128xi1> to vector<1x128xi32>
    %320 = arith.sitofp %319 : vector<1x128xi32> to vector<1x128xf32>
    %c14_171 = arith.constant 14 : index
    %c0_172 = arith.constant 0 : index
    %321 = vector.load %arg6[%c14_171, %c0_172] : memref<32x128xf32, #tpu.memory_space<vmem>>, vector<1x128xf32>
    tpu.vector_store %arg6[%c14_171, %c0_172], %320 {strides = array<i32>} : memref<32x128xf32, #tpu.memory_space<vmem>>, vector<1x128xf32>,
    %c15 = arith.constant 15 : index
    %c0_173 = arith.constant 0 : index
    %322 = vector.load %arg13[%c15, %c0_173] : memref<32x128xf32, #tpu.memory_space<vmem>>, vector<1x128xf32>
    tpu.vector_store %arg13[%c15, %c0_173], %320 {strides = array<i32>} : memref<32x128xf32, #tpu.memory_space<vmem>>, vector<1x128xf32>,
    %c15_174 = arith.constant 15 : index
    %c0_175 = arith.constant 0 : index
    %323 = vector.load %arg1[%c15_174, %c0_175] : memref<32x128xf32, #tpu.memory_space<vmem>>, vector<1x128xf32>
    %324 = arith.truncf %320 : vector<1x128xf32> to vector<1x128xbf16>
    %cst_176 = arith.constant dense<0.000000e+00> : vector<1x128xf32>
    %325 = tpu.matmul %324, %3, %cst_176 {dimension_numbers = #tpu.dot_dimension_numbers<[1], [0], [0], [1], [0, 0, 1, 1], [], []>} : vector<1x128xbf16>, vector<128x128xbf16>, vector<1x128xf32> -> vector<1x128xf32>
    %326 = arith.addf %323, %325 : vector<1x128xf32>
    %cst_177 = arith.constant 0.737429261 : f32
    %327 = vector.broadcast %cst_177 : f32 to vector<1x128xf32>
    %328 = arith.mulf %327, %308 : vector<1x128xf32>
    %329 = arith.addf %328, %326 : vector<1x128xf32>
    %cst_178 = arith.constant 0.858736991 : f32
    %330 = vector.broadcast %cst_178 : f32 to vector<1x128xf32>
    %331 = arith.mulf %330, %316 : vector<1x128xf32>
    %cst_179 = arith.constant 1.412630e-01 : f32
    %332 = vector.broadcast %cst_179 : f32 to vector<1x128xf32>
    %333 = arith.mulf %332, %308 : vector<1x128xf32>
    %334 = arith.addf %331, %333 : vector<1x128xf32>
    %cst_180 = arith.constant 1.000000e+00 : f32
    %335 = vector.broadcast %cst_180 : f32 to vector<1x128xf32>
    %336 = arith.subf %335, %320 : vector<1x128xf32>
    %337 = arith.mulf %334, %336 : vector<1x128xf32>
    %cst_181 = arith.constant 1.000000e+00 : f32
    %338 = vector.broadcast %cst_181 : f32 to vector<1x128xf32>
    %339 = arith.cmpf ogt, %337, %338 : vector<1x128xf32>
    %340 = arith.extui %339 : vector<1x128xi1> to vector<1x128xi32>
    %341 = arith.sitofp %340 : vector<1x128xi32> to vector<1x128xf32>
    %c15_182 = arith.constant 15 : index
    %c0_183 = arith.constant 0 : index
    %342 = vector.load %arg6[%c15_182, %c0_183] : memref<32x128xf32, #tpu.memory_space<vmem>>, vector<1x128xf32>
    tpu.vector_store %arg6[%c15_182, %c0_183], %341 {strides = array<i32>} : memref<32x128xf32, #tpu.memory_space<vmem>>, vector<1x128xf32>,
    %c16 = arith.constant 16 : index
    %c0_184 = arith.constant 0 : index
    %343 = vector.load %arg13[%c16, %c0_184] : memref<32x128xf32, #tpu.memory_space<vmem>>, vector<1x128xf32>
    tpu.vector_store %arg13[%c16, %c0_184], %341 {strides = array<i32>} : memref<32x128xf32, #tpu.memory_space<vmem>>, vector<1x128xf32>,
    %c16_185 = arith.constant 16 : index
    %c0_186 = arith.constant 0 : index
    %344 = vector.load %arg1[%c16_185, %c0_186] : memref<32x128xf32, #tpu.memory_space<vmem>>, vector<1x128xf32>
    %345 = arith.truncf %341 : vector<1x128xf32> to vector<1x128xbf16>
    %cst_187 = arith.constant dense<0.000000e+00> : vector<1x128xf32>
    %346 = tpu.matmul %345, %3, %cst_187 {dimension_numbers = #tpu.dot_dimension_numbers<[1], [0], [0], [1], [0, 0, 1, 1], [], []>} : vector<1x128xbf16>, vector<128x128xbf16>, vector<1x128xf32> -> vector<1x128xf32>
    %347 = arith.addf %344, %346 : vector<1x128xf32>
    %cst_188 = arith.constant 0.737429261 : f32
    %348 = vector.broadcast %cst_188 : f32 to vector<1x128xf32>
    %349 = arith.mulf %348, %329 : vector<1x128xf32>
    %350 = arith.addf %349, %347 : vector<1x128xf32>
    %cst_189 = arith.constant 0.858736991 : f32
    %351 = vector.broadcast %cst_189 : f32 to vector<1x128xf32>
    %352 = arith.mulf %351, %337 : vector<1x128xf32>
    %cst_190 = arith.constant 1.412630e-01 : f32
    %353 = vector.broadcast %cst_190 : f32 to vector<1x128xf32>
    %354 = arith.mulf %353, %329 : vector<1x128xf32>
    %355 = arith.addf %352, %354 : vector<1x128xf32>
    %cst_191 = arith.constant 1.000000e+00 : f32
    %356 = vector.broadcast %cst_191 : f32 to vector<1x128xf32>
    %357 = arith.subf %356, %341 : vector<1x128xf32>
    %358 = arith.mulf %355, %357 : vector<1x128xf32>
    %cst_192 = arith.constant 1.000000e+00 : f32
    %359 = vector.broadcast %cst_192 : f32 to vector<1x128xf32>
    %360 = arith.cmpf ogt, %358, %359 : vector<1x128xf32>
    %361 = arith.extui %360 : vector<1x128xi1> to vector<1x128xi32>
    %362 = arith.sitofp %361 : vector<1x128xi32> to vector<1x128xf32>
    %c16_193 = arith.constant 16 : index
    %c0_194 = arith.constant 0 : index
    %363 = vector.load %arg6[%c16_193, %c0_194] : memref<32x128xf32, #tpu.memory_space<vmem>>, vector<1x128xf32>
    tpu.vector_store %arg6[%c16_193, %c0_194], %362 {strides = array<i32>} : memref<32x128xf32, #tpu.memory_space<vmem>>, vector<1x128xf32>,
    %c17 = arith.constant 17 : index
    %c0_195 = arith.constant 0 : index
    %364 = vector.load %arg13[%c17, %c0_195] : memref<32x128xf32, #tpu.memory_space<vmem>>, vector<1x128xf32>
    tpu.vector_store %arg13[%c17, %c0_195], %362 {strides = array<i32>} : memref<32x128xf32, #tpu.memory_space<vmem>>, vector<1x128xf32>,
    %c17_196 = arith.constant 17 : index
    %c0_197 = arith.constant 0 : index
    %365 = vector.load %arg1[%c17_196, %c0_197] : memref<32x128xf32, #tpu.memory_space<vmem>>, vector<1x128xf32>
    %366 = arith.truncf %362 : vector<1x128xf32> to vector<1x128xbf16>
    %cst_198 = arith.constant dense<0.000000e+00> : vector<1x128xf32>
    %367 = tpu.matmul %366, %3, %cst_198 {dimension_numbers = #tpu.dot_dimension_numbers<[1], [0], [0], [1], [0, 0, 1, 1], [], []>} : vector<1x128xbf16>, vector<128x128xbf16>, vector<1x128xf32> -> vector<1x128xf32>
    %368 = arith.addf %365, %367 : vector<1x128xf32>
    %cst_199 = arith.constant 0.737429261 : f32
    %369 = vector.broadcast %cst_199 : f32 to vector<1x128xf32>
    %370 = arith.mulf %369, %350 : vector<1x128xf32>
    %371 = arith.addf %370, %368 : vector<1x128xf32>
    %cst_200 = arith.constant 0.858736991 : f32
    %372 = vector.broadcast %cst_200 : f32 to vector<1x128xf32>
    %373 = arith.mulf %372, %358 : vector<1x128xf32>
    %cst_201 = arith.constant 1.412630e-01 : f32
    %374 = vector.broadcast %cst_201 : f32 to vector<1x128xf32>
    %375 = arith.mulf %374, %350 : vector<1x128xf32>
    %376 = arith.addf %373, %375 : vector<1x128xf32>
    %cst_202 = arith.constant 1.000000e+00 : f32
    %377 = vector.broadcast %cst_202 : f32 to vector<1x128xf32>
    %378 = arith.subf %377, %362 : vector<1x128xf32>
    %379 = arith.mulf %376, %378 : vector<1x128xf32>
    %cst_203 = arith.constant 1.000000e+00 : f32
    %380 = vector.broadcast %cst_203 : f32 to vector<1x128xf32>
    %381 = arith.cmpf ogt, %379, %380 : vector<1x128xf32>
    %382 = arith.extui %381 : vector<1x128xi1> to vector<1x128xi32>
    %383 = arith.sitofp %382 : vector<1x128xi32> to vector<1x128xf32>
    %c17_204 = arith.constant 17 : index
    %c0_205 = arith.constant 0 : index
    %384 = vector.load %arg6[%c17_204, %c0_205] : memref<32x128xf32, #tpu.memory_space<vmem>>, vector<1x128xf32>
    tpu.vector_store %arg6[%c17_204, %c0_205], %383 {strides = array<i32>} : memref<32x128xf32, #tpu.memory_space<vmem>>, vector<1x128xf32>,
    %c18 = arith.constant 18 : index
    %c0_206 = arith.constant 0 : index
    %385 = vector.load %arg13[%c18, %c0_206] : memref<32x128xf32, #tpu.memory_space<vmem>>, vector<1x128xf32>
    tpu.vector_store %arg13[%c18, %c0_206], %383 {strides = array<i32>} : memref<32x128xf32, #tpu.memory_space<vmem>>, vector<1x128xf32>,
    %c18_207 = arith.constant 18 : index
    %c0_208 = arith.constant 0 : index
    %386 = vector.load %arg1[%c18_207, %c0_208] : memref<32x128xf32, #tpu.memory_space<vmem>>, vector<1x128xf32>
    %387 = arith.truncf %383 : vector<1x128xf32> to vector<1x128xbf16>
    %cst_209 = arith.constant dense<0.000000e+00> : vector<1x128xf32>
    %388 = tpu.matmul %387, %3, %cst_209 {dimension_numbers = #tpu.dot_dimension_numbers<[1], [0], [0], [1], [0, 0, 1, 1], [], []>} : vector<1x128xbf16>, vector<128x128xbf16>, vector<1x128xf32> -> vector<1x128xf32>
    %389 = arith.addf %386, %388 : vector<1x128xf32>
    %cst_210 = arith.constant 0.737429261 : f32
    %390 = vector.broadcast %cst_210 : f32 to vector<1x128xf32>
    %391 = arith.mulf %390, %371 : vector<1x128xf32>
    %392 = arith.addf %391, %389 : vector<1x128xf32>
    %cst_211 = arith.constant 0.858736991 : f32
    %393 = vector.broadcast %cst_211 : f32 to vector<1x128xf32>
    %394 = arith.mulf %393, %379 : vector<1x128xf32>
    %cst_212 = arith.constant 1.412630e-01 : f32
    %395 = vector.broadcast %cst_212 : f32 to vector<1x128xf32>
    %396 = arith.mulf %395, %371 : vector<1x128xf32>
    %397 = arith.addf %394, %396 : vector<1x128xf32>
    %cst_213 = arith.constant 1.000000e+00 : f32
    %398 = vector.broadcast %cst_213 : f32 to vector<1x128xf32>
    %399 = arith.subf %398, %383 : vector<1x128xf32>
    %400 = arith.mulf %397, %399 : vector<1x128xf32>
    %cst_214 = arith.constant 1.000000e+00 : f32
    %401 = vector.broadcast %cst_214 : f32 to vector<1x128xf32>
    %402 = arith.cmpf ogt, %400, %401 : vector<1x128xf32>
    %403 = arith.extui %402 : vector<1x128xi1> to vector<1x128xi32>
    %404 = arith.sitofp %403 : vector<1x128xi32> to vector<1x128xf32>
    %c18_215 = arith.constant 18 : index
    %c0_216 = arith.constant 0 : index
    %405 = vector.load %arg6[%c18_215, %c0_216] : memref<32x128xf32, #tpu.memory_space<vmem>>, vector<1x128xf32>
    tpu.vector_store %arg6[%c18_215, %c0_216], %404 {strides = array<i32>} : memref<32x128xf32, #tpu.memory_space<vmem>>, vector<1x128xf32>,
    %c19 = arith.constant 19 : index
    %c0_217 = arith.constant 0 : index
    %406 = vector.load %arg13[%c19, %c0_217] : memref<32x128xf32, #tpu.memory_space<vmem>>, vector<1x128xf32>
    tpu.vector_store %arg13[%c19, %c0_217], %404 {strides = array<i32>} : memref<32x128xf32, #tpu.memory_space<vmem>>, vector<1x128xf32>,
    %c19_218 = arith.constant 19 : index
    %c0_219 = arith.constant 0 : index
    %407 = vector.load %arg1[%c19_218, %c0_219] : memref<32x128xf32, #tpu.memory_space<vmem>>, vector<1x128xf32>
    %408 = arith.truncf %404 : vector<1x128xf32> to vector<1x128xbf16>
    %cst_220 = arith.constant dense<0.000000e+00> : vector<1x128xf32>
    %409 = tpu.matmul %408, %3, %cst_220 {dimension_numbers = #tpu.dot_dimension_numbers<[1], [0], [0], [1], [0, 0, 1, 1], [], []>} : vector<1x128xbf16>, vector<128x128xbf16>, vector<1x128xf32> -> vector<1x128xf32>
    %410 = arith.addf %407, %409 : vector<1x128xf32>
    %cst_221 = arith.constant 0.737429261 : f32
    %411 = vector.broadcast %cst_221 : f32 to vector<1x128xf32>
    %412 = arith.mulf %411, %392 : vector<1x128xf32>
    %413 = arith.addf %412, %410 : vector<1x128xf32>
    %cst_222 = arith.constant 0.858736991 : f32
    %414 = vector.broadcast %cst_222 : f32 to vector<1x128xf32>
    %415 = arith.mulf %414, %400 : vector<1x128xf32>
    %cst_223 = arith.constant 1.412630e-01 : f32
    %416 = vector.broadcast %cst_223 : f32 to vector<1x128xf32>
    %417 = arith.mulf %416, %392 : vector<1x128xf32>
    %418 = arith.addf %415, %417 : vector<1x128xf32>
    %cst_224 = arith.constant 1.000000e+00 : f32
    %419 = vector.broadcast %cst_224 : f32 to vector<1x128xf32>
    %420 = arith.subf %419, %404 : vector<1x128xf32>
    %421 = arith.mulf %418, %420 : vector<1x128xf32>
    %cst_225 = arith.constant 1.000000e+00 : f32
    %422 = vector.broadcast %cst_225 : f32 to vector<1x128xf32>
    %423 = arith.cmpf ogt, %421, %422 : vector<1x128xf32>
    %424 = arith.extui %423 : vector<1x128xi1> to vector<1x128xi32>
    %425 = arith.sitofp %424 : vector<1x128xi32> to vector<1x128xf32>
    %c19_226 = arith.constant 19 : index
    %c0_227 = arith.constant 0 : index
    %426 = vector.load %arg6[%c19_226, %c0_227] : memref<32x128xf32, #tpu.memory_space<vmem>>, vector<1x128xf32>
    tpu.vector_store %arg6[%c19_226, %c0_227], %425 {strides = array<i32>} : memref<32x128xf32, #tpu.memory_space<vmem>>, vector<1x128xf32>,
    %c20 = arith.constant 20 : index
    %c0_228 = arith.constant 0 : index
    %427 = vector.load %arg13[%c20, %c0_228] : memref<32x128xf32, #tpu.memory_space<vmem>>, vector<1x128xf32>
    tpu.vector_store %arg13[%c20, %c0_228], %425 {strides = array<i32>} : memref<32x128xf32, #tpu.memory_space<vmem>>, vector<1x128xf32>,
    %c20_229 = arith.constant 20 : index
    %c0_230 = arith.constant 0 : index
    %428 = vector.load %arg1[%c20_229, %c0_230] : memref<32x128xf32, #tpu.memory_space<vmem>>, vector<1x128xf32>
    %429 = arith.truncf %425 : vector<1x128xf32> to vector<1x128xbf16>
    %cst_231 = arith.constant dense<0.000000e+00> : vector<1x128xf32>
    %430 = tpu.matmul %429, %3, %cst_231 {dimension_numbers = #tpu.dot_dimension_numbers<[1], [0], [0], [1], [0, 0, 1, 1], [], []>} : vector<1x128xbf16>, vector<128x128xbf16>, vector<1x128xf32> -> vector<1x128xf32>
    %431 = arith.addf %428, %430 : vector<1x128xf32>
    %cst_232 = arith.constant 0.737429261 : f32
    %432 = vector.broadcast %cst_232 : f32 to vector<1x128xf32>
    %433 = arith.mulf %432, %413 : vector<1x128xf32>
    %434 = arith.addf %433, %431 : vector<1x128xf32>
    %cst_233 = arith.constant 0.858736991 : f32
    %435 = vector.broadcast %cst_233 : f32 to vector<1x128xf32>
    %436 = arith.mulf %435, %421 : vector<1x128xf32>
    %cst_234 = arith.constant 1.412630e-01 : f32
    %437 = vector.broadcast %cst_234 : f32 to vector<1x128xf32>
    %438 = arith.mulf %437, %413 : vector<1x128xf32>
    %439 = arith.addf %436, %438 : vector<1x128xf32>
    %cst_235 = arith.constant 1.000000e+00 : f32
    %440 = vector.broadcast %cst_235 : f32 to vector<1x128xf32>
    %441 = arith.subf %440, %425 : vector<1x128xf32>
    %442 = arith.mulf %439, %441 : vector<1x128xf32>
    %cst_236 = arith.constant 1.000000e+00 : f32
    %443 = vector.broadcast %cst_236 : f32 to vector<1x128xf32>
    %444 = arith.cmpf ogt, %442, %443 : vector<1x128xf32>
    %445 = arith.extui %444 : vector<1x128xi1> to vector<1x128xi32>
    %446 = arith.sitofp %445 : vector<1x128xi32> to vector<1x128xf32>
    %c20_237 = arith.constant 20 : index
    %c0_238 = arith.constant 0 : index
    %447 = vector.load %arg6[%c20_237, %c0_238] : memref<32x128xf32, #tpu.memory_space<vmem>>, vector<1x128xf32>
    tpu.vector_store %arg6[%c20_237, %c0_238], %446 {strides = array<i32>} : memref<32x128xf32, #tpu.memory_space<vmem>>, vector<1x128xf32>,
    %c21 = arith.constant 21 : index
    %c0_239 = arith.constant 0 : index
    %448 = vector.load %arg13[%c21, %c0_239] : memref<32x128xf32, #tpu.memory_space<vmem>>, vector<1x128xf32>
    tpu.vector_store %arg13[%c21, %c0_239], %446 {strides = array<i32>} : memref<32x128xf32, #tpu.memory_space<vmem>>, vector<1x128xf32>,
    %c21_240 = arith.constant 21 : index
    %c0_241 = arith.constant 0 : index
    %449 = vector.load %arg1[%c21_240, %c0_241] : memref<32x128xf32, #tpu.memory_space<vmem>>, vector<1x128xf32>
    %450 = arith.truncf %446 : vector<1x128xf32> to vector<1x128xbf16>
    %cst_242 = arith.constant dense<0.000000e+00> : vector<1x128xf32>
    %451 = tpu.matmul %450, %3, %cst_242 {dimension_numbers = #tpu.dot_dimension_numbers<[1], [0], [0], [1], [0, 0, 1, 1], [], []>} : vector<1x128xbf16>, vector<128x128xbf16>, vector<1x128xf32> -> vector<1x128xf32>
    %452 = arith.addf %449, %451 : vector<1x128xf32>
    %cst_243 = arith.constant 0.737429261 : f32
    %453 = vector.broadcast %cst_243 : f32 to vector<1x128xf32>
    %454 = arith.mulf %453, %434 : vector<1x128xf32>
    %455 = arith.addf %454, %452 : vector<1x128xf32>
    %cst_244 = arith.constant 0.858736991 : f32
    %456 = vector.broadcast %cst_244 : f32 to vector<1x128xf32>
    %457 = arith.mulf %456, %442 : vector<1x128xf32>
    %cst_245 = arith.constant 1.412630e-01 : f32
    %458 = vector.broadcast %cst_245 : f32 to vector<1x128xf32>
    %459 = arith.mulf %458, %434 : vector<1x128xf32>
    %460 = arith.addf %457, %459 : vector<1x128xf32>
    %cst_246 = arith.constant 1.000000e+00 : f32
    %461 = vector.broadcast %cst_246 : f32 to vector<1x128xf32>
    %462 = arith.subf %461, %446 : vector<1x128xf32>
    %463 = arith.mulf %460, %462 : vector<1x128xf32>
    %cst_247 = arith.constant 1.000000e+00 : f32
    %464 = vector.broadcast %cst_247 : f32 to vector<1x128xf32>
    %465 = arith.cmpf ogt, %463, %464 : vector<1x128xf32>
    %466 = arith.extui %465 : vector<1x128xi1> to vector<1x128xi32>
    %467 = arith.sitofp %466 : vector<1x128xi32> to vector<1x128xf32>
    %c21_248 = arith.constant 21 : index
    %c0_249 = arith.constant 0 : index
    %468 = vector.load %arg6[%c21_248, %c0_249] : memref<32x128xf32, #tpu.memory_space<vmem>>, vector<1x128xf32>
    tpu.vector_store %arg6[%c21_248, %c0_249], %467 {strides = array<i32>} : memref<32x128xf32, #tpu.memory_space<vmem>>, vector<1x128xf32>,
    %c22 = arith.constant 22 : index
    %c0_250 = arith.constant 0 : index
    %469 = vector.load %arg13[%c22, %c0_250] : memref<32x128xf32, #tpu.memory_space<vmem>>, vector<1x128xf32>
    tpu.vector_store %arg13[%c22, %c0_250], %467 {strides = array<i32>} : memref<32x128xf32, #tpu.memory_space<vmem>>, vector<1x128xf32>,
    %c22_251 = arith.constant 22 : index
    %c0_252 = arith.constant 0 : index
    %470 = vector.load %arg1[%c22_251, %c0_252] : memref<32x128xf32, #tpu.memory_space<vmem>>, vector<1x128xf32>
    %471 = arith.truncf %467 : vector<1x128xf32> to vector<1x128xbf16>
    %cst_253 = arith.constant dense<0.000000e+00> : vector<1x128xf32>
    %472 = tpu.matmul %471, %3, %cst_253 {dimension_numbers = #tpu.dot_dimension_numbers<[1], [0], [0], [1], [0, 0, 1, 1], [], []>} : vector<1x128xbf16>, vector<128x128xbf16>, vector<1x128xf32> -> vector<1x128xf32>
    %473 = arith.addf %470, %472 : vector<1x128xf32>
    %cst_254 = arith.constant 0.737429261 : f32
    %474 = vector.broadcast %cst_254 : f32 to vector<1x128xf32>
    %475 = arith.mulf %474, %455 : vector<1x128xf32>
    %476 = arith.addf %475, %473 : vector<1x128xf32>
    %cst_255 = arith.constant 0.858736991 : f32
    %477 = vector.broadcast %cst_255 : f32 to vector<1x128xf32>
    %478 = arith.mulf %477, %463 : vector<1x128xf32>
    %cst_256 = arith.constant 1.412630e-01 : f32
    %479 = vector.broadcast %cst_256 : f32 to vector<1x128xf32>
    %480 = arith.mulf %479, %455 : vector<1x128xf32>
    %481 = arith.addf %478, %480 : vector<1x128xf32>
    %cst_257 = arith.constant 1.000000e+00 : f32
    %482 = vector.broadcast %cst_257 : f32 to vector<1x128xf32>
    %483 = arith.subf %482, %467 : vector<1x128xf32>
    %484 = arith.mulf %481, %483 : vector<1x128xf32>
    %cst_258 = arith.constant 1.000000e+00 : f32
    %485 = vector.broadcast %cst_258 : f32 to vector<1x128xf32>
    %486 = arith.cmpf ogt, %484, %485 : vector<1x128xf32>
    %487 = arith.extui %486 : vector<1x128xi1> to vector<1x128xi32>
    %488 = arith.sitofp %487 : vector<1x128xi32> to vector<1x128xf32>
    %c22_259 = arith.constant 22 : index
    %c0_260 = arith.constant 0 : index
    %489 = vector.load %arg6[%c22_259, %c0_260] : memref<32x128xf32, #tpu.memory_space<vmem>>, vector<1x128xf32>
    tpu.vector_store %arg6[%c22_259, %c0_260], %488 {strides = array<i32>} : memref<32x128xf32, #tpu.memory_space<vmem>>, vector<1x128xf32>,
    %c23 = arith.constant 23 : index
    %c0_261 = arith.constant 0 : index
    %490 = vector.load %arg13[%c23, %c0_261] : memref<32x128xf32, #tpu.memory_space<vmem>>, vector<1x128xf32>
    tpu.vector_store %arg13[%c23, %c0_261], %488 {strides = array<i32>} : memref<32x128xf32, #tpu.memory_space<vmem>>, vector<1x128xf32>,
    %c23_262 = arith.constant 23 : index
    %c0_263 = arith.constant 0 : index
    %491 = vector.load %arg1[%c23_262, %c0_263] : memref<32x128xf32, #tpu.memory_space<vmem>>, vector<1x128xf32>
    %492 = arith.truncf %488 : vector<1x128xf32> to vector<1x128xbf16>
    %cst_264 = arith.constant dense<0.000000e+00> : vector<1x128xf32>
    %493 = tpu.matmul %492, %3, %cst_264 {dimension_numbers = #tpu.dot_dimension_numbers<[1], [0], [0], [1], [0, 0, 1, 1], [], []>} : vector<1x128xbf16>, vector<128x128xbf16>, vector<1x128xf32> -> vector<1x128xf32>
    %494 = arith.addf %491, %493 : vector<1x128xf32>
    %cst_265 = arith.constant 0.737429261 : f32
    %495 = vector.broadcast %cst_265 : f32 to vector<1x128xf32>
    %496 = arith.mulf %495, %476 : vector<1x128xf32>
    %497 = arith.addf %496, %494 : vector<1x128xf32>
    %cst_266 = arith.constant 0.858736991 : f32
    %498 = vector.broadcast %cst_266 : f32 to vector<1x128xf32>
    %499 = arith.mulf %498, %484 : vector<1x128xf32>
    %cst_267 = arith.constant 1.412630e-01 : f32
    %500 = vector.broadcast %cst_267 : f32 to vector<1x128xf32>
    %501 = arith.mulf %500, %476 : vector<1x128xf32>
    %502 = arith.addf %499, %501 : vector<1x128xf32>
    %cst_268 = arith.constant 1.000000e+00 : f32
    %503 = vector.broadcast %cst_268 : f32 to vector<1x128xf32>
    %504 = arith.subf %503, %488 : vector<1x128xf32>
    %505 = arith.mulf %502, %504 : vector<1x128xf32>
    %cst_269 = arith.constant 1.000000e+00 : f32
    %506 = vector.broadcast %cst_269 : f32 to vector<1x128xf32>
    %507 = arith.cmpf ogt, %505, %506 : vector<1x128xf32>
    %508 = arith.extui %507 : vector<1x128xi1> to vector<1x128xi32>
    %509 = arith.sitofp %508 : vector<1x128xi32> to vector<1x128xf32>
    %c23_270 = arith.constant 23 : index
    %c0_271 = arith.constant 0 : index
    %510 = vector.load %arg6[%c23_270, %c0_271] : memref<32x128xf32, #tpu.memory_space<vmem>>, vector<1x128xf32>
    tpu.vector_store %arg6[%c23_270, %c0_271], %509 {strides = array<i32>} : memref<32x128xf32, #tpu.memory_space<vmem>>, vector<1x128xf32>,
    %c24 = arith.constant 24 : index
    %c0_272 = arith.constant 0 : index
    %511 = vector.load %arg13[%c24, %c0_272] : memref<32x128xf32, #tpu.memory_space<vmem>>, vector<1x128xf32>
    tpu.vector_store %arg13[%c24, %c0_272], %509 {strides = array<i32>} : memref<32x128xf32, #tpu.memory_space<vmem>>, vector<1x128xf32>,
    %c24_273 = arith.constant 24 : index
    %c0_274 = arith.constant 0 : index
    %512 = vector.load %arg1[%c24_273, %c0_274] : memref<32x128xf32, #tpu.memory_space<vmem>>, vector<1x128xf32>
    %513 = arith.truncf %509 : vector<1x128xf32> to vector<1x128xbf16>
    %cst_275 = arith.constant dense<0.000000e+00> : vector<1x128xf32>
    %514 = tpu.matmul %513, %3, %cst_275 {dimension_numbers = #tpu.dot_dimension_numbers<[1], [0], [0], [1], [0, 0, 1, 1], [], []>} : vector<1x128xbf16>, vector<128x128xbf16>, vector<1x128xf32> -> vector<1x128xf32>
    %515 = arith.addf %512, %514 : vector<1x128xf32>
    %cst_276 = arith.constant 0.737429261 : f32
    %516 = vector.broadcast %cst_276 : f32 to vector<1x128xf32>
    %517 = arith.mulf %516, %497 : vector<1x128xf32>
    %518 = arith.addf %517, %515 : vector<1x128xf32>
    %cst_277 = arith.constant 0.858736991 : f32
    %519 = vector.broadcast %cst_277 : f32 to vector<1x128xf32>
    %520 = arith.mulf %519, %505 : vector<1x128xf32>
    %cst_278 = arith.constant 1.412630e-01 : f32
    %521 = vector.broadcast %cst_278 : f32 to vector<1x128xf32>
    %522 = arith.mulf %521, %497 : vector<1x128xf32>
    %523 = arith.addf %520, %522 : vector<1x128xf32>
    %cst_279 = arith.constant 1.000000e+00 : f32
    %524 = vector.broadcast %cst_279 : f32 to vector<1x128xf32>
    %525 = arith.subf %524, %509 : vector<1x128xf32>
    %526 = arith.mulf %523, %525 : vector<1x128xf32>
    %cst_280 = arith.constant 1.000000e+00 : f32
    %527 = vector.broadcast %cst_280 : f32 to vector<1x128xf32>
    %528 = arith.cmpf ogt, %526, %527 : vector<1x128xf32>
    %529 = arith.extui %528 : vector<1x128xi1> to vector<1x128xi32>
    %530 = arith.sitofp %529 : vector<1x128xi32> to vector<1x128xf32>
    %c24_281 = arith.constant 24 : index
    %c0_282 = arith.constant 0 : index
    %531 = vector.load %arg6[%c24_281, %c0_282] : memref<32x128xf32, #tpu.memory_space<vmem>>, vector<1x128xf32>
    tpu.vector_store %arg6[%c24_281, %c0_282], %530 {strides = array<i32>} : memref<32x128xf32, #tpu.memory_space<vmem>>, vector<1x128xf32>,
    %c25 = arith.constant 25 : index
    %c0_283 = arith.constant 0 : index
    %532 = vector.load %arg13[%c25, %c0_283] : memref<32x128xf32, #tpu.memory_space<vmem>>, vector<1x128xf32>
    tpu.vector_store %arg13[%c25, %c0_283], %530 {strides = array<i32>} : memref<32x128xf32, #tpu.memory_space<vmem>>, vector<1x128xf32>,
    %c25_284 = arith.constant 25 : index
    %c0_285 = arith.constant 0 : index
    %533 = vector.load %arg1[%c25_284, %c0_285] : memref<32x128xf32, #tpu.memory_space<vmem>>, vector<1x128xf32>
    %534 = arith.truncf %530 : vector<1x128xf32> to vector<1x128xbf16>
    %cst_286 = arith.constant dense<0.000000e+00> : vector<1x128xf32>
    %535 = tpu.matmul %534, %3, %cst_286 {dimension_numbers = #tpu.dot_dimension_numbers<[1], [0], [0], [1], [0, 0, 1, 1], [], []>} : vector<1x128xbf16>, vector<128x128xbf16>, vector<1x128xf32> -> vector<1x128xf32>
    %536 = arith.addf %533, %535 : vector<1x128xf32>
    %cst_287 = arith.constant 0.737429261 : f32
    %537 = vector.broadcast %cst_287 : f32 to vector<1x128xf32>
    %538 = arith.mulf %537, %518 : vector<1x128xf32>
    %539 = arith.addf %538, %536 : vector<1x128xf32>
    %cst_288 = arith.constant 0.858736991 : f32
    %540 = vector.broadcast %cst_288 : f32 to vector<1x128xf32>
    %541 = arith.mulf %540, %526 : vector<1x128xf32>
    %cst_289 = arith.constant 1.412630e-01 : f32
    %542 = vector.broadcast %cst_289 : f32 to vector<1x128xf32>
    %543 = arith.mulf %542, %518 : vector<1x128xf32>
    %544 = arith.addf %541, %543 : vector<1x128xf32>
    %cst_290 = arith.constant 1.000000e+00 : f32
    %545 = vector.broadcast %cst_290 : f32 to vector<1x128xf32>
    %546 = arith.subf %545, %530 : vector<1x128xf32>
    %547 = arith.mulf %544, %546 : vector<1x128xf32>
    %cst_291 = arith.constant 1.000000e+00 : f32
    %548 = vector.broadcast %cst_291 : f32 to vector<1x128xf32>
    %549 = arith.cmpf ogt, %547, %548 : vector<1x128xf32>
    %550 = arith.extui %549 : vector<1x128xi1> to vector<1x128xi32>
    %551 = arith.sitofp %550 : vector<1x128xi32> to vector<1x128xf32>
    %c25_292 = arith.constant 25 : index
    %c0_293 = arith.constant 0 : index
    %552 = vector.load %arg6[%c25_292, %c0_293] : memref<32x128xf32, #tpu.memory_space<vmem>>, vector<1x128xf32>
    tpu.vector_store %arg6[%c25_292, %c0_293], %551 {strides = array<i32>} : memref<32x128xf32, #tpu.memory_space<vmem>>, vector<1x128xf32>,
    %c26 = arith.constant 26 : index
    %c0_294 = arith.constant 0 : index
    %553 = vector.load %arg13[%c26, %c0_294] : memref<32x128xf32, #tpu.memory_space<vmem>>, vector<1x128xf32>
    tpu.vector_store %arg13[%c26, %c0_294], %551 {strides = array<i32>} : memref<32x128xf32, #tpu.memory_space<vmem>>, vector<1x128xf32>,
    %c26_295 = arith.constant 26 : index
    %c0_296 = arith.constant 0 : index
    %554 = vector.load %arg1[%c26_295, %c0_296] : memref<32x128xf32, #tpu.memory_space<vmem>>, vector<1x128xf32>
    %555 = arith.truncf %551 : vector<1x128xf32> to vector<1x128xbf16>
    %cst_297 = arith.constant dense<0.000000e+00> : vector<1x128xf32>
    %556 = tpu.matmul %555, %3, %cst_297 {dimension_numbers = #tpu.dot_dimension_numbers<[1], [0], [0], [1], [0, 0, 1, 1], [], []>} : vector<1x128xbf16>, vector<128x128xbf16>, vector<1x128xf32> -> vector<1x128xf32>
    %557 = arith.addf %554, %556 : vector<1x128xf32>
    %cst_298 = arith.constant 0.737429261 : f32
    %558 = vector.broadcast %cst_298 : f32 to vector<1x128xf32>
    %559 = arith.mulf %558, %539 : vector<1x128xf32>
    %560 = arith.addf %559, %557 : vector<1x128xf32>
    %cst_299 = arith.constant 0.858736991 : f32
    %561 = vector.broadcast %cst_299 : f32 to vector<1x128xf32>
    %562 = arith.mulf %561, %547 : vector<1x128xf32>
    %cst_300 = arith.constant 1.412630e-01 : f32
    %563 = vector.broadcast %cst_300 : f32 to vector<1x128xf32>
    %564 = arith.mulf %563, %539 : vector<1x128xf32>
    %565 = arith.addf %562, %564 : vector<1x128xf32>
    %cst_301 = arith.constant 1.000000e+00 : f32
    %566 = vector.broadcast %cst_301 : f32 to vector<1x128xf32>
    %567 = arith.subf %566, %551 : vector<1x128xf32>
    %568 = arith.mulf %565, %567 : vector<1x128xf32>
    %cst_302 = arith.constant 1.000000e+00 : f32
    %569 = vector.broadcast %cst_302 : f32 to vector<1x128xf32>
    %570 = arith.cmpf ogt, %568, %569 : vector<1x128xf32>
    %571 = arith.extui %570 : vector<1x128xi1> to vector<1x128xi32>
    %572 = arith.sitofp %571 : vector<1x128xi32> to vector<1x128xf32>
    %c26_303 = arith.constant 26 : index
    %c0_304 = arith.constant 0 : index
    %573 = vector.load %arg6[%c26_303, %c0_304] : memref<32x128xf32, #tpu.memory_space<vmem>>, vector<1x128xf32>
    tpu.vector_store %arg6[%c26_303, %c0_304], %572 {strides = array<i32>} : memref<32x128xf32, #tpu.memory_space<vmem>>, vector<1x128xf32>,
    %c27 = arith.constant 27 : index
    %c0_305 = arith.constant 0 : index
    %574 = vector.load %arg13[%c27, %c0_305] : memref<32x128xf32, #tpu.memory_space<vmem>>, vector<1x128xf32>
    tpu.vector_store %arg13[%c27, %c0_305], %572 {strides = array<i32>} : memref<32x128xf32, #tpu.memory_space<vmem>>, vector<1x128xf32>,
    %c27_306 = arith.constant 27 : index
    %c0_307 = arith.constant 0 : index
    %575 = vector.load %arg1[%c27_306, %c0_307] : memref<32x128xf32, #tpu.memory_space<vmem>>, vector<1x128xf32>
    %576 = arith.truncf %572 : vector<1x128xf32> to vector<1x128xbf16>
    %cst_308 = arith.constant dense<0.000000e+00> : vector<1x128xf32>
    %577 = tpu.matmul %576, %3, %cst_308 {dimension_numbers = #tpu.dot_dimension_numbers<[1], [0], [0], [1], [0, 0, 1, 1], [], []>} : vector<1x128xbf16>, vector<128x128xbf16>, vector<1x128xf32> -> vector<1x128xf32>
    %578 = arith.addf %575, %577 : vector<1x128xf32>
    %cst_309 = arith.constant 0.737429261 : f32
    %579 = vector.broadcast %cst_309 : f32 to vector<1x128xf32>
    %580 = arith.mulf %579, %560 : vector<1x128xf32>
    %581 = arith.addf %580, %578 : vector<1x128xf32>
    %cst_310 = arith.constant 0.858736991 : f32
    %582 = vector.broadcast %cst_310 : f32 to vector<1x128xf32>
    %583 = arith.mulf %582, %568 : vector<1x128xf32>
    %cst_311 = arith.constant 1.412630e-01 : f32
    %584 = vector.broadcast %cst_311 : f32 to vector<1x128xf32>
    %585 = arith.mulf %584, %560 : vector<1x128xf32>
    %586 = arith.addf %583, %585 : vector<1x128xf32>
    %cst_312 = arith.constant 1.000000e+00 : f32
    %587 = vector.broadcast %cst_312 : f32 to vector<1x128xf32>
    %588 = arith.subf %587, %572 : vector<1x128xf32>
    %589 = arith.mulf %586, %588 : vector<1x128xf32>
    %cst_313 = arith.constant 1.000000e+00 : f32
    %590 = vector.broadcast %cst_313 : f32 to vector<1x128xf32>
    %591 = arith.cmpf ogt, %589, %590 : vector<1x128xf32>
    %592 = arith.extui %591 : vector<1x128xi1> to vector<1x128xi32>
    %593 = arith.sitofp %592 : vector<1x128xi32> to vector<1x128xf32>
    %c27_314 = arith.constant 27 : index
    %c0_315 = arith.constant 0 : index
    %594 = vector.load %arg6[%c27_314, %c0_315] : memref<32x128xf32, #tpu.memory_space<vmem>>, vector<1x128xf32>
    tpu.vector_store %arg6[%c27_314, %c0_315], %593 {strides = array<i32>} : memref<32x128xf32, #tpu.memory_space<vmem>>, vector<1x128xf32>,
    %c28 = arith.constant 28 : index
    %c0_316 = arith.constant 0 : index
    %595 = vector.load %arg13[%c28, %c0_316] : memref<32x128xf32, #tpu.memory_space<vmem>>, vector<1x128xf32>
    tpu.vector_store %arg13[%c28, %c0_316], %593 {strides = array<i32>} : memref<32x128xf32, #tpu.memory_space<vmem>>, vector<1x128xf32>,
    %c28_317 = arith.constant 28 : index
    %c0_318 = arith.constant 0 : index
    %596 = vector.load %arg1[%c28_317, %c0_318] : memref<32x128xf32, #tpu.memory_space<vmem>>, vector<1x128xf32>
    %597 = arith.truncf %593 : vector<1x128xf32> to vector<1x128xbf16>
    %cst_319 = arith.constant dense<0.000000e+00> : vector<1x128xf32>
    %598 = tpu.matmul %597, %3, %cst_319 {dimension_numbers = #tpu.dot_dimension_numbers<[1], [0], [0], [1], [0, 0, 1, 1], [], []>} : vector<1x128xbf16>, vector<128x128xbf16>, vector<1x128xf32> -> vector<1x128xf32>
    %599 = arith.addf %596, %598 : vector<1x128xf32>
    %cst_320 = arith.constant 0.737429261 : f32
    %600 = vector.broadcast %cst_320 : f32 to vector<1x128xf32>
    %601 = arith.mulf %600, %581 : vector<1x128xf32>
    %602 = arith.addf %601, %599 : vector<1x128xf32>
    %cst_321 = arith.constant 0.858736991 : f32
    %603 = vector.broadcast %cst_321 : f32 to vector<1x128xf32>
    %604 = arith.mulf %603, %589 : vector<1x128xf32>
    %cst_322 = arith.constant 1.412630e-01 : f32
    %605 = vector.broadcast %cst_322 : f32 to vector<1x128xf32>
    %606 = arith.mulf %605, %581 : vector<1x128xf32>
    %607 = arith.addf %604, %606 : vector<1x128xf32>
    %cst_323 = arith.constant 1.000000e+00 : f32
    %608 = vector.broadcast %cst_323 : f32 to vector<1x128xf32>
    %609 = arith.subf %608, %593 : vector<1x128xf32>
    %610 = arith.mulf %607, %609 : vector<1x128xf32>
    %cst_324 = arith.constant 1.000000e+00 : f32
    %611 = vector.broadcast %cst_324 : f32 to vector<1x128xf32>
    %612 = arith.cmpf ogt, %610, %611 : vector<1x128xf32>
    %613 = arith.extui %612 : vector<1x128xi1> to vector<1x128xi32>
    %614 = arith.sitofp %613 : vector<1x128xi32> to vector<1x128xf32>
    %c28_325 = arith.constant 28 : index
    %c0_326 = arith.constant 0 : index
    %615 = vector.load %arg6[%c28_325, %c0_326] : memref<32x128xf32, #tpu.memory_space<vmem>>, vector<1x128xf32>
    tpu.vector_store %arg6[%c28_325, %c0_326], %614 {strides = array<i32>} : memref<32x128xf32, #tpu.memory_space<vmem>>, vector<1x128xf32>,
    %c29 = arith.constant 29 : index
    %c0_327 = arith.constant 0 : index
    %616 = vector.load %arg13[%c29, %c0_327] : memref<32x128xf32, #tpu.memory_space<vmem>>, vector<1x128xf32>
    tpu.vector_store %arg13[%c29, %c0_327], %614 {strides = array<i32>} : memref<32x128xf32, #tpu.memory_space<vmem>>, vector<1x128xf32>,
    %c29_328 = arith.constant 29 : index
    %c0_329 = arith.constant 0 : index
    %617 = vector.load %arg1[%c29_328, %c0_329] : memref<32x128xf32, #tpu.memory_space<vmem>>, vector<1x128xf32>
    %618 = arith.truncf %614 : vector<1x128xf32> to vector<1x128xbf16>
    %cst_330 = arith.constant dense<0.000000e+00> : vector<1x128xf32>
    %619 = tpu.matmul %618, %3, %cst_330 {dimension_numbers = #tpu.dot_dimension_numbers<[1], [0], [0], [1], [0, 0, 1, 1], [], []>} : vector<1x128xbf16>, vector<128x128xbf16>, vector<1x128xf32> -> vector<1x128xf32>
    %620 = arith.addf %617, %619 : vector<1x128xf32>
    %cst_331 = arith.constant 0.737429261 : f32
    %621 = vector.broadcast %cst_331 : f32 to vector<1x128xf32>
    %622 = arith.mulf %621, %602 : vector<1x128xf32>
    %623 = arith.addf %622, %620 : vector<1x128xf32>
    %cst_332 = arith.constant 0.858736991 : f32
    %624 = vector.broadcast %cst_332 : f32 to vector<1x128xf32>
    %625 = arith.mulf %624, %610 : vector<1x128xf32>
    %cst_333 = arith.constant 1.412630e-01 : f32
    %626 = vector.broadcast %cst_333 : f32 to vector<1x128xf32>
    %627 = arith.mulf %626, %602 : vector<1x128xf32>
    %628 = arith.addf %625, %627 : vector<1x128xf32>
    %cst_334 = arith.constant 1.000000e+00 : f32
    %629 = vector.broadcast %cst_334 : f32 to vector<1x128xf32>
    %630 = arith.subf %629, %614 : vector<1x128xf32>
    %631 = arith.mulf %628, %630 : vector<1x128xf32>
    %cst_335 = arith.constant 1.000000e+00 : f32
    %632 = vector.broadcast %cst_335 : f32 to vector<1x128xf32>
    %633 = arith.cmpf ogt, %631, %632 : vector<1x128xf32>
    %634 = arith.extui %633 : vector<1x128xi1> to vector<1x128xi32>
    %635 = arith.sitofp %634 : vector<1x128xi32> to vector<1x128xf32>
    %c29_336 = arith.constant 29 : index
    %c0_337 = arith.constant 0 : index
    %636 = vector.load %arg6[%c29_336, %c0_337] : memref<32x128xf32, #tpu.memory_space<vmem>>, vector<1x128xf32>
    tpu.vector_store %arg6[%c29_336, %c0_337], %635 {strides = array<i32>} : memref<32x128xf32, #tpu.memory_space<vmem>>, vector<1x128xf32>,
    %c30 = arith.constant 30 : index
    %c0_338 = arith.constant 0 : index
    %637 = vector.load %arg13[%c30, %c0_338] : memref<32x128xf32, #tpu.memory_space<vmem>>, vector<1x128xf32>
    tpu.vector_store %arg13[%c30, %c0_338], %635 {strides = array<i32>} : memref<32x128xf32, #tpu.memory_space<vmem>>, vector<1x128xf32>,
    %c30_339 = arith.constant 30 : index
    %c0_340 = arith.constant 0 : index
    %638 = vector.load %arg1[%c30_339, %c0_340] : memref<32x128xf32, #tpu.memory_space<vmem>>, vector<1x128xf32>
    %639 = arith.truncf %635 : vector<1x128xf32> to vector<1x128xbf16>
    %cst_341 = arith.constant dense<0.000000e+00> : vector<1x128xf32>
    %640 = tpu.matmul %639, %3, %cst_341 {dimension_numbers = #tpu.dot_dimension_numbers<[1], [0], [0], [1], [0, 0, 1, 1], [], []>} : vector<1x128xbf16>, vector<128x128xbf16>, vector<1x128xf32> -> vector<1x128xf32>
    %641 = arith.addf %638, %640 : vector<1x128xf32>
    %cst_342 = arith.constant 0.737429261 : f32
    %642 = vector.broadcast %cst_342 : f32 to vector<1x128xf32>
    %643 = arith.mulf %642, %623 : vector<1x128xf32>
    %644 = arith.addf %643, %641 : vector<1x128xf32>
    %cst_343 = arith.constant 0.858736991 : f32
    %645 = vector.broadcast %cst_343 : f32 to vector<1x128xf32>
    %646 = arith.mulf %645, %631 : vector<1x128xf32>
    %cst_344 = arith.constant 1.412630e-01 : f32
    %647 = vector.broadcast %cst_344 : f32 to vector<1x128xf32>
    %648 = arith.mulf %647, %623 : vector<1x128xf32>
    %649 = arith.addf %646, %648 : vector<1x128xf32>
    %cst_345 = arith.constant 1.000000e+00 : f32
    %650 = vector.broadcast %cst_345 : f32 to vector<1x128xf32>
    %651 = arith.subf %650, %635 : vector<1x128xf32>
    %652 = arith.mulf %649, %651 : vector<1x128xf32>
    %cst_346 = arith.constant 1.000000e+00 : f32
    %653 = vector.broadcast %cst_346 : f32 to vector<1x128xf32>
    %654 = arith.cmpf ogt, %652, %653 : vector<1x128xf32>
    %655 = arith.extui %654 : vector<1x128xi1> to vector<1x128xi32>
    %656 = arith.sitofp %655 : vector<1x128xi32> to vector<1x128xf32>
    %c30_347 = arith.constant 30 : index
    %c0_348 = arith.constant 0 : index
    %657 = vector.load %arg6[%c30_347, %c0_348] : memref<32x128xf32, #tpu.memory_space<vmem>>, vector<1x128xf32>
    tpu.vector_store %arg6[%c30_347, %c0_348], %656 {strides = array<i32>} : memref<32x128xf32, #tpu.memory_space<vmem>>, vector<1x128xf32>,
    %c31 = arith.constant 31 : index
    %c0_349 = arith.constant 0 : index
    %658 = vector.load %arg13[%c31, %c0_349] : memref<32x128xf32, #tpu.memory_space<vmem>>, vector<1x128xf32>
    tpu.vector_store %arg13[%c31, %c0_349], %656 {strides = array<i32>} : memref<32x128xf32, #tpu.memory_space<vmem>>, vector<1x128xf32>,
    %c31_350 = arith.constant 31 : index
    %c0_351 = arith.constant 0 : index
    %659 = vector.load %arg1[%c31_350, %c0_351] : memref<32x128xf32, #tpu.memory_space<vmem>>, vector<1x128xf32>
    %660 = arith.truncf %656 : vector<1x128xf32> to vector<1x128xbf16>
    %cst_352 = arith.constant dense<0.000000e+00> : vector<1x128xf32>
    %661 = tpu.matmul %660, %3, %cst_352 {dimension_numbers = #tpu.dot_dimension_numbers<[1], [0], [0], [1], [0, 0, 1, 1], [], []>} : vector<1x128xbf16>, vector<128x128xbf16>, vector<1x128xf32> -> vector<1x128xf32>
    %662 = arith.addf %659, %661 : vector<1x128xf32>
    %cst_353 = arith.constant 0.737429261 : f32
    %663 = vector.broadcast %cst_353 : f32 to vector<1x128xf32>
    %664 = arith.mulf %663, %644 : vector<1x128xf32>
    %665 = arith.addf %664, %662 : vector<1x128xf32>
    %cst_354 = arith.constant 0.858736991 : f32
    %666 = vector.broadcast %cst_354 : f32 to vector<1x128xf32>
    %667 = arith.mulf %666, %652 : vector<1x128xf32>
    %cst_355 = arith.constant 1.412630e-01 : f32
    %668 = vector.broadcast %cst_355 : f32 to vector<1x128xf32>
    %669 = arith.mulf %668, %644 : vector<1x128xf32>
    %670 = arith.addf %667, %669 : vector<1x128xf32>
    %cst_356 = arith.constant 1.000000e+00 : f32
    %671 = vector.broadcast %cst_356 : f32 to vector<1x128xf32>
    %672 = arith.subf %671, %656 : vector<1x128xf32>
    %673 = arith.mulf %670, %672 : vector<1x128xf32>
    %cst_357 = arith.constant 1.000000e+00 : f32
    %674 = vector.broadcast %cst_357 : f32 to vector<1x128xf32>
    %675 = arith.cmpf ogt, %673, %674 : vector<1x128xf32>
    %676 = arith.extui %675 : vector<1x128xi1> to vector<1x128xi32>
    %677 = arith.sitofp %676 : vector<1x128xi32> to vector<1x128xf32>
    %c31_358 = arith.constant 31 : index
    %c0_359 = arith.constant 0 : index
    %678 = vector.load %arg6[%c31_358, %c0_359] : memref<32x128xf32, #tpu.memory_space<vmem>>, vector<1x128xf32>
    tpu.vector_store %arg6[%c31_358, %c0_359], %677 {strides = array<i32>} : memref<32x128xf32, #tpu.memory_space<vmem>>, vector<1x128xf32>,
    %c0_360 = arith.constant 0 : index
    %c0_361 = arith.constant 0 : index
    %679 = vector.load %arg8[%c0_360, %c0_361] : memref<1x128xf32, #tpu.memory_space<vmem>>, vector<1x128xf32>
    tpu.vector_store %arg8[%c0_360, %c0_361], %677 {strides = array<i32>} : memref<1x128xf32, #tpu.memory_space<vmem>>, vector<1x128xf32>,
    %c0_362 = arith.constant 0 : index
    %c0_363 = arith.constant 0 : index
    %680 = vector.load %arg9[%c0_362, %c0_363] : memref<1x128xf32, #tpu.memory_space<vmem>>, vector<1x128xf32>
    tpu.vector_store %arg9[%c0_362, %c0_363], %665 {strides = array<i32>} : memref<1x128xf32, #tpu.memory_space<vmem>>, vector<1x128xf32>,
    %c0_364 = arith.constant 0 : index
    %c0_365 = arith.constant 0 : index
    %681 = vector.load %arg10[%c0_364, %c0_365] : memref<1x128xf32, #tpu.memory_space<vmem>>, vector<1x128xf32>
    tpu.vector_store %arg10[%c0_364, %c0_365], %673 {strides = array<i32>} : memref<1x128xf32, #tpu.memory_space<vmem>>, vector<1x128xf32>,
    %c0_366 = arith.constant 0 : index
    %c0_367 = arith.constant 0 : index
    %682 = vector.load %arg13[%c0_366, %c0_367] : memref<32x128xf32, #tpu.memory_space<vmem>>, vector<32x128xf32>
    %c0_368 = arith.constant 0 : index
    %c0_369 = arith.constant 0 : index
    %683 = vector.load %arg3[%c0_368, %c0_369] : memref<128x128xf32, #tpu.memory_space<vmem>>, vector<128x128xf32>
    %cst_370 = arith.constant dense<0.000000e+00> : vector<32x128xf32>
    %684 = tpu.matmul %682, %683, %cst_370 {dimension_numbers = #tpu.dot_dimension_numbers<[1], [0], [0], [1], [0, 0, 1, 1], [], []>} : vector<32x128xf32>, vector<128x128xf32>, vector<32x128xf32> -> vector<32x128xf32>
    %c0_371 = arith.constant 0 : index
    %c0_372 = arith.constant 0 : index
    %685 = vector.load %arg4[%c0_371, %c0_372] : memref<1x128xf32, #tpu.memory_space<vmem>>, vector<1x128xf32>
    %c0_373 = arith.constant 0 : index
    %c0_374 = arith.constant 0 : index
    %686 = vector.load %arg5[%c0_373, %c0_374] : memref<1x128xf32, #tpu.memory_space<vmem>>, vector<1x128xf32>
    %c0_375 = arith.constant 0 : index
    %c0_376 = arith.constant 0 : index
    %687 = vector.load %arg11[%c0_375, %c0_376] : memref<1x128xf32, #tpu.memory_space<vmem>>, vector<1x128xf32>
    %c0_377 = arith.constant 0 : index
    %c0_378 = arith.constant 0 : index
    %688 = vector.load %arg12[%c0_377, %c0_378] : memref<1x128xf32, #tpu.memory_space<vmem>>, vector<1x128xf32>
    %689 = arith.mulf %685, %687 : vector<1x128xf32>
    %690 = vector.extract_strided_slice %684 {offsets = [0, 0], sizes = [1, 128], strides = [1, 1]} : vector<32x128xf32> to vector<1x128xf32>
    %691 = arith.addf %689, %690 : vector<1x128xf32>
    %692 = arith.mulf %686, %688 : vector<1x128xf32>
    %cst_379 = arith.constant 1.000000e+00 : f32
    %693 = vector.broadcast %cst_379 : f32 to vector<1x128xf32>
    %694 = arith.subf %693, %686 : vector<1x128xf32>
    %695 = arith.mulf %694, %687 : vector<1x128xf32>
    %696 = arith.addf %692, %695 : vector<1x128xf32>
    %c0_380 = arith.constant 0 : index
    %c0_381 = arith.constant 0 : index
    %697 = vector.load %arg7[%c0_380, %c0_381] : memref<32x128xf32, #tpu.memory_space<vmem>>, vector<1x128xf32>
    tpu.vector_store %arg7[%c0_380, %c0_381], %696 {strides = array<i32>} : memref<32x128xf32, #tpu.memory_space<vmem>>, vector<1x128xf32>,
    %698 = arith.mulf %685, %691 : vector<1x128xf32>
    %699 = vector.extract_strided_slice %684 {offsets = [1, 0], sizes = [1, 128], strides = [1, 1]} : vector<32x128xf32> to vector<1x128xf32>
    %700 = arith.addf %698, %699 : vector<1x128xf32>
    %701 = arith.mulf %686, %696 : vector<1x128xf32>
    %cst_382 = arith.constant 1.000000e+00 : f32
    %702 = vector.broadcast %cst_382 : f32 to vector<1x128xf32>
    %703 = arith.subf %702, %686 : vector<1x128xf32>
    %704 = arith.mulf %703, %691 : vector<1x128xf32>
    %705 = arith.addf %701, %704 : vector<1x128xf32>
    %c1_383 = arith.constant 1 : index
    %c0_384 = arith.constant 0 : index
    %706 = vector.load %arg7[%c1_383, %c0_384] : memref<32x128xf32, #tpu.memory_space<vmem>>, vector<1x128xf32>
    tpu.vector_store %arg7[%c1_383, %c0_384], %705 {strides = array<i32>} : memref<32x128xf32, #tpu.memory_space<vmem>>, vector<1x128xf32>,
    %707 = arith.mulf %685, %700 : vector<1x128xf32>
    %708 = vector.extract_strided_slice %684 {offsets = [2, 0], sizes = [1, 128], strides = [1, 1]} : vector<32x128xf32> to vector<1x128xf32>
    %709 = arith.addf %707, %708 : vector<1x128xf32>
    %710 = arith.mulf %686, %705 : vector<1x128xf32>
    %cst_385 = arith.constant 1.000000e+00 : f32
    %711 = vector.broadcast %cst_385 : f32 to vector<1x128xf32>
    %712 = arith.subf %711, %686 : vector<1x128xf32>
    %713 = arith.mulf %712, %700 : vector<1x128xf32>
    %714 = arith.addf %710, %713 : vector<1x128xf32>
    %c2_386 = arith.constant 2 : index
    %c0_387 = arith.constant 0 : index
    %715 = vector.load %arg7[%c2_386, %c0_387] : memref<32x128xf32, #tpu.memory_space<vmem>>, vector<1x128xf32>
    tpu.vector_store %arg7[%c2_386, %c0_387], %714 {strides = array<i32>} : memref<32x128xf32, #tpu.memory_space<vmem>>, vector<1x128xf32>,
    %716 = arith.mulf %685, %709 : vector<1x128xf32>
    %717 = vector.extract_strided_slice %684 {offsets = [3, 0], sizes = [1, 128], strides = [1, 1]} : vector<32x128xf32> to vector<1x128xf32>
    %718 = arith.addf %716, %717 : vector<1x128xf32>
    %719 = arith.mulf %686, %714 : vector<1x128xf32>
    %cst_388 = arith.constant 1.000000e+00 : f32
    %720 = vector.broadcast %cst_388 : f32 to vector<1x128xf32>
    %721 = arith.subf %720, %686 : vector<1x128xf32>
    %722 = arith.mulf %721, %709 : vector<1x128xf32>
    %723 = arith.addf %719, %722 : vector<1x128xf32>
    %c3_389 = arith.constant 3 : index
    %c0_390 = arith.constant 0 : index
    %724 = vector.load %arg7[%c3_389, %c0_390] : memref<32x128xf32, #tpu.memory_space<vmem>>, vector<1x128xf32>
    tpu.vector_store %arg7[%c3_389, %c0_390], %723 {strides = array<i32>} : memref<32x128xf32, #tpu.memory_space<vmem>>, vector<1x128xf32>,
    %725 = arith.mulf %685, %718 : vector<1x128xf32>
    %726 = vector.extract_strided_slice %684 {offsets = [4, 0], sizes = [1, 128], strides = [1, 1]} : vector<32x128xf32> to vector<1x128xf32>
    %727 = arith.addf %725, %726 : vector<1x128xf32>
    %728 = arith.mulf %686, %723 : vector<1x128xf32>
    %cst_391 = arith.constant 1.000000e+00 : f32
    %729 = vector.broadcast %cst_391 : f32 to vector<1x128xf32>
    %730 = arith.subf %729, %686 : vector<1x128xf32>
    %731 = arith.mulf %730, %718 : vector<1x128xf32>
    %732 = arith.addf %728, %731 : vector<1x128xf32>
    %c4_392 = arith.constant 4 : index
    %c0_393 = arith.constant 0 : index
    %733 = vector.load %arg7[%c4_392, %c0_393] : memref<32x128xf32, #tpu.memory_space<vmem>>, vector<1x128xf32>
    tpu.vector_store %arg7[%c4_392, %c0_393], %732 {strides = array<i32>} : memref<32x128xf32, #tpu.memory_space<vmem>>, vector<1x128xf32>,
    %734 = arith.mulf %685, %727 : vector<1x128xf32>
    %735 = vector.extract_strided_slice %684 {offsets = [5, 0], sizes = [1, 128], strides = [1, 1]} : vector<32x128xf32> to vector<1x128xf32>
    %736 = arith.addf %734, %735 : vector<1x128xf32>
    %737 = arith.mulf %686, %732 : vector<1x128xf32>
    %cst_394 = arith.constant 1.000000e+00 : f32
    %738 = vector.broadcast %cst_394 : f32 to vector<1x128xf32>
    %739 = arith.subf %738, %686 : vector<1x128xf32>
    %740 = arith.mulf %739, %727 : vector<1x128xf32>
    %741 = arith.addf %737, %740 : vector<1x128xf32>
    %c5_395 = arith.constant 5 : index
    %c0_396 = arith.constant 0 : index
    %742 = vector.load %arg7[%c5_395, %c0_396] : memref<32x128xf32, #tpu.memory_space<vmem>>, vector<1x128xf32>
    tpu.vector_store %arg7[%c5_395, %c0_396], %741 {strides = array<i32>} : memref<32x128xf32, #tpu.memory_space<vmem>>, vector<1x128xf32>,
    %743 = arith.mulf %685, %736 : vector<1x128xf32>
    %744 = vector.extract_strided_slice %684 {offsets = [6, 0], sizes = [1, 128], strides = [1, 1]} : vector<32x128xf32> to vector<1x128xf32>
    %745 = arith.addf %743, %744 : vector<1x128xf32>
    %746 = arith.mulf %686, %741 : vector<1x128xf32>
    %cst_397 = arith.constant 1.000000e+00 : f32
    %747 = vector.broadcast %cst_397 : f32 to vector<1x128xf32>
    %748 = arith.subf %747, %686 : vector<1x128xf32>
    %749 = arith.mulf %748, %736 : vector<1x128xf32>
    %750 = arith.addf %746, %749 : vector<1x128xf32>
    %c6_398 = arith.constant 6 : index
    %c0_399 = arith.constant 0 : index
    %751 = vector.load %arg7[%c6_398, %c0_399] : memref<32x128xf32, #tpu.memory_space<vmem>>, vector<1x128xf32>
    tpu.vector_store %arg7[%c6_398, %c0_399], %750 {strides = array<i32>} : memref<32x128xf32, #tpu.memory_space<vmem>>, vector<1x128xf32>,
    %752 = arith.mulf %685, %745 : vector<1x128xf32>
    %753 = vector.extract_strided_slice %684 {offsets = [7, 0], sizes = [1, 128], strides = [1, 1]} : vector<32x128xf32> to vector<1x128xf32>
    %754 = arith.addf %752, %753 : vector<1x128xf32>
    %755 = arith.mulf %686, %750 : vector<1x128xf32>
    %cst_400 = arith.constant 1.000000e+00 : f32
    %756 = vector.broadcast %cst_400 : f32 to vector<1x128xf32>
    %757 = arith.subf %756, %686 : vector<1x128xf32>
    %758 = arith.mulf %757, %745 : vector<1x128xf32>
    %759 = arith.addf %755, %758 : vector<1x128xf32>
    %c7_401 = arith.constant 7 : index
    %c0_402 = arith.constant 0 : index
    %760 = vector.load %arg7[%c7_401, %c0_402] : memref<32x128xf32, #tpu.memory_space<vmem>>, vector<1x128xf32>
    tpu.vector_store %arg7[%c7_401, %c0_402], %759 {strides = array<i32>} : memref<32x128xf32, #tpu.memory_space<vmem>>, vector<1x128xf32>,
    %761 = arith.mulf %685, %754 : vector<1x128xf32>
    %762 = vector.extract_strided_slice %684 {offsets = [8, 0], sizes = [1, 128], strides = [1, 1]} : vector<32x128xf32> to vector<1x128xf32>
    %763 = arith.addf %761, %762 : vector<1x128xf32>
    %764 = arith.mulf %686, %759 : vector<1x128xf32>
    %cst_403 = arith.constant 1.000000e+00 : f32
    %765 = vector.broadcast %cst_403 : f32 to vector<1x128xf32>
    %766 = arith.subf %765, %686 : vector<1x128xf32>
    %767 = arith.mulf %766, %754 : vector<1x128xf32>
    %768 = arith.addf %764, %767 : vector<1x128xf32>
    %c8_404 = arith.constant 8 : index
    %c0_405 = arith.constant 0 : index
    %769 = vector.load %arg7[%c8_404, %c0_405] : memref<32x128xf32, #tpu.memory_space<vmem>>, vector<1x128xf32>
    tpu.vector_store %arg7[%c8_404, %c0_405], %768 {strides = array<i32>} : memref<32x128xf32, #tpu.memory_space<vmem>>, vector<1x128xf32>,
    %770 = arith.mulf %685, %763 : vector<1x128xf32>
    %771 = vector.extract_strided_slice %684 {offsets = [9, 0], sizes = [1, 128], strides = [1, 1]} : vector<32x128xf32> to vector<1x128xf32>
    %772 = arith.addf %770, %771 : vector<1x128xf32>
    %773 = arith.mulf %686, %768 : vector<1x128xf32>
    %cst_406 = arith.constant 1.000000e+00 : f32
    %774 = vector.broadcast %cst_406 : f32 to vector<1x128xf32>
    %775 = arith.subf %774, %686 : vector<1x128xf32>
    %776 = arith.mulf %775, %763 : vector<1x128xf32>
    %777 = arith.addf %773, %776 : vector<1x128xf32>
    %c9_407 = arith.constant 9 : index
    %c0_408 = arith.constant 0 : index
    %778 = vector.load %arg7[%c9_407, %c0_408] : memref<32x128xf32, #tpu.memory_space<vmem>>, vector<1x128xf32>
    tpu.vector_store %arg7[%c9_407, %c0_408], %777 {strides = array<i32>} : memref<32x128xf32, #tpu.memory_space<vmem>>, vector<1x128xf32>,
    %779 = arith.mulf %685, %772 : vector<1x128xf32>
    %780 = vector.extract_strided_slice %684 {offsets = [10, 0], sizes = [1, 128], strides = [1, 1]} : vector<32x128xf32> to vector<1x128xf32>
    %781 = arith.addf %779, %780 : vector<1x128xf32>
    %782 = arith.mulf %686, %777 : vector<1x128xf32>
    %cst_409 = arith.constant 1.000000e+00 : f32
    %783 = vector.broadcast %cst_409 : f32 to vector<1x128xf32>
    %784 = arith.subf %783, %686 : vector<1x128xf32>
    %785 = arith.mulf %784, %772 : vector<1x128xf32>
    %786 = arith.addf %782, %785 : vector<1x128xf32>
    %c10_410 = arith.constant 10 : index
    %c0_411 = arith.constant 0 : index
    %787 = vector.load %arg7[%c10_410, %c0_411] : memref<32x128xf32, #tpu.memory_space<vmem>>, vector<1x128xf32>
    tpu.vector_store %arg7[%c10_410, %c0_411], %786 {strides = array<i32>} : memref<32x128xf32, #tpu.memory_space<vmem>>, vector<1x128xf32>,
    %788 = arith.mulf %685, %781 : vector<1x128xf32>
    %789 = vector.extract_strided_slice %684 {offsets = [11, 0], sizes = [1, 128], strides = [1, 1]} : vector<32x128xf32> to vector<1x128xf32>
    %790 = arith.addf %788, %789 : vector<1x128xf32>
    %791 = arith.mulf %686, %786 : vector<1x128xf32>
    %cst_412 = arith.constant 1.000000e+00 : f32
    %792 = vector.broadcast %cst_412 : f32 to vector<1x128xf32>
    %793 = arith.subf %792, %686 : vector<1x128xf32>
    %794 = arith.mulf %793, %781 : vector<1x128xf32>
    %795 = arith.addf %791, %794 : vector<1x128xf32>
    %c11_413 = arith.constant 11 : index
    %c0_414 = arith.constant 0 : index
    %796 = vector.load %arg7[%c11_413, %c0_414] : memref<32x128xf32, #tpu.memory_space<vmem>>, vector<1x128xf32>
    tpu.vector_store %arg7[%c11_413, %c0_414], %795 {strides = array<i32>} : memref<32x128xf32, #tpu.memory_space<vmem>>, vector<1x128xf32>,
    %797 = arith.mulf %685, %790 : vector<1x128xf32>
    %798 = vector.extract_strided_slice %684 {offsets = [12, 0], sizes = [1, 128], strides = [1, 1]} : vector<32x128xf32> to vector<1x128xf32>
    %799 = arith.addf %797, %798 : vector<1x128xf32>
    %800 = arith.mulf %686, %795 : vector<1x128xf32>
    %cst_415 = arith.constant 1.000000e+00 : f32
    %801 = vector.broadcast %cst_415 : f32 to vector<1x128xf32>
    %802 = arith.subf %801, %686 : vector<1x128xf32>
    %803 = arith.mulf %802, %790 : vector<1x128xf32>
    %804 = arith.addf %800, %803 : vector<1x128xf32>
    %c12_416 = arith.constant 12 : index
    %c0_417 = arith.constant 0 : index
    %805 = vector.load %arg7[%c12_416, %c0_417] : memref<32x128xf32, #tpu.memory_space<vmem>>, vector<1x128xf32>
    tpu.vector_store %arg7[%c12_416, %c0_417], %804 {strides = array<i32>} : memref<32x128xf32, #tpu.memory_space<vmem>>, vector<1x128xf32>,
    %806 = arith.mulf %685, %799 : vector<1x128xf32>
    %807 = vector.extract_strided_slice %684 {offsets = [13, 0], sizes = [1, 128], strides = [1, 1]} : vector<32x128xf32> to vector<1x128xf32>
    %808 = arith.addf %806, %807 : vector<1x128xf32>
    %809 = arith.mulf %686, %804 : vector<1x128xf32>
    %cst_418 = arith.constant 1.000000e+00 : f32
    %810 = vector.broadcast %cst_418 : f32 to vector<1x128xf32>
    %811 = arith.subf %810, %686 : vector<1x128xf32>
    %812 = arith.mulf %811, %799 : vector<1x128xf32>
    %813 = arith.addf %809, %812 : vector<1x128xf32>
    %c13_419 = arith.constant 13 : index
    %c0_420 = arith.constant 0 : index
    %814 = vector.load %arg7[%c13_419, %c0_420] : memref<32x128xf32, #tpu.memory_space<vmem>>, vector<1x128xf32>
    tpu.vector_store %arg7[%c13_419, %c0_420], %813 {strides = array<i32>} : memref<32x128xf32, #tpu.memory_space<vmem>>, vector<1x128xf32>,
    %815 = arith.mulf %685, %808 : vector<1x128xf32>
    %816 = vector.extract_strided_slice %684 {offsets = [14, 0], sizes = [1, 128], strides = [1, 1]} : vector<32x128xf32> to vector<1x128xf32>
    %817 = arith.addf %815, %816 : vector<1x128xf32>
    %818 = arith.mulf %686, %813 : vector<1x128xf32>
    %cst_421 = arith.constant 1.000000e+00 : f32
    %819 = vector.broadcast %cst_421 : f32 to vector<1x128xf32>
    %820 = arith.subf %819, %686 : vector<1x128xf32>
    %821 = arith.mulf %820, %808 : vector<1x128xf32>
    %822 = arith.addf %818, %821 : vector<1x128xf32>
    %c14_422 = arith.constant 14 : index
    %c0_423 = arith.constant 0 : index
    %823 = vector.load %arg7[%c14_422, %c0_423] : memref<32x128xf32, #tpu.memory_space<vmem>>, vector<1x128xf32>
    tpu.vector_store %arg7[%c14_422, %c0_423], %822 {strides = array<i32>} : memref<32x128xf32, #tpu.memory_space<vmem>>, vector<1x128xf32>,
    %824 = arith.mulf %685, %817 : vector<1x128xf32>
    %825 = vector.extract_strided_slice %684 {offsets = [15, 0], sizes = [1, 128], strides = [1, 1]} : vector<32x128xf32> to vector<1x128xf32>
    %826 = arith.addf %824, %825 : vector<1x128xf32>
    %827 = arith.mulf %686, %822 : vector<1x128xf32>
    %cst_424 = arith.constant 1.000000e+00 : f32
    %828 = vector.broadcast %cst_424 : f32 to vector<1x128xf32>
    %829 = arith.subf %828, %686 : vector<1x128xf32>
    %830 = arith.mulf %829, %817 : vector<1x128xf32>
    %831 = arith.addf %827, %830 : vector<1x128xf32>
    %c15_425 = arith.constant 15 : index
    %c0_426 = arith.constant 0 : index
    %832 = vector.load %arg7[%c15_425, %c0_426] : memref<32x128xf32, #tpu.memory_space<vmem>>, vector<1x128xf32>
    tpu.vector_store %arg7[%c15_425, %c0_426], %831 {strides = array<i32>} : memref<32x128xf32, #tpu.memory_space<vmem>>, vector<1x128xf32>,
    %833 = arith.mulf %685, %826 : vector<1x128xf32>
    %834 = vector.extract_strided_slice %684 {offsets = [16, 0], sizes = [1, 128], strides = [1, 1]} : vector<32x128xf32> to vector<1x128xf32>
    %835 = arith.addf %833, %834 : vector<1x128xf32>
    %836 = arith.mulf %686, %831 : vector<1x128xf32>
    %cst_427 = arith.constant 1.000000e+00 : f32
    %837 = vector.broadcast %cst_427 : f32 to vector<1x128xf32>
    %838 = arith.subf %837, %686 : vector<1x128xf32>
    %839 = arith.mulf %838, %826 : vector<1x128xf32>
    %840 = arith.addf %836, %839 : vector<1x128xf32>
    %c16_428 = arith.constant 16 : index
    %c0_429 = arith.constant 0 : index
    %841 = vector.load %arg7[%c16_428, %c0_429] : memref<32x128xf32, #tpu.memory_space<vmem>>, vector<1x128xf32>
    tpu.vector_store %arg7[%c16_428, %c0_429], %840 {strides = array<i32>} : memref<32x128xf32, #tpu.memory_space<vmem>>, vector<1x128xf32>,
    %842 = arith.mulf %685, %835 : vector<1x128xf32>
    %843 = vector.extract_strided_slice %684 {offsets = [17, 0], sizes = [1, 128], strides = [1, 1]} : vector<32x128xf32> to vector<1x128xf32>
    %844 = arith.addf %842, %843 : vector<1x128xf32>
    %845 = arith.mulf %686, %840 : vector<1x128xf32>
    %cst_430 = arith.constant 1.000000e+00 : f32
    %846 = vector.broadcast %cst_430 : f32 to vector<1x128xf32>
    %847 = arith.subf %846, %686 : vector<1x128xf32>
    %848 = arith.mulf %847, %835 : vector<1x128xf32>
    %849 = arith.addf %845, %848 : vector<1x128xf32>
    %c17_431 = arith.constant 17 : index
    %c0_432 = arith.constant 0 : index
    %850 = vector.load %arg7[%c17_431, %c0_432] : memref<32x128xf32, #tpu.memory_space<vmem>>, vector<1x128xf32>
    tpu.vector_store %arg7[%c17_431, %c0_432], %849 {strides = array<i32>} : memref<32x128xf32, #tpu.memory_space<vmem>>, vector<1x128xf32>,
    %851 = arith.mulf %685, %844 : vector<1x128xf32>
    %852 = vector.extract_strided_slice %684 {offsets = [18, 0], sizes = [1, 128], strides = [1, 1]} : vector<32x128xf32> to vector<1x128xf32>
    %853 = arith.addf %851, %852 : vector<1x128xf32>
    %854 = arith.mulf %686, %849 : vector<1x128xf32>
    %cst_433 = arith.constant 1.000000e+00 : f32
    %855 = vector.broadcast %cst_433 : f32 to vector<1x128xf32>
    %856 = arith.subf %855, %686 : vector<1x128xf32>
    %857 = arith.mulf %856, %844 : vector<1x128xf32>
    %858 = arith.addf %854, %857 : vector<1x128xf32>
    %c18_434 = arith.constant 18 : index
    %c0_435 = arith.constant 0 : index
    %859 = vector.load %arg7[%c18_434, %c0_435] : memref<32x128xf32, #tpu.memory_space<vmem>>, vector<1x128xf32>
    tpu.vector_store %arg7[%c18_434, %c0_435], %858 {strides = array<i32>} : memref<32x128xf32, #tpu.memory_space<vmem>>, vector<1x128xf32>,
    %860 = arith.mulf %685, %853 : vector<1x128xf32>
    %861 = vector.extract_strided_slice %684 {offsets = [19, 0], sizes = [1, 128], strides = [1, 1]} : vector<32x128xf32> to vector<1x128xf32>
    %862 = arith.addf %860, %861 : vector<1x128xf32>
    %863 = arith.mulf %686, %858 : vector<1x128xf32>
    %cst_436 = arith.constant 1.000000e+00 : f32
    %864 = vector.broadcast %cst_436 : f32 to vector<1x128xf32>
    %865 = arith.subf %864, %686 : vector<1x128xf32>
    %866 = arith.mulf %865, %853 : vector<1x128xf32>
    %867 = arith.addf %863, %866 : vector<1x128xf32>
    %c19_437 = arith.constant 19 : index
    %c0_438 = arith.constant 0 : index
    %868 = vector.load %arg7[%c19_437, %c0_438] : memref<32x128xf32, #tpu.memory_space<vmem>>, vector<1x128xf32>
    tpu.vector_store %arg7[%c19_437, %c0_438], %867 {strides = array<i32>} : memref<32x128xf32, #tpu.memory_space<vmem>>, vector<1x128xf32>,
    %869 = arith.mulf %685, %862 : vector<1x128xf32>
    %870 = vector.extract_strided_slice %684 {offsets = [20, 0], sizes = [1, 128], strides = [1, 1]} : vector<32x128xf32> to vector<1x128xf32>
    %871 = arith.addf %869, %870 : vector<1x128xf32>
    %872 = arith.mulf %686, %867 : vector<1x128xf32>
    %cst_439 = arith.constant 1.000000e+00 : f32
    %873 = vector.broadcast %cst_439 : f32 to vector<1x128xf32>
    %874 = arith.subf %873, %686 : vector<1x128xf32>
    %875 = arith.mulf %874, %862 : vector<1x128xf32>
    %876 = arith.addf %872, %875 : vector<1x128xf32>
    %c20_440 = arith.constant 20 : index
    %c0_441 = arith.constant 0 : index
    %877 = vector.load %arg7[%c20_440, %c0_441] : memref<32x128xf32, #tpu.memory_space<vmem>>, vector<1x128xf32>
    tpu.vector_store %arg7[%c20_440, %c0_441], %876 {strides = array<i32>} : memref<32x128xf32, #tpu.memory_space<vmem>>, vector<1x128xf32>,
    %878 = arith.mulf %685, %871 : vector<1x128xf32>
    %879 = vector.extract_strided_slice %684 {offsets = [21, 0], sizes = [1, 128], strides = [1, 1]} : vector<32x128xf32> to vector<1x128xf32>
    %880 = arith.addf %878, %879 : vector<1x128xf32>
    %881 = arith.mulf %686, %876 : vector<1x128xf32>
    %cst_442 = arith.constant 1.000000e+00 : f32
    %882 = vector.broadcast %cst_442 : f32 to vector<1x128xf32>
    %883 = arith.subf %882, %686 : vector<1x128xf32>
    %884 = arith.mulf %883, %871 : vector<1x128xf32>
    %885 = arith.addf %881, %884 : vector<1x128xf32>
    %c21_443 = arith.constant 21 : index
    %c0_444 = arith.constant 0 : index
    %886 = vector.load %arg7[%c21_443, %c0_444] : memref<32x128xf32, #tpu.memory_space<vmem>>, vector<1x128xf32>
    tpu.vector_store %arg7[%c21_443, %c0_444], %885 {strides = array<i32>} : memref<32x128xf32, #tpu.memory_space<vmem>>, vector<1x128xf32>,
    %887 = arith.mulf %685, %880 : vector<1x128xf32>
    %888 = vector.extract_strided_slice %684 {offsets = [22, 0], sizes = [1, 128], strides = [1, 1]} : vector<32x128xf32> to vector<1x128xf32>
    %889 = arith.addf %887, %888 : vector<1x128xf32>
    %890 = arith.mulf %686, %885 : vector<1x128xf32>
    %cst_445 = arith.constant 1.000000e+00 : f32
    %891 = vector.broadcast %cst_445 : f32 to vector<1x128xf32>
    %892 = arith.subf %891, %686 : vector<1x128xf32>
    %893 = arith.mulf %892, %880 : vector<1x128xf32>
    %894 = arith.addf %890, %893 : vector<1x128xf32>
    %c22_446 = arith.constant 22 : index
    %c0_447 = arith.constant 0 : index
    %895 = vector.load %arg7[%c22_446, %c0_447] : memref<32x128xf32, #tpu.memory_space<vmem>>, vector<1x128xf32>
    tpu.vector_store %arg7[%c22_446, %c0_447], %894 {strides = array<i32>} : memref<32x128xf32, #tpu.memory_space<vmem>>, vector<1x128xf32>,
    %896 = arith.mulf %685, %889 : vector<1x128xf32>
    %897 = vector.extract_strided_slice %684 {offsets = [23, 0], sizes = [1, 128], strides = [1, 1]} : vector<32x128xf32> to vector<1x128xf32>
    %898 = arith.addf %896, %897 : vector<1x128xf32>
    %899 = arith.mulf %686, %894 : vector<1x128xf32>
    %cst_448 = arith.constant 1.000000e+00 : f32
    %900 = vector.broadcast %cst_448 : f32 to vector<1x128xf32>
    %901 = arith.subf %900, %686 : vector<1x128xf32>
    %902 = arith.mulf %901, %889 : vector<1x128xf32>
    %903 = arith.addf %899, %902 : vector<1x128xf32>
    %c23_449 = arith.constant 23 : index
    %c0_450 = arith.constant 0 : index
    %904 = vector.load %arg7[%c23_449, %c0_450] : memref<32x128xf32, #tpu.memory_space<vmem>>, vector<1x128xf32>
    tpu.vector_store %arg7[%c23_449, %c0_450], %903 {strides = array<i32>} : memref<32x128xf32, #tpu.memory_space<vmem>>, vector<1x128xf32>,
    %905 = arith.mulf %685, %898 : vector<1x128xf32>
    %906 = vector.extract_strided_slice %684 {offsets = [24, 0], sizes = [1, 128], strides = [1, 1]} : vector<32x128xf32> to vector<1x128xf32>
    %907 = arith.addf %905, %906 : vector<1x128xf32>
    %908 = arith.mulf %686, %903 : vector<1x128xf32>
    %cst_451 = arith.constant 1.000000e+00 : f32
    %909 = vector.broadcast %cst_451 : f32 to vector<1x128xf32>
    %910 = arith.subf %909, %686 : vector<1x128xf32>
    %911 = arith.mulf %910, %898 : vector<1x128xf32>
    %912 = arith.addf %908, %911 : vector<1x128xf32>
    %c24_452 = arith.constant 24 : index
    %c0_453 = arith.constant 0 : index
    %913 = vector.load %arg7[%c24_452, %c0_453] : memref<32x128xf32, #tpu.memory_space<vmem>>, vector<1x128xf32>
    tpu.vector_store %arg7[%c24_452, %c0_453], %912 {strides = array<i32>} : memref<32x128xf32, #tpu.memory_space<vmem>>, vector<1x128xf32>,
    %914 = arith.mulf %685, %907 : vector<1x128xf32>
    %915 = vector.extract_strided_slice %684 {offsets = [25, 0], sizes = [1, 128], strides = [1, 1]} : vector<32x128xf32> to vector<1x128xf32>
    %916 = arith.addf %914, %915 : vector<1x128xf32>
    %917 = arith.mulf %686, %912 : vector<1x128xf32>
    %cst_454 = arith.constant 1.000000e+00 : f32
    %918 = vector.broadcast %cst_454 : f32 to vector<1x128xf32>
    %919 = arith.subf %918, %686 : vector<1x128xf32>
    %920 = arith.mulf %919, %907 : vector<1x128xf32>
    %921 = arith.addf %917, %920 : vector<1x128xf32>
    %c25_455 = arith.constant 25 : index
    %c0_456 = arith.constant 0 : index
    %922 = vector.load %arg7[%c25_455, %c0_456] : memref<32x128xf32, #tpu.memory_space<vmem>>, vector<1x128xf32>
    tpu.vector_store %arg7[%c25_455, %c0_456], %921 {strides = array<i32>} : memref<32x128xf32, #tpu.memory_space<vmem>>, vector<1x128xf32>,
    %923 = arith.mulf %685, %916 : vector<1x128xf32>
    %924 = vector.extract_strided_slice %684 {offsets = [26, 0], sizes = [1, 128], strides = [1, 1]} : vector<32x128xf32> to vector<1x128xf32>
    %925 = arith.addf %923, %924 : vector<1x128xf32>
    %926 = arith.mulf %686, %921 : vector<1x128xf32>
    %cst_457 = arith.constant 1.000000e+00 : f32
    %927 = vector.broadcast %cst_457 : f32 to vector<1x128xf32>
    %928 = arith.subf %927, %686 : vector<1x128xf32>
    %929 = arith.mulf %928, %916 : vector<1x128xf32>
    %930 = arith.addf %926, %929 : vector<1x128xf32>
    %c26_458 = arith.constant 26 : index
    %c0_459 = arith.constant 0 : index
    %931 = vector.load %arg7[%c26_458, %c0_459] : memref<32x128xf32, #tpu.memory_space<vmem>>, vector<1x128xf32>
    tpu.vector_store %arg7[%c26_458, %c0_459], %930 {strides = array<i32>} : memref<32x128xf32, #tpu.memory_space<vmem>>, vector<1x128xf32>,
    %932 = arith.mulf %685, %925 : vector<1x128xf32>
    %933 = vector.extract_strided_slice %684 {offsets = [27, 0], sizes = [1, 128], strides = [1, 1]} : vector<32x128xf32> to vector<1x128xf32>
    %934 = arith.addf %932, %933 : vector<1x128xf32>
    %935 = arith.mulf %686, %930 : vector<1x128xf32>
    %cst_460 = arith.constant 1.000000e+00 : f32
    %936 = vector.broadcast %cst_460 : f32 to vector<1x128xf32>
    %937 = arith.subf %936, %686 : vector<1x128xf32>
    %938 = arith.mulf %937, %925 : vector<1x128xf32>
    %939 = arith.addf %935, %938 : vector<1x128xf32>
    %c27_461 = arith.constant 27 : index
    %c0_462 = arith.constant 0 : index
    %940 = vector.load %arg7[%c27_461, %c0_462] : memref<32x128xf32, #tpu.memory_space<vmem>>, vector<1x128xf32>
    tpu.vector_store %arg7[%c27_461, %c0_462], %939 {strides = array<i32>} : memref<32x128xf32, #tpu.memory_space<vmem>>, vector<1x128xf32>,
    %941 = arith.mulf %685, %934 : vector<1x128xf32>
    %942 = vector.extract_strided_slice %684 {offsets = [28, 0], sizes = [1, 128], strides = [1, 1]} : vector<32x128xf32> to vector<1x128xf32>
    %943 = arith.addf %941, %942 : vector<1x128xf32>
    %944 = arith.mulf %686, %939 : vector<1x128xf32>
    %cst_463 = arith.constant 1.000000e+00 : f32
    %945 = vector.broadcast %cst_463 : f32 to vector<1x128xf32>
    %946 = arith.subf %945, %686 : vector<1x128xf32>
    %947 = arith.mulf %946, %934 : vector<1x128xf32>
    %948 = arith.addf %944, %947 : vector<1x128xf32>
    %c28_464 = arith.constant 28 : index
    %c0_465 = arith.constant 0 : index
    %949 = vector.load %arg7[%c28_464, %c0_465] : memref<32x128xf32, #tpu.memory_space<vmem>>, vector<1x128xf32>
    tpu.vector_store %arg7[%c28_464, %c0_465], %948 {strides = array<i32>} : memref<32x128xf32, #tpu.memory_space<vmem>>, vector<1x128xf32>,
    %950 = arith.mulf %685, %943 : vector<1x128xf32>
    %951 = vector.extract_strided_slice %684 {offsets = [29, 0], sizes = [1, 128], strides = [1, 1]} : vector<32x128xf32> to vector<1x128xf32>
    %952 = arith.addf %950, %951 : vector<1x128xf32>
    %953 = arith.mulf %686, %948 : vector<1x128xf32>
    %cst_466 = arith.constant 1.000000e+00 : f32
    %954 = vector.broadcast %cst_466 : f32 to vector<1x128xf32>
    %955 = arith.subf %954, %686 : vector<1x128xf32>
    %956 = arith.mulf %955, %943 : vector<1x128xf32>
    %957 = arith.addf %953, %956 : vector<1x128xf32>
    %c29_467 = arith.constant 29 : index
    %c0_468 = arith.constant 0 : index
    %958 = vector.load %arg7[%c29_467, %c0_468] : memref<32x128xf32, #tpu.memory_space<vmem>>, vector<1x128xf32>
    tpu.vector_store %arg7[%c29_467, %c0_468], %957 {strides = array<i32>} : memref<32x128xf32, #tpu.memory_space<vmem>>, vector<1x128xf32>,
    %959 = arith.mulf %685, %952 : vector<1x128xf32>
    %960 = vector.extract_strided_slice %684 {offsets = [30, 0], sizes = [1, 128], strides = [1, 1]} : vector<32x128xf32> to vector<1x128xf32>
    %961 = arith.addf %959, %960 : vector<1x128xf32>
    %962 = arith.mulf %686, %957 : vector<1x128xf32>
    %cst_469 = arith.constant 1.000000e+00 : f32
    %963 = vector.broadcast %cst_469 : f32 to vector<1x128xf32>
    %964 = arith.subf %963, %686 : vector<1x128xf32>
    %965 = arith.mulf %964, %952 : vector<1x128xf32>
    %966 = arith.addf %962, %965 : vector<1x128xf32>
    %c30_470 = arith.constant 30 : index
    %c0_471 = arith.constant 0 : index
    %967 = vector.load %arg7[%c30_470, %c0_471] : memref<32x128xf32, #tpu.memory_space<vmem>>, vector<1x128xf32>
    tpu.vector_store %arg7[%c30_470, %c0_471], %966 {strides = array<i32>} : memref<32x128xf32, #tpu.memory_space<vmem>>, vector<1x128xf32>,
    %968 = arith.mulf %685, %961 : vector<1x128xf32>
    %969 = vector.extract_strided_slice %684 {offsets = [31, 0], sizes = [1, 128], strides = [1, 1]} : vector<32x128xf32> to vector<1x128xf32>
    %970 = arith.addf %968, %969 : vector<1x128xf32>
    %971 = arith.mulf %686, %966 : vector<1x128xf32>
    %cst_472 = arith.constant 1.000000e+00 : f32
    %972 = vector.broadcast %cst_472 : f32 to vector<1x128xf32>
    %973 = arith.subf %972, %686 : vector<1x128xf32>
    %974 = arith.mulf %973, %961 : vector<1x128xf32>
    %975 = arith.addf %971, %974 : vector<1x128xf32>
    %c31_473 = arith.constant 31 : index
    %c0_474 = arith.constant 0 : index
    %976 = vector.load %arg7[%c31_473, %c0_474] : memref<32x128xf32, #tpu.memory_space<vmem>>, vector<1x128xf32>
    tpu.vector_store %arg7[%c31_473, %c0_474], %975 {strides = array<i32>} : memref<32x128xf32, #tpu.memory_space<vmem>>, vector<1x128xf32>,
    %c0_475 = arith.constant 0 : index
    %c0_476 = arith.constant 0 : index
    %977 = vector.load %arg11[%c0_475, %c0_476] : memref<1x128xf32, #tpu.memory_space<vmem>>, vector<1x128xf32>
    tpu.vector_store %arg11[%c0_475, %c0_476], %970 {strides = array<i32>} : memref<1x128xf32, #tpu.memory_space<vmem>>, vector<1x128xf32>,
    %c0_477 = arith.constant 0 : index
    %c0_478 = arith.constant 0 : index
    %978 = vector.load %arg12[%c0_477, %c0_478] : memref<1x128xf32, #tpu.memory_space<vmem>>, vector<1x128xf32>
    tpu.vector_store %arg12[%c0_477, %c0_478], %975 {strides = array<i32>} : memref<1x128xf32, #tpu.memory_space<vmem>>, vector<1x128xf32>,
    return
  }
  func.func @transform_0(%arg0: i32) -> (i32, i32) {
    %c0_i32 = arith.constant 0 : i32
    %c0_i32_0 = arith.constant 0 : i32
    return %arg0, %c0_i32 : i32, i32
  }
  func.func @transform_1(%arg0: i32) -> (i32, i32) {
    %c0_i32 = arith.constant 0 : i32
    %c0_i32_0 = arith.constant 0 : i32
    %c0_i32_1 = arith.constant 0 : i32
    return %c0_i32, %c0_i32_0 : i32, i32
  }
  func.func @transform_2(%arg0: i32) -> (i32, i32) {
    %c0_i32 = arith.constant 0 : i32
    %c0_i32_0 = arith.constant 0 : i32
    %c0_i32_1 = arith.constant 0 : i32
    return %c0_i32, %c0_i32_0 : i32, i32
  }
  func.func @transform_3(%arg0: i32) -> (i32, i32) {
    %c0_i32 = arith.constant 0 : i32
    %c0_i32_0 = arith.constant 0 : i32
    %c0_i32_1 = arith.constant 0 : i32
    return %c0_i32, %c0_i32_0 : i32, i32
  }
  func.func @transform_4(%arg0: i32) -> (i32, i32) {
    %c0_i32 = arith.constant 0 : i32
    %c0_i32_0 = arith.constant 0 : i32
    %c0_i32_1 = arith.constant 0 : i32
    return %c0_i32, %c0_i32_0 : i32, i32
  }
  func.func @transform_5(%arg0: i32) -> (i32, i32) {
    %c0_i32 = arith.constant 0 : i32
    %c0_i32_0 = arith.constant 0 : i32
    return %arg0, %c0_i32 : i32, i32
  }
  func.func @transform_6(%arg0: i32) -> (i32, i32) {
    %c0_i32 = arith.constant 0 : i32
    %c0_i32_0 = arith.constant 0 : i32
    return %arg0, %c0_i32 : i32, i32
  }
}

</mosaic_0001>

<bundles_post_ra>
// kernel: tpu_custom_call.1
= control target key start
LH: loop header
LB: loop body
LE: loop exit
PB: predicated region body
PF: predicated region fallthrough
CT: control target
= control target key end

     0   :  { %12 = vsyncpa [#allocation9], 0  ;;  %s3102_s0 = inlined_call_operand.hbm [shape: f32[64,128], index: 0, kind: input, shape index: {}]   ;;  %s3103_s1 = inlined_call_operand.hbm [shape: bf16[128,128], index: 1, kind: input, shape index: {}]   ;;  %s3104_s2 = inlined_call_operand.hbm [shape: f32[128,128], index: 2, kind: input, shape index: {}]   ;;  %s3105_s3 = inlined_call_operand.vmem [shape: f32[1,128], index: 3, kind: input, shape index: {}]   ;;  %s3106_s4 = inlined_call_operand.vmem [shape: f32[1,128], index: 4, kind: input, shape index: {}]   ;;  %s3107_s5 = inlined_call_operand.hbm [shape: f32[64,128], index: 5, kind: output, shape index: {0}]   ;;  %s3108_s6 = inlined_call_operand.hbm [shape: f32[64,128], index: 6, kind: output, shape index: {1}]  }
   0x1   :  { %14 = vsyncpa [#allocation9 + $0x1], 0 }
   0x2   :  { %15 = vsyncpa [#allocation12], 0 }
   0x3   :  { %16 = vsyncpa [#allocation10], 0 }
   0x4   :  { %18 = vsyncpa [#allocation10 + $0x1], 0 }
   0x5   :  { %19 = vsyncpa [#allocation16], 0 }
   0x6   :  { %21 = vsyncpa [#allocation16 + $0x1], 0  ;;  %s2310_s21 = smov 0   ;;  %s2312_s22 = smov 0  }
   0x7   :  { %s2314_s23 = smov 0   ;;  %s2316_s24 = smov 0  }
   0x8 LB: > { %s2331_s25 = sadd.s32 4294967295, %s2262_s24   ;;  %s1821_s26 = sadd.s32 4294967294, %s2262_s24   ;;  %s2262_s24 = sphi %s2316_s24, %s3125_s24   ;;  %s2258_s23 = sphi %s2314_s23, %s3124_s23   ;;  %s2254_s22 = sphi %s2312_s22, %s3123_s22   ;;  %s2250_s21 = sphi %s2310_s21, %s3122_s21  }
   0x9   : > { %p47_p0 = scmp.ne.s32.totalorder %s2254_s22, %s2250_s21  ;;  %p48_p1 = scmp.eq.s32.totalorder %s2331_s25, 0 }
   0xa   : > { %p155_p2 = scmp.eq.s32.totalorder %s2331_s25, 1  ;;  %p161_p3 = scmp.eq.s32.totalorder %s1821_s26, 1 }
   0xb   : > { %p2340_p4 = por %p48_p1, %p47_p0  ;;  %p1822_p5 = scmp.ge.s32.totalorder %s2262_s24, 1 }
   0xc   : > { %p2345_p6 = por %p161_p3, %p47_p0  ;;  %p194_p7 = scmp.lt.s32.totalorder %s2262_s24, 3 }
   0xd   : > { %s205_s7 = sshll.u32 %s3103_s1, 4  ;;  %s2264_s9 = smov [#allocation11]   ;;  %s206_s7 = int_to_ptr.hbm [resolvable:$true] %s205_s7 }
   0xe   : > { %p2354_p9 = pnand %p1822_p5, %p194_p7  ;;  %s207_s10 = sshll.u32 %s2264_s9, 4  ;;  %s208_s10 = int_to_ptr.vmem [resolvable:$true] %s207_s10 }
   0xf   : > { %s219_s13 = sshll.u32 %s3104_s2, 4  ;;  %s2265_s14 = smov 64   ;;  %s220_s13 = int_to_ptr.hbm [resolvable:$true] %s219_s13 }
  0x10   : > { %p1995_p10 = pneg %p2354_p9  ;;  %s2266_s15 = smov 4  }
  0x11   : > { %s2267_s16 = smov [#allocation13]   ;;  %s3109_s18 = smov 128  }
  0x12   : > { %p1996_p11 = pnand %p1995_p10, %p48_p1  ;;  %s221_s17 = sshll.u32 %s2267_s16, 4  ;;  %s222_s17 = int_to_ptr.vmem [resolvable:$true] %s221_s17 }
  0x13   : > { %s3110_s19 = smov 8   ;;  %s2370_s20 = sadd.s32 1, %s2262_s24  }
  0x14   : > { %1998 = dma.hbm_to_vmem [thread:$0]  (!%p1996_p11), %s206_s7, 1024, %s208_s10, [#allocation12], %s2265_s14, %s2265_s14, %s2266_s15  }
  0x15   : > { %2001 = dma.hbm_to_vmem [thread:$0]  (!%p1996_p11), %s220_s13, 2048, %s222_s17, [#allocation12], %s3109_s18, %s3109_s18, %s3110_s19  }
  0x16   : > { %s31_s26 = ssub.s32 %s2262_s24, %s2370_s20  ;;  %s34_s29 = sadd.s32 1, %s2258_s23 }
  0x17   : > { %p32_p13 = scmp.eq.s32.totalorder %s31_s26, 0  ;;  %p41_p0 = scmp.ne.s32.totalorder %s2258_s23, %s2254_s22 }
  0x18   : > { %p42_p3 = scmp.eq.s32.totalorder %s2262_s24, 0  ;;  %p2015_p10 = scmp.lt.s32.totalorder %s2262_s24, 2 }
  0x19   : > { %s2379_s30 = scalar_select %p32_p13, %s2258_s23, %s34_s29  }
  0x1a   : > { %p43_p5 = por %p42_p3, %p41_p0  ;;  %p2383_p7 = por %p155_p2, %p41_p0 }
  0x1b   : > { %s241_s9 = sand.u32 1, %s2258_s23   ;;  %s1970_s11 = sshll.u32 %s2262_s24, 5 }
  0x1c   : > { %s1826_s10 = sshll.u32 %s241_s9, 5  ;;  %s250_s14 = scalar_lea.hbm %s3102_s0, %s1970_s11 }
  0x1d   : > { %s245_s15 = scalar_lea.vmem [#allocation8], %s1826_s10  ;;  %s251_s17 = sshll.u32 %s250_s14, 4  ;;  %s252_s17 = int_to_ptr.hbm [resolvable:$true] %s251_s17 }
  0x1e   : > { %s253_s16 = sshll.u32 %s245_s15, 4  ;;  %p2393_p11 = pnand %p2015_p10, %p43_p5  ;;  %s254_s16 = int_to_ptr.vmem [resolvable:$true] %s253_s16 }
  0x1f   : > { %s242_s29 = scalar_lea.sflag [#allocation9], %s241_s9  ;;  %s2130_s18 = sshra.s32 %s252_s17, 4  ;;  %s2131_s18 = int_to_ptr.hbm [resolvable:$true] %s2130_s18 }
  0x20   : > { %s2132_s19 = scalar_lea.hbm %s2131_s18, 32  ;;  %p2134_p13 = pneg %p2393_p11 }
  0x21   : > { %p2133_p2 = scmp.ne.s32.totalorder %s2131_s18, %s2132_s19  ;;  %s2137_s12 = scalar_lea.hbm %s3102_s0, 64 }
  0x22   : > { %p2138_p5 = scmp.lt.s32.totalorder %s2131_s18, %s3102_s0  ;;  %p2139_p10 = scmp.lt.s32.totalorder %s2137_s12, %s2132_s19 }
  0x23   : > { %p2135_p0 = pnand %p2134_p13, %p2133_p2 }
  0x24   : > { %p2140_p12 = por %p2139_p10, %p2138_p5 }
  0x25   : > { %p2136_p3 = pneg %p2135_p0 }
  0x27   : > { %p2141_p8 = pnand %p2140_p12, %p2136_p3 }
  0x29   : > { %2144 = shalt.err (!%p2141_p8)
}
  0x2a   : > { %s3117_s9 = smov 8   ;;  %s3118_s15 = smov 128  }
  0x2b   : > { %2005 = dma.hbm_to_vmem [thread:$0]  (!%p2393_p11), %s252_s17, 512, %s254_s16, %s242_s29, %s3118_s15, %s3118_s15, %s3117_s9  }
  0x2c   : > { %265 = sbr.rel (%p2354_p9) target bundleno = 2442 (0x98a), region = 40  ;;  %s2413_s11 = sand.u32 (!%p2354_p9), 1, %s2254_s22  }
  0x2d   : > { %s1830_s18 = sshll.u32 (!%p2354_p9), %s2413_s11, 5  ;;  %s268_s19 = scalar_lea.sflag (!%p2354_p9), [#allocation9], %s2413_s11 }
  0x2e   : > { %s2417_s10 = scalar_lea.vmem (!%p2354_p9), [#allocation8], %s1830_s18 }
  0x31   : > { %2233 = dma.done.wait (%p2340_p4), %s268_s19, 512  }
  0x32   : > { %2235 = vsyncadd (%p2340_p4), %s268_s19, 4294966784 }
  0x33   : > { %2237 = dma.done.wait (%p48_p1), [#allocation12], 3072  }
  0x34   : > { %2239 = vsyncadd (%p48_p1), [#allocation12], 4294964224  ;;  %s2427_s8 = scalar_lea.vmem [#allocation14], %s1830_s18  ;;  %s2429_s16 = scalar_lea.vmem [#allocation15], %s1830_s18 }
  0x35   : > { %p3119_p8 = scmp.ne.s32.totalorder %s2331_s25, 0 }
  0x37   : > { %322 = sbr.rel (%p3119_p8) target bundleno = 66 (0x42), region = 56 }
  0x3c   : > { %v2270_v0 = vmov 0.0  }
  0x3d   : > { %323 = vst [vmem:[#allocation2] sm:$0x1] %v2270_v0 }
  0x3e   : > { %324 = vst [vmem:[#allocation3] sm:$0x1] %v2270_v0 }
  0x3f   : > { %325 = vst [vmem:[#allocation4] sm:$0x1] %v2270_v0 }
  0x40   : > { %326 = vst [vmem:[#allocation5] sm:$0x1] %v2270_v0 }
  0x41   : > { %327 = vst [vmem:[#allocation6] sm:$0x1] %v2270_v0 }
  0x42 PF: > { %v2433_v1 = vld [vmem:[#allocation11 + $0x38] sm:$0xff]  ;;  %v2436_v2 = vld [vmem:[#allocation11 + $0x30] sm:$0xff]  ;;  %v2442_v4 = vld [vmem:[#allocation11 + $0x28] sm:$0xff]  ;;  %v2271_v18 = vmov 0.0   ;;  %v2272_v20 = vmov 1.0|1.0  }
  0x43   : > { %398 = vmatpush.bf16.msra.mxu1 %v2433_v1  ;;  %454 = vmatpush.bf16.msra.mxu2 %v2433_v1  ;;  %v2448_v5 = vld [vmem:[#allocation11 + $0x20] sm:$0xff]  ;;  %v2454_v6 = vld [vmem:[#allocation11 + $0x18] sm:$0xff]  ;;  %v2460_v7 = vld [vmem:[#allocation11 + $0x10] sm:$0xff]  ;;  %s3111_s12 = sshll.u32 %s2331_s25, 5  ;;  %s1676_s15 = sshll.u32 %s2427_s8, 4  ;;  %s2993_s15 = int_to_ptr.vmem [resolvable:$true] %s1676_s15 }
  0x44   : > { %v344_v3 = vld [vmem:[#allocation2] sm:$0x1]  ;;  %482 = vmatpush.bf16.msra.mxu3 %v2433_v1  ;;  %510 = vmatpush.bf16.msra.mxu0 %v2433_v1  ;;  %v2468_v10 = vld [vmem:[#allocation11 + $0x8] sm:$0xff]  ;;  %v2475_v15 = vld [vmem:[#allocation11] sm:$0xff]  ;;  %s1675_s9 = scalar_lea.hbm %s3107_s5, %s3111_s12  ;;  %s1659_s19 = scalar_lea.sflag [#allocation10], %s2413_s11 }
  0x45   : > { %347 = vst [vmem:[#allocation7] sm:$0x1] %v344_v3  ;;  %v2465_v8 = vld [vmem:[#allocation3] sm:$0x1]  ;;  %v417_v14 = vsub.f32 1.0, %v344_v3  ;;  %v349_v17 = vpack.c.bf16 %v344_v3, %v344_v3  ;;  %s1678_s18 = sshll.u32 %s1675_s9, 4  ;;  %s1679_s18 = int_to_ptr.hbm [resolvable:$true] %s1678_s18 }
  0x46   : > { %v346_v9 = vld [vmem:[#allocation4] sm:$0x1]  ;;  %v415_v12 = vmul.f32 0.141263, %v2465_v8  ;;  %v348_v21 = vld [vmem:[%s2417_s10] sm:$0x1] }
  0x47   : > { %399 = vmatpush.bf16.msra.mxu1 %v2436_v2  ;;  %455 = vmatpush.bf16.msra.mxu2 %v2436_v2  ;;  %v414_v11 = vmul.f32 0.858737, %v346_v9  ;;  %v412_v22 = vmul.f32 0.73742926, %v2465_v8  ;;  %v424_v33 = vld [vmem:[%s2417_s10 + $0x1] sm:$0x1] }
  0x48   : > { %483 = vmatpush.bf16.msra.mxu3 %v2436_v2  ;;  %511 = vmatpush.bf16.msra.mxu0 %v2436_v2  ;;  %v452_v45 = vld [vmem:[%s2417_s10 + $0x2] sm:$0x1]  ;;  %v480_v57 = vld [vmem:[%s2417_s10 + $0x3] sm:$0x1]  ;;  %s2174_s27 = sshra.s32 %s1679_s18, 4  ;;  %s2180_s13 = scalar_lea.hbm %s3107_s5, 64  ;;  %s2175_s27 = int_to_ptr.hbm [resolvable:$true] %s2174_s27 }
  0x49   : > { %v416_v13 = vadd.f32 %v415_v12, %v414_v11  ;;  %v508_v12 = vld [vmem:[%s2417_s10 + $0x4] sm:$0x1]  ;;  %s2176_s17 = scalar_lea.hbm %s2175_s27, 32  ;;  %p2181_p12 = scmp.lt.s32.totalorder %s2175_s27, %s3107_s5 }
  0x4a   : > { %p2177_p1 = scmp.ne.s32.totalorder %s2175_s27, %s2176_s17  ;;  %p2182_p11 = scmp.lt.s32.totalorder %s2180_s13, %s2176_s17 }
  0x4b   : > { %400 = vmatpush.bf16.msra.mxu1 %v2442_v4  ;;  %456 = vmatpush.bf16.msra.mxu2 %v2442_v4  ;;  %v2477_v16 = vmul.f32 %v417_v14, %v416_v13 }
  0x4c   : > { %484 = vmatpush.bf16.msra.mxu3 %v2442_v4  ;;  %512 = vmatpush.bf16.msra.mxu0 %v2442_v4  ;;  %p2178_p4 = pnand %p2177_p1, %p2383_p7  ;;  %p2183_p2 = por %p2182_p11, %p2181_p12 }
  0x4d   : > { %vm419_vm0 = vcmp.gt.f32.partialorder %v2477_v16, 1.0  ;;  %v442_v26 = vmul.f32 0.858737, %v2477_v16 }
  0x4e   : > { %v2486_v19 = vsel %vm419_vm0, 1.0, %v2271_v18  ;;  %vm1869_vm1 = vmpackc.low %vm419_vm0, %vm419_vm0  ;;  %p2179_p9 = pneg %p2178_p4 }
  0x4f   : > { %401 = vmatpush.bf16.msra.mxu1 %v2448_v5  ;;  %457 = vmatpush.bf16.msra.mxu2 %v2448_v5  ;;  %422 = vst [vmem:[%s2427_s8] sm:$0x1] %v2486_v19  ;;  %v445_v28 = vsub.f32 1.0, %v2486_v19 }
  0x50   : > { %485 = vmatpush.bf16.msra.mxu3 %v2448_v5  ;;  %513 = vmatpush.bf16.msra.mxu0 %v2448_v5  ;;  %423 = vst [vmem:[#allocation7 + $0x1] sm:$0x1] %v2486_v19  ;;  %p2184_p13 = pnand %p2183_p2, %p2179_p9 }
  0x53   : > { %402 = vmatpush.bf16.msra.mxu1 %v2454_v6  ;;  %458 = vmatpush.bf16.msra.mxu2 %v2454_v6 }
  0x54   : > { %486 = vmatpush.bf16.msra.mxu3 %v2454_v6  ;;  %514 = vmatpush.bf16.msra.mxu0 %v2454_v6 }
  0x57   : > { %403 = vmatpush.bf16.msra.mxu1 %v2460_v7  ;;  %459 = vmatpush.bf16.msra.mxu2 %v2460_v7 }
  0x58   : > { %487 = vmatpush.bf16.msra.mxu3 %v2460_v7  ;;  %515 = vmatpush.bf16.msra.mxu0 %v2460_v7 }
  0x5b   : > { %404 = vmatpush.bf16.msra.mxu1 %v2468_v10  ;;  %460 = vmatpush.bf16.msra.mxu2 %v2468_v10 }
  0x5c   : > { %488 = vmatpush.bf16.msra.mxu3 %v2468_v10  ;;  %516 = vmatpush.bf16.msra.mxu0 %v2468_v10 }
  0x5f   : > { %405 = vmatpush.bf16.msra.mxu1 %v2475_v15  ;;  %461 = vmatpush.bf16.msra.mxu2 %v2475_v15 }
  0x60   : > { %489 = vmatpush.bf16.msra.mxu3 %v2475_v15  ;;  %517 = vmatpush.bf16.msra.mxu0 %v2475_v15 }
  0x62   : > { %406 = vmatmul.bf16.vlgmr.msra.gmra.mxu1 %v349_v17 }
  0x63   : > { %426 = vmatpush.bf16.msrb.mxu1 %v2433_v1  ;;  %566 = vmatpush.bf16.msrb.mxu2 %v2433_v1 }
  0x64   : > { %594 = vmatpush.bf16.msrb.mxu3 %v2433_v1  ;;  %622 = vmatpush.bf16.msrb.mxu0 %v2433_v1 }
  0x67   : > { %427 = vmatpush.bf16.msrb.mxu1 %v2436_v2  ;;  %567 = vmatpush.bf16.msrb.mxu2 %v2436_v2 }
  0x68   : > { %595 = vmatpush.bf16.msrb.mxu3 %v2436_v2  ;;  %623 = vmatpush.bf16.msrb.mxu0 %v2436_v2 }
  0x6b   : > { %428 = vmatpush.bf16.msrb.mxu1 %v2442_v4  ;;  %568 = vmatpush.bf16.msrb.mxu2 %v2442_v4 }
  0x6c   : > { %596 = vmatpush.bf16.msrb.mxu3 %v2442_v4  ;;  %624 = vmatpush.bf16.msrb.mxu0 %v2442_v4 }
  0x6f   : > { %429 = vmatpush.bf16.msrb.mxu1 %v2448_v5  ;;  %569 = vmatpush.bf16.msrb.mxu2 %v2448_v5 }
  0x70   : > { %597 = vmatpush.bf16.msrb.mxu3 %v2448_v5  ;;  %625 = vmatpush.bf16.msrb.mxu0 %v2448_v5 }
  0x73   : > { %430 = vmatpush.bf16.msrb.mxu1 %v2454_v6  ;;  %570 = vmatpush.bf16.msrb.mxu2 %v2454_v6 }
  0x74   : > { %598 = vmatpush.bf16.msrb.mxu3 %v2454_v6  ;;  %626 = vmatpush.bf16.msrb.mxu0 %v2454_v6 }
  0x77   : > { %431 = vmatpush.bf16.msrb.mxu1 %v2460_v7  ;;  %571 = vmatpush.bf16.msrb.mxu2 %v2460_v7 }
  0x78   : > { %599 = vmatpush.bf16.msrb.mxu3 %v2460_v7  ;;  %627 = vmatpush.bf16.msrb.mxu0 %v2460_v7 }
  0x7b   : > { %432 = vmatpush.bf16.msrb.mxu1 %v2468_v10  ;;  %572 = vmatpush.bf16.msrb.mxu2 %v2468_v10 }
  0x7c   : > { %600 = vmatpush.bf16.msrb.mxu3 %v2468_v10  ;;  %628 = vmatpush.bf16.msrb.mxu0 %v2468_v10 }
  0x7f   : > { %433 = vmatpush.bf16.msrb.mxu1 %v2475_v15  ;;  %573 = vmatpush.bf16.msrb.mxu2 %v2475_v15 }
  0x80   : > { %601 = vmatpush.bf16.msrb.mxu3 %v2475_v15  ;;  %629 = vmatpush.bf16.msrb.mxu0 %v2475_v15 }
  0x82   : > { %1870 = vmatmul.msk.bf16.vlgmr.msrb.gmra.mxu1 %vm1869_vm1, %v2272_v20 }
  0x83   : > { %538 = vmatpush.bf16.msra.mxu1 %v2433_v1 }
  0x87   : > { %539 = vmatpush.bf16.msra.mxu1 %v2436_v2 }
  0x8b   : > { %540 = vmatpush.bf16.msra.mxu1 %v2442_v4 }
  0x8f   : > { %541 = vmatpush.bf16.msra.mxu1 %v2448_v5 }
  0x93   : > { %542 = vmatpush.bf16.msra.mxu1 %v2454_v6 }
  0x97   : > { %543 = vmatpush.bf16.msra.mxu1 %v2460_v7 }
  0x9b   : > { %544 = vmatpush.bf16.msra.mxu1 %v2468_v10 }
  0x9f   : > { %545 = vmatpush.bf16.msra.mxu1 %v2475_v15 }
  0xa3   : > { %650 = vmatpush.bf16.msrb.mxu1 %v2433_v1 }
  0xa7   : > { %651 = vmatpush.bf16.msrb.mxu1 %v2436_v2 }
  0xab   : > { %652 = vmatpush.bf16.msrb.mxu1 %v2442_v4 }
  0xaf   : > { %653 = vmatpush.bf16.msrb.mxu1 %v2448_v5 }
  0xb3   : > { %654 = vmatpush.bf16.msrb.mxu1 %v2454_v6 }
  0xb7   : > { %655 = vmatpush.bf16.msrb.mxu1 %v2460_v7 }
  0xbb   : > { %656 = vmatpush.bf16.msrb.mxu1 %v2468_v10 }
  0xbf   : > { %657 = vmatpush.bf16.msrb.mxu1 %v2475_v15 }
  0xdf   : > { %v407_v23 = vpop.f32.mrf.mxu1 }
  0xe0   : > { %v411_v24 = vadd.f32 %v407_v23, %v348_v21 }
  0xe2   : > { %v413_v25 = vadd.f32 %v412_v22, %v411_v24 }
  0xe4   : > { %v443_v27 = vmul.f32 0.141263, %v413_v25  ;;  %v440_v36 = vmul.f32 0.73742926, %v413_v25 }
  0xe6   : > { %v444_v29 = vadd.f32 %v443_v27, %v442_v26  ;;  %v536_v27 = vld [vmem:[%s2417_s10 + $0x5] sm:$0x1] }
  0xe7   : > { %v409_v30 = vpop.f32.mrf.mxu1 }
  0xe8   : > { %v446_v31 = vmul.f32 %v445_v28, %v444_v29 }
  0xea   : > { %vm447_vm2 = vcmp.gt.f32.partialorder %v446_v31, 1.0  ;;  %v470_v38 = vmul.f32 0.858737, %v446_v31 }
  0xeb   : > { %v1871_v32 = vsel %vm447_vm2, 1.0, %v2271_v18  ;;  %vm1872_vm3 = vmpackc.low %vm447_vm2, %vm447_vm2 }
  0xec   : > { %450 = vst [vmem:[%s2427_s8 + $0x1] sm:$0x1] %v1871_v32  ;;  %1873 = vmatmul.msk.bf16.vlgmr.msra.gmra.mxu2 %vm1872_vm3, %v2272_v20  ;;  %v473_v40 = vsub.f32 1.0, %v1871_v32 }
  0xed   : > { %451 = vst [vmem:[#allocation7 + $0x2] sm:$0x1] %v1871_v32  ;;  %678 = vmatpush.bf16.msra.mxu2 %v2433_v1 }
  0xf1   : > { %679 = vmatpush.bf16.msra.mxu2 %v2436_v2 }
  0xf5   : > { %680 = vmatpush.bf16.msra.mxu2 %v2442_v4 }
  0xf9   : > { %681 = vmatpush.bf16.msra.mxu2 %v2448_v5 }
  0xfd   : > { %682 = vmatpush.bf16.msra.mxu2 %v2454_v6 }
  0xff   : > { %v435_v34 = vpop.f32.mrf.mxu1 }
 0x100   : > { %v439_v35 = vadd.f32 %v435_v34, %v424_v33 }
 0x101   : > { %683 = vmatpush.bf16.msra.mxu2 %v2460_v7 }
 0x102   : > { %v441_v37 = vadd.f32 %v440_v36, %v439_v35 }
 0x104   : > { %v471_v39 = vmul.f32 0.141263, %v441_v37  ;;  %v468_v48 = vmul.f32 0.73742926, %v441_v37 }
 0x105   : > { %684 = vmatpush.bf16.msra.mxu2 %v2468_v10 }
 0x106   : > { %v472_v41 = vadd.f32 %v471_v39, %v470_v38  ;;  %v564_v39 = vld [vmem:[%s2417_s10 + $0x6] sm:$0x1] }
 0x107   : > { %v437_v42 = vpop.f32.mrf.mxu1 }
 0x108   : > { %v474_v43 = vmul.f32 %v473_v40, %v472_v41 }
 0x109   : > { %685 = vmatpush.bf16.msra.mxu2 %v2475_v15 }
 0x10a   : > { %vm475_vm4 = vcmp.gt.f32.partialorder %v474_v43, 1.0  ;;  %v498_v50 = vmul.f32 0.858737, %v474_v43 }
 0x10b   : > { %v1874_v44 = vsel %vm475_vm4, 1.0, %v2271_v18  ;;  %vm1875_vm5 = vmpackc.low %vm475_vm4, %vm475_vm4 }
 0x10c   : > { %478 = vst [vmem:[%s2427_s8 + $0x2] sm:$0x1] %v1874_v44  ;;  %1876 = vmatmul.msk.bf16.vlgmr.msra.gmra.mxu3 %vm1875_vm5, %v2272_v20  ;;  %v501_v52 = vsub.f32 1.0, %v1874_v44 }
 0x10d   : > { %479 = vst [vmem:[#allocation7 + $0x3] sm:$0x1] %v1874_v44  ;;  %706 = vmatpush.bf16.msra.mxu3 %v2433_v1 }
 0x111   : > { %707 = vmatpush.bf16.msra.mxu3 %v2436_v2 }
 0x115   : > { %708 = vmatpush.bf16.msra.mxu3 %v2442_v4 }
 0x119   : > { %709 = vmatpush.bf16.msra.mxu3 %v2448_v5 }
 0x11d   : > { %710 = vmatpush.bf16.msra.mxu3 %v2454_v6 }
 0x121   : > { %711 = vmatpush.bf16.msra.mxu3 %v2460_v7 }
 0x125   : > { %712 = vmatpush.bf16.msra.mxu3 %v2468_v10 }
 0x129   : > { %713 = vmatpush.bf16.msra.mxu3 %v2475_v15 }
 0x16f   : > { %v463_v46 = vpop.f32.mrf.mxu2 }
 0x170   : > { %v467_v47 = vadd.f32 %v463_v46, %v452_v45 }
 0x172   : > { %v469_v49 = vadd.f32 %v468_v48, %v467_v47 }
 0x174   : > { %v499_v51 = vmul.f32 0.141263, %v469_v49  ;;  %v496_v60 = vmul.f32 0.73742926, %v469_v49 }
 0x176   : > { %v500_v53 = vadd.f32 %v499_v51, %v498_v50  ;;  %v592_v51 = vld [vmem:[%s2417_s10 + $0x7] sm:$0x1] }
 0x177   : > { %v465_v54 = vpop.f32.mrf.mxu2 }
 0x178   : > { %v502_v55 = vmul.f32 %v501_v52, %v500_v53 }
 0x17a   : > { %vm503_vm6 = vcmp.gt.f32.partialorder %v502_v55, 1.0  ;;  %v526_v62 = vmul.f32 0.858737, %v502_v55 }
 0x17b   : > { %v1877_v56 = vsel %vm503_vm6, 1.0, %v2271_v18  ;;  %vm1878_vm7 = vmpackc.low %vm503_vm6, %vm503_vm6 }
 0x17c   : > { %506 = vst [vmem:[%s2427_s8 + $0x3] sm:$0x1] %v1877_v56  ;;  %1879 = vmatmul.msk.bf16.vlgmr.msra.gmra.mxu0 %vm1878_vm7, %v2272_v20  ;;  %v529_v0 = vsub.f32 1.0, %v1877_v56 }
 0x17d   : > { %507 = vst [vmem:[#allocation7 + $0x4] sm:$0x1] %v1877_v56  ;;  %734 = vmatpush.bf16.msra.mxu0 %v2433_v1 }
 0x181   : > { %735 = vmatpush.bf16.msra.mxu0 %v2436_v2 }
 0x185   : > { %736 = vmatpush.bf16.msra.mxu0 %v2442_v4 }
 0x189   : > { %737 = vmatpush.bf16.msra.mxu0 %v2448_v5 }
 0x18d   : > { %738 = vmatpush.bf16.msra.mxu0 %v2454_v6 }
 0x18f   : > { %v491_v58 = vpop.f32.mrf.mxu3 }
 0x190   : > { %v495_v59 = vadd.f32 %v491_v58, %v480_v57 }
 0x191   : > { %739 = vmatpush.bf16.msra.mxu0 %v2460_v7 }
 0x192   : > { %v497_v61 = vadd.f32 %v496_v60, %v495_v59 }
 0x194   : > { %v527_v63 = vmul.f32 0.141263, %v497_v61  ;;  %v524_v16 = vmul.f32 0.73742926, %v497_v61 }
 0x195   : > { %740 = vmatpush.bf16.msra.mxu0 %v2468_v10 }
 0x196   : > { %v528_v3 = vadd.f32 %v527_v63, %v526_v62  ;;  %v620_v63 = vld [vmem:[%s2417_s10 + $0x8] sm:$0x1] }
 0x197   : > { %v493_v8 = vpop.f32.mrf.mxu3 }
 0x198   : > { %v530_v9 = vmul.f32 %v529_v0, %v528_v3 }
 0x199   : > { %741 = vmatpush.bf16.msra.mxu0 %v2475_v15 }
 0x19a   : > { %vm531_vm8 = vcmp.gt.f32.partialorder %v530_v9, 1.0  ;;  %v554_v19 = vmul.f32 0.858737, %v530_v9 }
 0x19b   : > { %v1880_v11 = vsel %vm531_vm8, 1.0, %v2271_v18  ;;  %vm1881_vm9 = vmpackc.low %vm531_vm8, %vm531_vm8 }
 0x19c   : > { %534 = vst [vmem:[%s2427_s8 + $0x4] sm:$0x1] %v1880_v11  ;;  %1882 = vmatmul.msk.bf16.vlgmr.msra.gmra.mxu1 %vm1881_vm9, %v2272_v20  ;;  %v557_v23 = vsub.f32 1.0, %v1880_v11 }
 0x19d   : > { %535 = vst [vmem:[#allocation7 + $0x5] sm:$0x1] %v1880_v11  ;;  %762 = vmatpush.bf16.msra.mxu1 %v2433_v1 }
 0x1a1   : > { %763 = vmatpush.bf16.msra.mxu1 %v2436_v2 }
 0x1a5   : > { %764 = vmatpush.bf16.msra.mxu1 %v2442_v4 }
 0x1a9   : > { %765 = vmatpush.bf16.msra.mxu1 %v2448_v5 }
 0x1ad   : > { %766 = vmatpush.bf16.msra.mxu1 %v2454_v6 }
 0x1b1   : > { %767 = vmatpush.bf16.msra.mxu1 %v2460_v7 }
 0x1b5   : > { %768 = vmatpush.bf16.msra.mxu1 %v2468_v10 }
 0x1b9   : > { %769 = vmatpush.bf16.msra.mxu1 %v2475_v15 }
 0x1f9   : > { %v519_v13 = vpop.f32.mrf.mxu0 }
 0x1fa   : > { %v523_v14 = vadd.f32 %v519_v13, %v508_v12 }
 0x1fc   : > { %v525_v17 = vadd.f32 %v524_v16, %v523_v14 }
 0x1fe   : > { %v555_v21 = vmul.f32 0.141263, %v525_v17  ;;  %v552_v30 = vmul.f32 0.73742926, %v525_v17 }
 0x200   : > { %v556_v22 = vadd.f32 %v555_v21, %v554_v19  ;;  %v648_v21 = vld [vmem:[%s2417_s10 + $0x9] sm:$0x1] }
 0x201   : > { %v521_v24 = vpop.f32.mrf.mxu0 }
 0x202   : > { %v558_v25 = vmul.f32 %v557_v23, %v556_v22 }
 0x204   : > { %vm559_vm10 = vcmp.gt.f32.partialorder %v558_v25, 1.0  ;;  %v582_v32 = vmul.f32 0.858737, %v558_v25 }
 0x205   : > { %v1883_v26 = vsel %vm559_vm10, 1.0, %v2271_v18  ;;  %vm1884_vm11 = vmpackc.low %vm559_vm10, %vm559_vm10 }
 0x206   : > { %562 = vst [vmem:[%s2427_s8 + $0x5] sm:$0x1] %v1883_v26  ;;  %1885 = vmatmul.msk.bf16.vlgmr.msrb.gmra.mxu2 %vm1884_vm11, %v2272_v20  ;;  %v585_v34 = vsub.f32 1.0, %v1883_v26 }
 0x207   : > { %563 = vst [vmem:[#allocation7 + $0x6] sm:$0x1] %v1883_v26  ;;  %790 = vmatpush.bf16.msrb.mxu2 %v2433_v1 }
 0x20b   : > { %791 = vmatpush.bf16.msrb.mxu2 %v2436_v2 }
 0x20f   : > { %792 = vmatpush.bf16.msrb.mxu2 %v2442_v4 }
 0x213   : > { %793 = vmatpush.bf16.msrb.mxu2 %v2448_v5 }
 0x217   : > { %794 = vmatpush.bf16.msrb.mxu2 %v2454_v6 }
 0x219   : > { %v547_v28 = vpop.f32.mrf.mxu1 }
 0x21a   : > { %v551_v29 = vadd.f32 %v547_v28, %v536_v27 }
 0x21b   : > { %795 = vmatpush.bf16.msrb.mxu2 %v2460_v7 }
 0x21c   : > { %v553_v31 = vadd.f32 %v552_v30, %v551_v29 }
 0x21e   : > { %v583_v33 = vmul.f32 0.141263, %v553_v31  ;;  %v580_v42 = vmul.f32 0.73742926, %v553_v31 }
 0x21f   : > { %796 = vmatpush.bf16.msrb.mxu2 %v2468_v10 }
 0x220   : > { %v584_v35 = vadd.f32 %v583_v33, %v582_v32  ;;  %v676_v33 = vld [vmem:[%s2417_s10 + $0xa] sm:$0x1] }
 0x221   : > { %v549_v36 = vpop.f32.mrf.mxu1 }
 0x222   : > { %v586_v37 = vmul.f32 %v585_v34, %v584_v35 }
 0x223   : > { %797 = vmatpush.bf16.msrb.mxu2 %v2475_v15 }
 0x224   : > { %vm587_vm12 = vcmp.gt.f32.partialorder %v586_v37, 1.0  ;;  %v610_v44 = vmul.f32 0.858737, %v586_v37 }
 0x225   : > { %v1886_v38 = vsel %vm587_vm12, 1.0, %v2271_v18  ;;  %vm1887_vm13 = vmpackc.low %vm587_vm12, %vm587_vm12 }
 0x226   : > { %590 = vst [vmem:[%s2427_s8 + $0x6] sm:$0x1] %v1886_v38  ;;  %1888 = vmatmul.msk.bf16.vlgmr.msrb.gmra.mxu3 %vm1887_vm13, %v2272_v20  ;;  %v613_v46 = vsub.f32 1.0, %v1886_v38 }
 0x227   : > { %591 = vst [vmem:[#allocation7 + $0x7] sm:$0x1] %v1886_v38  ;;  %818 = vmatpush.bf16.msrb.mxu3 %v2433_v1 }
 0x22b   : > { %819 = vmatpush.bf16.msrb.mxu3 %v2436_v2 }
 0x22f   : > { %820 = vmatpush.bf16.msrb.mxu3 %v2442_v4 }
 0x233   : > { %821 = vmatpush.bf16.msrb.mxu3 %v2448_v5 }
 0x237   : > { %822 = vmatpush.bf16.msrb.mxu3 %v2454_v6 }
 0x23b   : > { %823 = vmatpush.bf16.msrb.mxu3 %v2460_v7 }
 0x23f   : > { %824 = vmatpush.bf16.msrb.mxu3 %v2468_v10 }
 0x243   : > { %825 = vmatpush.bf16.msrb.mxu3 %v2475_v15 }
 0x289   : > { %v575_v40 = vpop.f32.mrf.mxu2 }
 0x28a   : > { %v579_v41 = vadd.f32 %v575_v40, %v564_v39 }
 0x28c   : > { %v581_v43 = vadd.f32 %v580_v42, %v579_v41 }
 0x28e   : > { %v611_v45 = vmul.f32 0.141263, %v581_v43  ;;  %v608_v54 = vmul.f32 0.73742926, %v581_v43 }
 0x290   : > { %v612_v47 = vadd.f32 %v611_v45, %v610_v44  ;;  %v704_v45 = vld [vmem:[%s2417_s10 + $0xb] sm:$0x1] }
 0x291   : > { %v577_v48 = vpop.f32.mrf.mxu2 }
 0x292   : > { %v614_v49 = vmul.f32 %v613_v46, %v612_v47 }
 0x294   : > { %vm615_vm14 = vcmp.gt.f32.partialorder %v614_v49, 1.0  ;;  %v638_v56 = vmul.f32 0.858737, %v614_v49 }
 0x295   : > { %v1889_v50 = vsel %vm615_vm14, 1.0, %v2271_v18  ;;  %vm1890_vm15 = vmpackc.low %vm615_vm14, %vm615_vm14 }
 0x296   : > { %618 = vst [vmem:[%s2427_s8 + $0x7] sm:$0x1] %v1889_v50  ;;  %1891 = vmatmul.msk.bf16.vlgmr.msrb.gmra.mxu0 %vm1890_vm15, %v2272_v20  ;;  %v641_v58 = vsub.f32 1.0, %v1889_v50 }
 0x297   : > { %619 = vst [vmem:[#allocation7 + $0x8] sm:$0x1] %v1889_v50  ;;  %846 = vmatpush.bf16.msrb.mxu0 %v2433_v1 }
 0x29b   : > { %847 = vmatpush.bf16.msrb.mxu0 %v2436_v2 }
 0x29f   : > { %848 = vmatpush.bf16.msrb.mxu0 %v2442_v4 }
 0x2a3   : > { %849 = vmatpush.bf16.msrb.mxu0 %v2448_v5 }
 0x2a7   : > { %850 = vmatpush.bf16.msrb.mxu0 %v2454_v6 }
 0x2a9   : > { %v603_v52 = vpop.f32.mrf.mxu3 }
 0x2aa   : > { %v607_v53 = vadd.f32 %v603_v52, %v592_v51 }
 0x2ab   : > { %851 = vmatpush.bf16.msrb.mxu0 %v2460_v7 }
 0x2ac   : > { %v609_v55 = vadd.f32 %v608_v54, %v607_v53 }
 0x2ae   : > { %v639_v57 = vmul.f32 0.141263, %v609_v55  ;;  %v636_v8 = vmul.f32 0.73742926, %v609_v55 }
 0x2af   : > { %852 = vmatpush.bf16.msrb.mxu0 %v2468_v10 }
 0x2b0   : > { %v640_v59 = vadd.f32 %v639_v57, %v638_v56  ;;  %v732_v57 = vld [vmem:[%s2417_s10 + $0xc] sm:$0x1] }
 0x2b1   : > { %v605_v60 = vpop.f32.mrf.mxu3 }
 0x2b2   : > { %v642_v61 = vmul.f32 %v641_v58, %v640_v59 }
 0x2b3   : > { %853 = vmatpush.bf16.msrb.mxu0 %v2475_v15 }
 0x2b4   : > { %vm643_vm0 = vcmp.gt.f32.partialorder %v642_v61, 1.0  ;;  %v666_v11 = vmul.f32 0.858737, %v642_v61 }
 0x2b5   : > { %v1892_v62 = vsel %vm643_vm0, 1.0, %v2271_v18  ;;  %vm1893_vm1 = vmpackc.low %vm643_vm0, %vm643_vm0 }
 0x2b6   : > { %646 = vst [vmem:[%s2427_s8 + $0x8] sm:$0x1] %v1892_v62  ;;  %1894 = vmatmul.msk.bf16.vlgmr.msrb.gmra.mxu1 %vm1893_vm1, %v2272_v20  ;;  %v669_v13 = vsub.f32 1.0, %v1892_v62 }
 0x2b7   : > { %647 = vst [vmem:[#allocation7 + $0x9] sm:$0x1] %v1892_v62  ;;  %874 = vmatpush.bf16.msrb.mxu1 %v2433_v1 }
 0x2bb   : > { %875 = vmatpush.bf16.msrb.mxu1 %v2436_v2 }
 0x2bf   : > { %876 = vmatpush.bf16.msrb.mxu1 %v2442_v4 }
 0x2c3   : > { %877 = vmatpush.bf16.msrb.mxu1 %v2448_v5 }
 0x2c7   : > { %878 = vmatpush.bf16.msrb.mxu1 %v2454_v6 }
 0x2cb   : > { %879 = vmatpush.bf16.msrb.mxu1 %v2460_v7 }
 0x2cf   : > { %880 = vmatpush.bf16.msrb.mxu1 %v2468_v10 }
 0x2d3   : > { %881 = vmatpush.bf16.msrb.mxu1 %v2475_v15 }
 0x313   : > { %v631_v0 = vpop.f32.mrf.mxu0 }
 0x314   : > { %v635_v3 = vadd.f32 %v631_v0, %v620_v63 }
 0x316   : > { %v637_v9 = vadd.f32 %v636_v8, %v635_v3 }
 0x318   : > { %v667_v12 = vmul.f32 0.141263, %v637_v9  ;;  %v664_v24 = vmul.f32 0.73742926, %v637_v9 }
 0x31a   : > { %v668_v14 = vadd.f32 %v667_v12, %v666_v11  ;;  %v760_v12 = vld [vmem:[%s2417_s10 + $0xd] sm:$0x1] }
 0x31b   : > { %v633_v16 = vpop.f32.mrf.mxu0 }
 0x31c   : > { %v670_v17 = vmul.f32 %v669_v13, %v668_v14 }
 0x31e   : > { %vm671_vm2 = vcmp.gt.f32.partialorder %v670_v17, 1.0  ;;  %v694_v26 = vmul.f32 0.858737, %v670_v17 }
 0x31f   : > { %v1895_v19 = vsel %vm671_vm2, 1.0, %v2271_v18  ;;  %vm1896_vm3 = vmpackc.low %vm671_vm2, %vm671_vm2 }
 0x320   : > { %674 = vst [vmem:[%s2427_s8 + $0x9] sm:$0x1] %v1895_v19  ;;  %1897 = vmatmul.msk.bf16.vlgmr.msra.gmra.mxu2 %vm1896_vm3, %v2272_v20  ;;  %v697_v28 = vsub.f32 1.0, %v1895_v19 }
 0x321   : > { %675 = vst [vmem:[#allocation7 + $0xa] sm:$0x1] %v1895_v19  ;;  %902 = vmatpush.bf16.msra.mxu2 %v2433_v1 }
 0x325   : > { %903 = vmatpush.bf16.msra.mxu2 %v2436_v2 }
 0x329   : > { %904 = vmatpush.bf16.msra.mxu2 %v2442_v4 }
 0x32d   : > { %905 = vmatpush.bf16.msra.mxu2 %v2448_v5 }
 0x331   : > { %906 = vmatpush.bf16.msra.mxu2 %v2454_v6 }
 0x333   : > { %v659_v22 = vpop.f32.mrf.mxu1 }
 0x334   : > { %v663_v23 = vadd.f32 %v659_v22, %v648_v21 }
 0x335   : > { %907 = vmatpush.bf16.msra.mxu2 %v2460_v7 }
 0x336   : > { %v665_v25 = vadd.f32 %v664_v24, %v663_v23 }
 0x338   : > { %v695_v27 = vmul.f32 0.141263, %v665_v25  ;;  %v692_v36 = vmul.f32 0.73742926, %v665_v25 }
 0x339   : > { %908 = vmatpush.bf16.msra.mxu2 %v2468_v10 }
 0x33a   : > { %v696_v29 = vadd.f32 %v695_v27, %v694_v26  ;;  %v788_v27 = vld [vmem:[%s2417_s10 + $0xe] sm:$0x1] }
 0x33b   : > { %v661_v30 = vpop.f32.mrf.mxu1 }
 0x33c   : > { %v698_v31 = vmul.f32 %v697_v28, %v696_v29 }
 0x33d   : > { %909 = vmatpush.bf16.msra.mxu2 %v2475_v15 }
 0x33e   : > { %vm699_vm4 = vcmp.gt.f32.partialorder %v698_v31, 1.0  ;;  %v722_v38 = vmul.f32 0.858737, %v698_v31 }
 0x33f   : > { %v1898_v32 = vsel %vm699_vm4, 1.0, %v2271_v18  ;;  %vm1899_vm5 = vmpackc.low %vm699_vm4, %vm699_vm4 }
 0x340   : > { %702 = vst [vmem:[%s2427_s8 + $0xa] sm:$0x1] %v1898_v32  ;;  %1900 = vmatmul.msk.bf16.vlgmr.msra.gmra.mxu3 %vm1899_vm5, %v2272_v20  ;;  %v725_v40 = vsub.f32 1.0, %v1898_v32 }
 0x341   : > { %703 = vst [vmem:[#allocation7 + $0xb] sm:$0x1] %v1898_v32  ;;  %930 = vmatpush.bf16.msra.mxu3 %v2433_v1 }
 0x345   : > { %931 = vmatpush.bf16.msra.mxu3 %v2436_v2 }
 0x349   : > { %932 = vmatpush.bf16.msra.mxu3 %v2442_v4 }
 0x34d   : > { %933 = vmatpush.bf16.msra.mxu3 %v2448_v5 }
 0x351   : > { %934 = vmatpush.bf16.msra.mxu3 %v2454_v6 }
 0x355   : > { %935 = vmatpush.bf16.msra.mxu3 %v2460_v7 }
 0x359   : > { %936 = vmatpush.bf16.msra.mxu3 %v2468_v10 }
 0x35d   : > { %937 = vmatpush.bf16.msra.mxu3 %v2475_v15 }
 0x3a3   : > { %v687_v34 = vpop.f32.mrf.mxu2 }
 0x3a4   : > { %v691_v35 = vadd.f32 %v687_v34, %v676_v33 }
 0x3a6   : > { %v693_v37 = vadd.f32 %v692_v36, %v691_v35 }
 0x3a8   : > { %v723_v39 = vmul.f32 0.141263, %v693_v37  ;;  %v720_v48 = vmul.f32 0.73742926, %v693_v37 }
 0x3aa   : > { %v724_v41 = vadd.f32 %v723_v39, %v722_v38  ;;  %v816_v39 = vld [vmem:[%s2417_s10 + $0xf] sm:$0x1] }
 0x3ab   : > { %v689_v42 = vpop.f32.mrf.mxu2 }
 0x3ac   : > { %v726_v43 = vmul.f32 %v725_v40, %v724_v41 }
 0x3ae   : > { %vm727_vm6 = vcmp.gt.f32.partialorder %v726_v43, 1.0  ;;  %v750_v50 = vmul.f32 0.858737, %v726_v43 }
 0x3af   : > { %v1901_v44 = vsel %vm727_vm6, 1.0, %v2271_v18  ;;  %vm1902_vm7 = vmpackc.low %vm727_vm6, %vm727_vm6 }
 0x3b0   : > { %730 = vst [vmem:[%s2427_s8 + $0xb] sm:$0x1] %v1901_v44  ;;  %1903 = vmatmul.msk.bf16.vlgmr.msra.gmra.mxu0 %vm1902_vm7, %v2272_v20  ;;  %v753_v52 = vsub.f32 1.0, %v1901_v44 }
 0x3b1   : > { %731 = vst [vmem:[#allocation7 + $0xc] sm:$0x1] %v1901_v44  ;;  %958 = vmatpush.bf16.msra.mxu0 %v2433_v1 }
 0x3b5   : > { %959 = vmatpush.bf16.msra.mxu0 %v2436_v2 }
 0x3b9   : > { %960 = vmatpush.bf16.msra.mxu0 %v2442_v4 }
 0x3bd   : > { %961 = vmatpush.bf16.msra.mxu0 %v2448_v5 }
 0x3c1   : > { %962 = vmatpush.bf16.msra.mxu0 %v2454_v6 }
 0x3c3   : > { %v715_v46 = vpop.f32.mrf.mxu3 }
 0x3c4   : > { %v719_v47 = vadd.f32 %v715_v46, %v704_v45 }
 0x3c5   : > { %963 = vmatpush.bf16.msra.mxu0 %v2460_v7 }
 0x3c6   : > { %v721_v49 = vadd.f32 %v720_v48, %v719_v47 }
 0x3c8   : > { %v751_v51 = vmul.f32 0.141263, %v721_v49  ;;  %v748_v60 = vmul.f32 0.73742926, %v721_v49 }
 0x3c9   : > { %964 = vmatpush.bf16.msra.mxu0 %v2468_v10 }
 0x3ca   : > { %v752_v53 = vadd.f32 %v751_v51, %v750_v50  ;;  %v844_v51 = vld [vmem:[%s2417_s10 + $0x10] sm:$0x1] }
 0x3cb   : > { %v717_v54 = vpop.f32.mrf.mxu3 }
 0x3cc   : > { %v754_v55 = vmul.f32 %v753_v52, %v752_v53 }
 0x3cd   : > { %965 = vmatpush.bf16.msra.mxu0 %v2475_v15 }
 0x3ce   : > { %vm755_vm8 = vcmp.gt.f32.partialorder %v754_v55, 1.0  ;;  %v778_v62 = vmul.f32 0.858737, %v754_v55 }
 0x3cf   : > { %v1904_v56 = vsel %vm755_vm8, 1.0, %v2271_v18  ;;  %vm1905_vm9 = vmpackc.low %vm755_vm8, %vm755_vm8 }
 0x3d0   : > { %758 = vst [vmem:[%s2427_s8 + $0xc] sm:$0x1] %v1904_v56  ;;  %1906 = vmatmul.msk.bf16.vlgmr.msra.gmra.mxu1 %vm1905_vm9, %v2272_v20  ;;  %v781_v0 = vsub.f32 1.0, %v1904_v56 }
 0x3d1   : > { %759 = vst [vmem:[#allocation7 + $0xd] sm:$0x1] %v1904_v56  ;;  %986 = vmatpush.bf16.msra.mxu1 %v2433_v1 }
 0x3d5   : > { %987 = vmatpush.bf16.msra.mxu1 %v2436_v2 }
 0x3d9   : > { %988 = vmatpush.bf16.msra.mxu1 %v2442_v4 }
 0x3dd   : > { %989 = vmatpush.bf16.msra.mxu1 %v2448_v5 }
 0x3e1   : > { %990 = vmatpush.bf16.msra.mxu1 %v2454_v6 }
 0x3e5   : > { %991 = vmatpush.bf16.msra.mxu1 %v2460_v7 }
 0x3e9   : > { %992 = vmatpush.bf16.msra.mxu1 %v2468_v10 }
 0x3ed   : > { %993 = vmatpush.bf16.msra.mxu1 %v2475_v15 }
 0x42d   : > { %v743_v58 = vpop.f32.mrf.mxu0 }
 0x42e   : > { %v747_v59 = vadd.f32 %v743_v58, %v732_v57  ;;  %v2749_v58 = vld [vmem:[#allocation11 + $0x30] sm:$0xff] }
 0x430   : > { %v749_v61 = vadd.f32 %v748_v60, %v747_v59  ;;  %v2752_v59 = vld [vmem:[#allocation11 + $0x28] sm:$0xff]  ;;  %v2755_v60 = vld [vmem:[#allocation11 + $0x20] sm:$0xff] }
 0x432   : > { %v779_v63 = vmul.f32 0.141263, %v749_v61  ;;  %v776_v16 = vmul.f32 0.73742926, %v749_v61  ;;  %v872_v61 = vld [vmem:[%s2417_s10 + $0x11] sm:$0x1] }
 0x434   : > { %v780_v3 = vadd.f32 %v779_v63, %v778_v62 }
 0x435   : > { %v745_v8 = vpop.f32.mrf.mxu0 }
 0x436   : > { %v782_v9 = vmul.f32 %v781_v0, %v780_v3  ;;  %v2759_v3 = vld [vmem:[#allocation11 + $0x18] sm:$0xff] }
 0x438   : > { %vm783_vm10 = vcmp.gt.f32.partialorder %v782_v9, 1.0  ;;  %v806_v19 = vmul.f32 0.858737, %v782_v9 }
 0x439   : > { %v1907_v11 = vsel %vm783_vm10, 1.0, %v2271_v18  ;;  %vm1908_vm11 = vmpackc.low %vm783_vm10, %vm783_vm10 }
 0x43a   : > { %786 = vst [vmem:[%s2427_s8 + $0xd] sm:$0x1] %v1907_v11  ;;  %1909 = vmatmul.msk.bf16.vlgmr.msrb.gmra.mxu2 %vm1908_vm11, %v2272_v20  ;;  %v809_v22 = vsub.f32 1.0, %v1907_v11 }
 0x43b   : > { %787 = vst [vmem:[#allocation7 + $0xe] sm:$0x1] %v1907_v11  ;;  %1014 = vmatpush.bf16.msrb.mxu2 %v2433_v1 }
 0x43f   : > { %1015 = vmatpush.bf16.msrb.mxu2 %v2436_v2 }
 0x443   : > { %1016 = vmatpush.bf16.msrb.mxu2 %v2442_v4 }
 0x447   : > { %1017 = vmatpush.bf16.msrb.mxu2 %v2448_v5 }
 0x44b   : > { %1018 = vmatpush.bf16.msrb.mxu2 %v2454_v6 }
 0x44d   : > { %v771_v13 = vpop.f32.mrf.mxu1 }
 0x44e   : > { %v775_v14 = vadd.f32 %v771_v13, %v760_v12  ;;  %v2762_v12 = vld [vmem:[#allocation11 + $0x10] sm:$0xff] }
 0x44f   : > { %1019 = vmatpush.bf16.msrb.mxu2 %v2460_v7 }
 0x450   : > { %v777_v17 = vadd.f32 %v776_v16, %v775_v14 }
 0x452   : > { %v807_v21 = vmul.f32 0.141263, %v777_v17  ;;  %v804_v30 = vmul.f32 0.73742926, %v777_v17 }
 0x453   : > { %1020 = vmatpush.bf16.msrb.mxu2 %v2468_v10 }
 0x454   : > { %v808_v23 = vadd.f32 %v807_v21, %v806_v19  ;;  %v2779_v21 = vld [vmem:[#allocation11] sm:$0xff] }
 0x455   : > { %v773_v24 = vpop.f32.mrf.mxu1 }
 0x456   : > { %v810_v25 = vmul.f32 %v809_v22, %v808_v23 }
 0x457   : > { %1021 = vmatpush.bf16.msrb.mxu2 %v2475_v15 }
 0x458   : > { %vm811_vm12 = vcmp.gt.f32.partialorder %v810_v25, 1.0  ;;  %v834_v32 = vmul.f32 0.858737, %v810_v25 }
 0x459   : > { %v1910_v26 = vsel %vm811_vm12, 1.0, %v2271_v18  ;;  %vm1911_vm13 = vmpackc.low %vm811_vm12, %vm811_vm12 }
 0x45a   : > { %814 = vst [vmem:[%s2427_s8 + $0xe] sm:$0x1] %v1910_v26  ;;  %1912 = vmatmul.msk.bf16.vlgmr.msrb.gmra.mxu3 %vm1911_vm13, %v2272_v20  ;;  %v837_v34 = vsub.f32 1.0, %v1910_v26 }
 0x45b   : > { %815 = vst [vmem:[#allocation7 + $0xf] sm:$0x1] %v1910_v26  ;;  %1042 = vmatpush.bf16.msrb.mxu3 %v2433_v1 }
 0x45f   : > { %1043 = vmatpush.bf16.msrb.mxu3 %v2436_v2 }
 0x463   : > { %1044 = vmatpush.bf16.msrb.mxu3 %v2442_v4 }
 0x467   : > { %1045 = vmatpush.bf16.msrb.mxu3 %v2448_v5 }
 0x46b   : > { %1046 = vmatpush.bf16.msrb.mxu3 %v2454_v6 }
 0x46f   : > { %1047 = vmatpush.bf16.msrb.mxu3 %v2460_v7 }
 0x473   : > { %1048 = vmatpush.bf16.msrb.mxu3 %v2468_v10 }
 0x477   : > { %1049 = vmatpush.bf16.msrb.mxu3 %v2475_v15 }
 0x4bd   : > { %v799_v28 = vpop.f32.mrf.mxu2 }
 0x4be   : > { %v803_v29 = vadd.f32 %v799_v28, %v788_v27 }
 0x4c0   : > { %v805_v31 = vadd.f32 %v804_v30, %v803_v29 }
 0x4c2   : > { %v835_v33 = vmul.f32 0.141263, %v805_v31  ;;  %v832_v42 = vmul.f32 0.73742926, %v805_v31 }
 0x4c4   : > { %v836_v35 = vadd.f32 %v835_v33, %v834_v32  ;;  %v928_v33 = vld [vmem:[%s2417_s10 + $0x13] sm:$0x1] }
 0x4c5   : > { %v801_v36 = vpop.f32.mrf.mxu2 }
 0x4c6   : > { %v838_v37 = vmul.f32 %v837_v34, %v836_v35 }
 0x4c8   : > { %vm839_vm14 = vcmp.gt.f32.partialorder %v838_v37, 1.0  ;;  %v862_v44 = vmul.f32 0.858737, %v838_v37 }
 0x4c9   : > { %v1913_v38 = vsel %vm839_vm14, 1.0, %v2271_v18  ;;  %vm1914_vm15 = vmpackc.low %vm839_vm14, %vm839_vm14 }
 0x4ca   : > { %842 = vst [vmem:[%s2427_s8 + $0xf] sm:$0x1] %v1913_v38  ;;  %1915 = vmatmul.msk.bf16.vlgmr.msrb.gmra.mxu0 %vm1914_vm15, %v2272_v20  ;;  %v865_v46 = vsub.f32 1.0, %v1913_v38 }
 0x4cb   : > { %843 = vst [vmem:[#allocation7 + $0x10] sm:$0x1] %v1913_v38  ;;  %1070 = vmatpush.bf16.msrb.mxu0 %v2433_v1 }
 0x4cf   : > { %1071 = vmatpush.bf16.msrb.mxu0 %v2436_v2 }
 0x4d3   : > { %1072 = vmatpush.bf16.msrb.mxu0 %v2442_v4 }
 0x4d7   : > { %1073 = vmatpush.bf16.msrb.mxu0 %v2448_v5 }
 0x4db   : > { %1074 = vmatpush.bf16.msrb.mxu0 %v2454_v6 }
 0x4dd   : > { %v827_v40 = vpop.f32.mrf.mxu3 }
 0x4de   : > { %v831_v41 = vadd.f32 %v827_v40, %v816_v39 }
 0x4df   : > { %1075 = vmatpush.bf16.msrb.mxu0 %v2460_v7 }
 0x4e0   : > { %v833_v43 = vadd.f32 %v832_v42, %v831_v41 }
 0x4e2   : > { %v863_v45 = vmul.f32 0.141263, %v833_v43  ;;  %v860_v54 = vmul.f32 0.73742926, %v833_v43 }
 0x4e3   : > { %1076 = vmatpush.bf16.msrb.mxu0 %v2468_v10 }
 0x4e4   : > { %v864_v47 = vadd.f32 %v863_v45, %v862_v44  ;;  %v956_v45 = vld [vmem:[%s2417_s10 + $0x14] sm:$0x1] }
 0x4e5   : > { %v829_v48 = vpop.f32.mrf.mxu3 }
 0x4e6   : > { %v866_v49 = vmul.f32 %v865_v46, %v864_v47 }
 0x4e7   : > { %1077 = vmatpush.bf16.msrb.mxu0 %v2475_v15 }
 0x4e8   : > { %vm867_vm0 = vcmp.gt.f32.partialorder %v866_v49, 1.0  ;;  %v890_v55 = vmul.f32 0.858737, %v866_v49 }
 0x4e9   : > { %v1916_v50 = vsel %vm867_vm0, 1.0, %v2271_v18  ;;  %vm1917_vm1 = vmpackc.low %vm867_vm0, %vm867_vm0 }
 0x4ea   : > { %870 = vst [vmem:[%s2427_s8 + $0x10] sm:$0x1] %v1916_v50  ;;  %1918 = vmatmul.msk.bf16.vlgmr.msrb.gmra.mxu1 %vm1917_vm1, %v2272_v20  ;;  %v893_v56 = vsub.f32 1.0, %v1916_v50 }
 0x4eb   : > { %871 = vst [vmem:[#allocation7 + $0x11] sm:$0x1] %v1916_v50  ;;  %1098 = vmatpush.bf16.msrb.mxu1 %v2433_v1 }
 0x4ef   : > { %1099 = vmatpush.bf16.msrb.mxu1 %v2436_v2 }
 0x4f3   : > { %1100 = vmatpush.bf16.msrb.mxu1 %v2442_v4 }
 0x4f7   : > { %1101 = vmatpush.bf16.msrb.mxu1 %v2448_v5 }
 0x4fb   : > { %1102 = vmatpush.bf16.msrb.mxu1 %v2454_v6 }
 0x4ff   : > { %1103 = vmatpush.bf16.msrb.mxu1 %v2460_v7  ;;  %v2746_v7 = vld [vmem:[#allocation11 + $0x38] sm:$0xff] }
 0x503   : > { %1104 = vmatpush.bf16.msrb.mxu1 %v2468_v10 }
 0x507   : > { %1105 = vmatpush.bf16.msrb.mxu1 %v2475_v15 }
 0x547   : > { %v855_v52 = vpop.f32.mrf.mxu0 }
 0x548   : > { %v859_v53 = vadd.f32 %v855_v52, %v844_v51 }
 0x54a   : > { %v861_v1 = vadd.f32 %v860_v54, %v859_v53 }
 0x54c   : > { %v891_v2 = vmul.f32 0.141263, %v861_v1  ;;  %v888_v0 = vmul.f32 0.73742926, %v861_v1 }
 0x54e   : > { %v892_v4 = vadd.f32 %v891_v2, %v890_v55  ;;  %v984_v2 = vld [vmem:[%s2417_s10 + $0x15] sm:$0x1] }
 0x54f   : > { %v857_v57 = vpop.f32.mrf.mxu0 }
 0x550   : > { %v894_v5 = vmul.f32 %v893_v56, %v892_v4 }
 0x552   : > { %vm895_vm2 = vcmp.gt.f32.partialorder %v894_v5, 1.0  ;;  %v918_v9 = vmul.f32 0.858737, %v894_v5 }
 0x553   : > { %v1919_v6 = vsel %vm895_vm2, 1.0, %v2271_v18  ;;  %vm1920_vm3 = vmpackc.low %vm895_vm2, %vm895_vm2 }
 0x554   : > { %898 = vst [vmem:[%s2427_s8 + $0x11] sm:$0x1] %v1919_v6  ;;  %1921 = vmatmul.msk.bf16.vlgmr.msra.gmra.mxu2 %vm1920_vm3, %v2272_v20  ;;  %v921_v13 = vsub.f32 1.0, %v1919_v6 }
 0x555   : > { %899 = vst [vmem:[#allocation7 + $0x12] sm:$0x1] %v1919_v6  ;;  %1126 = vmatpush.bf16.msra.mxu2 %v2746_v7 }
 0x559   : > { %1127 = vmatpush.bf16.msra.mxu2 %v2749_v58 }
 0x55d   : > { %1128 = vmatpush.bf16.msra.mxu2 %v2752_v59 }
 0x561   : > { %1129 = vmatpush.bf16.msra.mxu2 %v2755_v60 }
 0x565   : > { %1130 = vmatpush.bf16.msra.mxu2 %v2759_v3 }
 0x567   : > { %v883_v62 = vpop.f32.mrf.mxu1 }
 0x568   : > { %v887_v63 = vadd.f32 %v883_v62, %v872_v61 }
 0x569   : > { %1131 = vmatpush.bf16.msra.mxu2 %v2762_v12 }
 0x56a   : > { %v889_v8 = vadd.f32 %v888_v0, %v887_v63 }
 0x56c   : > { %v919_v11 = vmul.f32 0.141263, %v889_v8  ;;  %v916_v24 = vmul.f32 0.73742926, %v889_v8 }
 0x56d   : > { %1132 = vmatpush.bf16.msra.mxu2 %v2468_v10  ;;  %v2776_v10 = vld [vmem:[#allocation11 + $0x8] sm:$0xff] }
 0x56e   : > { %v920_v14 = vadd.f32 %v919_v11, %v918_v9  ;;  %v1012_v11 = vld [vmem:[%s2417_s10 + $0x16] sm:$0x1] }
 0x56f   : > { %v885_v16 = vpop.f32.mrf.mxu1 }
 0x570   : > { %v922_v17 = vmul.f32 %v921_v13, %v920_v14 }
 0x571   : > { %1133 = vmatpush.bf16.msra.mxu2 %v2475_v15  ;;  %v900_v15 = vld [vmem:[%s2417_s10 + $0x12] sm:$0x1] }
 0x572   : > { %vm923_vm4 = vcmp.gt.f32.partialorder %v922_v17, 1.0  ;;  %v946_v26 = vmul.f32 0.858737, %v922_v17 }
 0x573   : > { %v1922_v19 = vsel %vm923_vm4, 1.0, %v2271_v18  ;;  %vm1923_vm5 = vmpackc.low %vm923_vm4, %vm923_vm4 }
 0x574   : > { %926 = vst [vmem:[%s2427_s8 + $0x12] sm:$0x1] %v1922_v19  ;;  %1924 = vmatmul.msk.bf16.vlgmr.msra.gmra.mxu3 %vm1923_vm5, %v2272_v20  ;;  %v949_v28 = vsub.f32 1.0, %v1922_v19 }
 0x575   : > { %927 = vst [vmem:[#allocation7 + $0x13] sm:$0x1] %v1922_v19  ;;  %1154 = vmatpush.bf16.msra.mxu3 %v2746_v7 }
 0x579   : > { %1155 = vmatpush.bf16.msra.mxu3 %v2749_v58 }
 0x57d   : > { %1156 = vmatpush.bf16.msra.mxu3 %v2752_v59 }
 0x581   : > { %1157 = vmatpush.bf16.msra.mxu3 %v2755_v60 }
 0x585   : > { %1158 = vmatpush.bf16.msra.mxu3 %v2759_v3 }
 0x589   : > { %1159 = vmatpush.bf16.msra.mxu3 %v2762_v12 }
 0x58d   : > { %1160 = vmatpush.bf16.msra.mxu3 %v2776_v10 }
 0x591   : > { %1161 = vmatpush.bf16.msra.mxu3 %v2779_v21 }
 0x5d7   : > { %v911_v22 = vpop.f32.mrf.mxu2 }
 0x5d8   : > { %v915_v23 = vadd.f32 %v911_v22, %v900_v15 }
 0x5da   : > { %v917_v25 = vadd.f32 %v916_v24, %v915_v23 }
 0x5dc   : > { %v947_v27 = vmul.f32 0.141263, %v917_v25  ;;  %v944_v36 = vmul.f32 0.73742926, %v917_v25 }
 0x5de   : > { %v948_v29 = vadd.f32 %v947_v27, %v946_v26 }
 0x5df   : > { %v913_v30 = vpop.f32.mrf.mxu2 }
 0x5e0   : > { %v950_v31 = vmul.f32 %v949_v28, %v948_v29 }
 0x5e2   : > { %vm951_vm6 = vcmp.gt.f32.partialorder %v950_v31, 1.0  ;;  %v974_v38 = vmul.f32 0.858737, %v950_v31  ;;  %v1068_v31 = vld [vmem:[%s2417_s10 + $0x18] sm:$0x1] }
 0x5e3   : > { %v1925_v32 = vsel %vm951_vm6, 1.0, %v2271_v18  ;;  %vm1926_vm7 = vmpackc.low %vm951_vm6, %vm951_vm6 }
 0x5e4   : > { %954 = vst [vmem:[%s2427_s8 + $0x13] sm:$0x1] %v1925_v32  ;;  %1927 = vmatmul.msk.bf16.vlgmr.msra.gmra.mxu0 %vm1926_vm7, %v2272_v20  ;;  %v977_v40 = vsub.f32 1.0, %v1925_v32 }
 0x5e5   : > { %955 = vst [vmem:[#allocation7 + $0x14] sm:$0x1] %v1925_v32  ;;  %1182 = vmatpush.bf16.msra.mxu0 %v2746_v7 }
 0x5e9   : > { %1183 = vmatpush.bf16.msra.mxu0 %v2749_v58 }
 0x5ed   : > { %1184 = vmatpush.bf16.msra.mxu0 %v2752_v59 }
 0x5f1   : > { %1185 = vmatpush.bf16.msra.mxu0 %v2755_v60 }
 0x5f5   : > { %1186 = vmatpush.bf16.msra.mxu0 %v2759_v3 }
 0x5f7   : > { %v939_v34 = vpop.f32.mrf.mxu3 }
 0x5f8   : > { %v943_v35 = vadd.f32 %v939_v34, %v928_v33 }
 0x5f9   : > { %1187 = vmatpush.bf16.msra.mxu0 %v2762_v12 }
 0x5fa   : > { %v945_v37 = vadd.f32 %v944_v36, %v943_v35 }
 0x5fc   : > { %v975_v39 = vmul.f32 0.141263, %v945_v37  ;;  %v972_v48 = vmul.f32 0.73742926, %v945_v37 }
 0x5fd   : > { %1188 = vmatpush.bf16.msra.mxu0 %v2776_v10 }
 0x5fe   : > { %v976_v41 = vadd.f32 %v975_v39, %v974_v38 }
 0x5ff   : > { %v941_v42 = vpop.f32.mrf.mxu3 }
 0x600   : > { %v978_v43 = vmul.f32 %v977_v40, %v976_v41  ;;  %v1313_v42 = vld [vmem:[#allocation13 + $0x78] sm:$0xff] }
 0x601   : > { %1189 = vmatpush.bf16.msra.mxu0 %v2779_v21 }
 0x602   : > { %vm979_vm8 = vcmp.gt.f32.partialorder %v978_v43, 1.0  ;;  %v1002_v50 = vmul.f32 0.858737, %v978_v43 }
 0x603   : > { %v1928_v44 = vsel %vm979_vm8, 1.0, %v2271_v18  ;;  %vm1929_vm9 = vmpackc.low %vm979_vm8, %vm979_vm8 }
 0x604   : > { %982 = vst [vmem:[%s2427_s8 + $0x14] sm:$0x1] %v1928_v44  ;;  %1930 = vmatmul.msk.bf16.vlgmr.msra.gmra.mxu1 %vm1929_vm9, %v2272_v20  ;;  %v1005_v52 = vsub.f32 1.0, %v1928_v44 }
 0x605   : > { %983 = vst [vmem:[#allocation7 + $0x15] sm:$0x1] %v1928_v44  ;;  %1210 = vmatpush.bf16.msra.mxu1 %v2746_v7  ;;  %v1096_v44 = vld [vmem:[%s2417_s10 + $0x19] sm:$0x1] }
 0x609   : > { %1211 = vmatpush.bf16.msra.mxu1 %v2749_v58 }
 0x60d   : > { %1212 = vmatpush.bf16.msra.mxu1 %v2752_v59 }
 0x611   : > { %1213 = vmatpush.bf16.msra.mxu1 %v2755_v60 }
 0x615   : > { %1214 = vmatpush.bf16.msra.mxu1 %v2759_v3 }
 0x619   : > { %1215 = vmatpush.bf16.msra.mxu1 %v2762_v12 }
 0x61d   : > { %1216 = vmatpush.bf16.msra.mxu1 %v2776_v10 }
 0x621   : > { %1217 = vmatpush.bf16.msra.mxu1 %v2779_v21 }
 0x661   : > { %v967_v46 = vpop.f32.mrf.mxu0 }
 0x662   : > { %v971_v47 = vadd.f32 %v967_v46, %v956_v45 }
 0x664   : > { %v973_v49 = vadd.f32 %v972_v48, %v971_v47 }
 0x666   : > { %v1003_v51 = vmul.f32 0.141263, %v973_v49  ;;  %v1000_v57 = vmul.f32 0.73742926, %v973_v49 }
 0x668   : > { %v1004_v53 = vadd.f32 %v1003_v51, %v1002_v50 }
 0x669   : > { %v969_v54 = vpop.f32.mrf.mxu0 }
 0x66a   : > { %v1006_v1 = vmul.f32 %v1005_v52, %v1004_v53 }
 0x66c   : > { %vm1007_vm10 = vcmp.gt.f32.partialorder %v1006_v1, 1.0  ;;  %v1030_v6 = vmul.f32 0.858737, %v1006_v1 }
 0x66d   : > { %v1931_v55 = vsel %vm1007_vm10, 1.0, %v2271_v18  ;;  %vm1932_vm11 = vmpackc.low %vm1007_vm10, %vm1007_vm10 }
 0x66e   : > { %1010 = vst [vmem:[%s2427_s8 + $0x15] sm:$0x1] %v1931_v55  ;;  %1933 = vmatmul.msk.bf16.vlgmr.msrb.gmra.mxu2 %vm1932_vm11, %v2272_v20  ;;  %v1033_v62 = vsub.f32 1.0, %v1931_v55 }
 0x66f   : > { %1011 = vst [vmem:[#allocation7 + $0x16] sm:$0x1] %v1931_v55  ;;  %1238 = vmatpush.bf16.msrb.mxu2 %v2746_v7  ;;  %v1312_v55 = vld [vmem:[#allocation13 + $0x70] sm:$0xff] }
 0x673   : > { %1239 = vmatpush.bf16.msrb.mxu2 %v2749_v58 }
 0x677   : > { %1240 = vmatpush.bf16.msrb.mxu2 %v2752_v59 }
 0x67b   : > { %1241 = vmatpush.bf16.msrb.mxu2 %v2755_v60 }
 0x67f   : > { %1242 = vmatpush.bf16.msrb.mxu2 %v2759_v3 }
 0x681   : > { %v995_v56 = vpop.f32.mrf.mxu1 }
 0x682   : > { %v999_v4 = vadd.f32 %v995_v56, %v984_v2  ;;  %v1311_v2 = vld [vmem:[#allocation13 + $0x68] sm:$0xff]  ;;  %v1310_v56 = vld [vmem:[#allocation13 + $0x60] sm:$0xff] }
 0x683   : > { %1243 = vmatpush.bf16.msrb.mxu2 %v2762_v12 }
 0x684   : > { %v1001_v5 = vadd.f32 %v1000_v57, %v999_v4  ;;  %v1309_v4 = vld [vmem:[#allocation13 + $0x58] sm:$0xff]  ;;  %v1308_v57 = vld [vmem:[#allocation13 + $0x50] sm:$0xff] }
 0x686   : > { %v1031_v61 = vmul.f32 0.141263, %v1001_v5 }
 0x687   : > { %1244 = vmatpush.bf16.msrb.mxu2 %v2776_v10 }
 0x688   : > { %v1032_v63 = vadd.f32 %v1031_v61, %v1030_v6  ;;  %v1306_v6 = vld [vmem:[#allocation13 + $0x40] sm:$0xff]  ;;  %v1305_v61 = vld [vmem:[#allocation13 + $0x38] sm:$0xff] }
 0x689   : > { %v997_v0 = vpop.f32.mrf.mxu1 }
 0x68a   : > { %v1034_v8 = vmul.f32 %v1033_v62, %v1032_v63  ;;  %v1304_v62 = vld [vmem:[#allocation13 + $0x30] sm:$0xff]  ;;  %v1303_v63 = vld [vmem:[#allocation13 + $0x28] sm:$0xff]  ;;  %v1302_v0 = vld [vmem:[#allocation13 + $0x20] sm:$0xff] }
 0x68b   : > { %1245 = vmatpush.bf16.msrb.mxu2 %v2779_v21 }
 0x68c   : > { %vm1035_vm12 = vcmp.gt.f32.partialorder %v1034_v8, 1.0 }
 0x68d   : > { %v1934_v9 = vsel %vm1035_vm12, 1.0, %v2271_v18  ;;  %vm1935_vm13 = vmpackc.low %vm1035_vm12, %vm1035_vm12 }
 0x68e   : > { %1038 = vst [vmem:[%s2427_s8 + $0x16] sm:$0x1] %v1934_v9  ;;  %1936 = vmatmul.msk.bf16.vlgmr.msrb.gmra.mxu3 %vm1935_vm13, %v2272_v20 }
 0x68f   : > { %1039 = vst [vmem:[#allocation7 + $0x17] sm:$0x1] %v1934_v9  ;;  %1266 = vmatpush.bf16.msrb.mxu3 %v2746_v7  ;;  %v1028_v7 = vmul.f32 0.73742926, %v1001_v5  ;;  %v1307_v5 = vld [vmem:[#allocation13 + $0x48] sm:$0xff] }
 0x693   : > { %1267 = vmatpush.bf16.msrb.mxu3 %v2749_v58  ;;  %v1058_v58 = vmul.f32 0.858737, %v1034_v8  ;;  %v1301_v8 = vld [vmem:[#allocation13 + $0x18] sm:$0xff] }
 0x697   : > { %1268 = vmatpush.bf16.msrb.mxu3 %v2752_v59  ;;  %v1061_v59 = vsub.f32 1.0, %v1934_v9  ;;  %v1300_v9 = vld [vmem:[#allocation13 + $0x10] sm:$0xff] }
 0x69b   : > { %1269 = vmatpush.bf16.msrb.mxu3 %v2755_v60 }
 0x69f   : > { %1270 = vmatpush.bf16.msrb.mxu3 %v2759_v3 }
 0x6a3   : > { %1271 = vmatpush.bf16.msrb.mxu3 %v2762_v12  ;;  %v1040_v12 = vld [vmem:[%s2417_s10 + $0x17] sm:$0x1] }
 0x6a7   : > { %1272 = vmatpush.bf16.msrb.mxu3 %v2776_v10 }
 0x6ab   : > { %1273 = vmatpush.bf16.msrb.mxu3 %v2779_v21 }
 0x6f1   : > { %v1023_v13 = vpop.f32.mrf.mxu2 }
 0x6f2   : > { %v1027_v14 = vadd.f32 %v1023_v13, %v1012_v11  ;;  %v1299_v11 = vld [vmem:[#allocation13 + $0x8] sm:$0xff]  ;;  %v1298_v13 = vld [vmem:[#allocation13] sm:$0xff] }
 0x6f4   : > { %v1029_v16 = vadd.f32 %v1028_v7, %v1027_v14  ;;  %v1124_v14 = vld [vmem:[%s2417_s10 + $0x1a] sm:$0x1] }
 0x6f6   : > { %v1059_v17 = vmul.f32 0.141263, %v1029_v16  ;;  %v1056_v22 = vmul.f32 0.73742926, %v1029_v16 }
 0x6f8   : > { %v1060_v19 = vadd.f32 %v1059_v17, %v1058_v58 }
 0x6f9   : > { %v1025_v60 = vpop.f32.mrf.mxu2 }
 0x6fa   : > { %v1062_v15 = vmul.f32 %v1061_v59, %v1060_v19 }
 0x6fc   : > { %vm1063_vm14 = vcmp.gt.f32.partialorder %v1062_v15, 1.0  ;;  %v1086_v24 = vmul.f32 0.858737, %v1062_v15 }
 0x6fd   : > { %v1937_v3 = vsel %vm1063_vm14, 1.0, %v2271_v18  ;;  %vm1938_vm15 = vmpackc.low %vm1063_vm14, %vm1063_vm14 }
 0x6fe   : > { %1066 = vst [vmem:[%s2427_s8 + $0x17] sm:$0x1] %v1937_v3  ;;  %1939 = vmatmul.msk.bf16.vlgmr.msrb.gmra.mxu0 %vm1938_vm15, %v2272_v20  ;;  %v1089_v26 = vsub.f32 1.0, %v1937_v3 }
 0x6ff   : > { %1067 = vst [vmem:[#allocation7 + $0x18] sm:$0x1] %v1937_v3  ;;  %1314 = vmatpush.msrb.mxu0 %v1313_v42 }
 0x701   : > { %1315 = vmatpush.msrb.mxu0 %v1312_v55 }
 0x703   : > { %1316 = vmatpush.msrb.mxu0 %v1311_v2 }
 0x705   : > { %1317 = vmatpush.msrb.mxu0 %v1310_v56 }
 0x707   : > { %1318 = vmatpush.msrb.mxu0 %v1309_v4 }
 0x709   : > { %1319 = vmatpush.msrb.mxu0 %v1308_v57 }
 0x70b   : > { %1320 = vmatpush.msrb.mxu0 %v1307_v5 }
 0x70d   : > { %1321 = vmatpush.msrb.mxu0 %v1306_v6 }
 0x70f   : > { %1322 = vmatpush.msrb.mxu0 %v1305_v61 }
 0x711   : > { %v1051_v10 = vpop.f32.mrf.mxu3  ;;  %1323 = vmatpush.msrb.mxu0 %v1304_v62 }
 0x712   : > { %v1055_v21 = vadd.f32 %v1051_v10, %v1040_v12 }
 0x713   : > { %1324 = vmatpush.msrb.mxu0 %v1303_v63 }
 0x714   : > { %v1057_v23 = vadd.f32 %v1056_v22, %v1055_v21  ;;  %v1152_v21 = vld [vmem:[%s2417_s10 + $0x1b] sm:$0x1]  ;;  %v1294_v22 = vld [vmem:[#allocation7] sm:$0xff] }
 0x715   : > { %1325 = vmatpush.msrb.mxu0 %v1302_v0 }
 0x716   : > { %v1087_v25 = vmul.f32 0.141263, %v1057_v23  ;;  %v1084_v34 = vmul.f32 0.73742926, %v1057_v23 }
 0x717   : > { %1326 = vmatpush.msrb.mxu0 %v1301_v8  ;;  %v1208_v8 = vld [vmem:[%s2417_s10 + $0x1d] sm:$0x1] }
 0x718   : > { %v1088_v27 = vadd.f32 %v1087_v25, %v1086_v24 }
 0x719   : > { %v1053_v28 = vpop.f32.mrf.mxu3  ;;  %1327 = vmatpush.msrb.mxu0 %v1300_v9 }
 0x71a   : > { %v1090_v29 = vmul.f32 %v1089_v26, %v1088_v27 }
 0x71b   : > { %1328 = vmatpush.msrb.mxu0 %v1299_v11 }
 0x71c   : > { %vm1091_vm0 = vcmp.gt.f32.partialorder %v1090_v29, 1.0  ;;  %v1114_v36 = vmul.f32 0.858737, %v1090_v29 }
 0x71d   : > { %v1940_v30 = vsel %vm1091_vm0, 1.0, %v2271_v18  ;;  %vm1941_vm1 = vmpackc.low %vm1091_vm0, %vm1091_vm0  ;;  %1329 = vmatpush.msrb.mxu0 %v1298_v13 }
 0x71e   : > { %1094 = vst [vmem:[%s2427_s8 + $0x18] sm:$0x1] %v1940_v30  ;;  %1942 = vmatmul.msk.bf16.vlgmr.msrb.gmra.mxu1 %vm1941_vm1, %v2272_v20  ;;  %v1117_v38 = vsub.f32 1.0, %v1940_v30 }
 0x71f   : > { %1095 = vst [vmem:[#allocation7 + $0x19] sm:$0x1] %v1940_v30 }
 0x77b   : > { %v1079_v32 = vpop.f32.mrf.mxu0 }
 0x77c   : > { %v1083_v33 = vadd.f32 %v1079_v32, %v1068_v31  ;;  %v1295_v31 = vld [vmem:[#allocation7 + $0x8] sm:$0xff] }
 0x77e   : > { %v1085_v35 = vadd.f32 %v1084_v34, %v1083_v33 }
 0x780   : > { %v1115_v37 = vmul.f32 0.141263, %v1085_v35  ;;  %v1112_v47 = vmul.f32 0.73742926, %v1085_v35  ;;  %v1296_v35 = vld [vmem:[#allocation7 + $0x10] sm:$0xff] }
 0x782   : > { %v1116_v39 = vadd.f32 %v1115_v37, %v1114_v36  ;;  %v2857_v36 = vld [vmem:[%s3106_s4] sm:$0x1] }
 0x783   : > { %v1081_v40 = vpop.f32.mrf.mxu0  ;;  %v2860_v37 = vsub.f32 1.0, %v2857_v36 }
 0x784   : > { %v1118_v41 = vmul.f32 %v1117_v38, %v1116_v39  ;;  %v1345_v38 = vld [vmem:[#allocation5] sm:$0x1]  ;;  %v1346_v39 = vld [vmem:[#allocation6] sm:$0x1] }
 0x785   : > { %v1349_v40 = vmul.f32 %v1346_v39, %v2857_v36 }
 0x786   : > { %vm1119_vm2 = vcmp.gt.f32.partialorder %v1118_v41, 1.0  ;;  %v1142_v49 = vmul.f32 0.858737, %v1118_v41  ;;  %v1351_v41 = vmul.f32 %v2860_v37, %v1345_v38 }
 0x787   : > { %v1943_v43 = vsel %vm1119_vm2, 1.0, %v2271_v18  ;;  %vm1944_vm3 = vmpackc.low %vm1119_vm2, %vm1119_vm2 }
 0x788   : > { %1122 = vst [vmem:[%s2427_s8 + $0x19] sm:$0x1] %v1943_v43  ;;  %1945 = vmatmul.msk.bf16.vlgmr.msra.gmra.mxu2 %vm1944_vm3, %v2272_v20  ;;  %v1145_v51 = vsub.f32 1.0, %v1943_v43  ;;  %v1352_v42 = vadd.f32 %v1351_v41, %v1349_v40 }
 0x789   : > { %1123 = vst [vmem:[#allocation7 + $0x1a] sm:$0x1] %v1943_v43  ;;  %v1180_v43 = vld [vmem:[%s2417_s10 + $0x1c] sm:$0x1] }
 0x78a   : > { %1353 = vst [vmem:[%s2429_s16] sm:$0x1] %v1352_v42  ;;  %v1361_v4 = vmul.f32 %v1352_v42, %v2857_v36 }
 0x79b   : > { %v1107_v45 = vpop.f32.mrf.mxu1 }
 0x79c   : > { %v1111_v46 = vadd.f32 %v1107_v45, %v1096_v44 }
 0x79e   : > { %v1113_v48 = vadd.f32 %v1112_v47, %v1111_v46 }
 0x7a0   : > { %v1143_v50 = vmul.f32 0.141263, %v1113_v48  ;;  %v1140_v58 = vmul.f32 0.73742926, %v1113_v48 }
 0x7a2   : > { %v1144_v52 = vadd.f32 %v1143_v50, %v1142_v49 }
 0x7a3   : > { %v1109_v53 = vpop.f32.mrf.mxu1 }
 0x7a4   : > { %v1146_v54 = vmul.f32 %v1145_v51, %v1144_v52 }
 0x7a6   : > { %vm1147_vm4 = vcmp.gt.f32.partialorder %v1146_v54, 1.0  ;;  %v1170_v59 = vmul.f32 0.858737, %v1146_v54  ;;  %v2869_v54 = vld [vmem:[%s3105_s3] sm:$0x1] }
 0x7a7   : > { %v1946_v1 = vsel %vm1147_vm4, 1.0, %v2271_v18  ;;  %vm1947_vm5 = vmpackc.low %vm1147_vm4, %vm1147_vm4  ;;  %v1347_v55 = vmul.f32 %v1345_v38, %v2869_v54 }
 0x7a8   : > { %1150 = vst [vmem:[%s2427_s8 + $0x1a] sm:$0x1] %v1946_v1  ;;  %1948 = vmatmul.msk.bf16.vlgmr.msra.gmra.mxu3 %vm1947_vm5, %v2272_v20  ;;  %v1173_v60 = vsub.f32 1.0, %v1946_v1 }
 0x7a9   : > { %1151 = vst [vmem:[#allocation7 + $0x1b] sm:$0x1] %v1946_v1 }
 0x80b   : > { %v1135_v7 = vpop.f32.mrf.mxu2 }
 0x80c   : > { %v1139_v16 = vadd.f32 %v1135_v7, %v1124_v14 }
 0x80e   : > { %v1141_v17 = vadd.f32 %v1140_v58, %v1139_v16 }
 0x810   : > { %v1171_v19 = vmul.f32 0.141263, %v1141_v17  ;;  %v1168_v25 = vmul.f32 0.73742926, %v1141_v17 }
 0x812   : > { %v1172_v15 = vadd.f32 %v1171_v19, %v1170_v59 }
 0x813   : > { %v1137_v3 = vpop.f32.mrf.mxu2 }
 0x814   : > { %v1174_v12 = vmul.f32 %v1173_v60, %v1172_v15 }
 0x816   : > { %vm1175_vm6 = vcmp.gt.f32.partialorder %v1174_v12, 1.0  ;;  %v1198_v27 = vmul.f32 0.858737, %v1174_v12 }
 0x817   : > { %v1949_v10 = vsel %vm1175_vm6, 1.0, %v2271_v18  ;;  %vm1950_vm7 = vmpackc.low %vm1175_vm6, %vm1175_vm6 }
 0x818   : > { %1178 = vst [vmem:[%s2427_s8 + $0x1b] sm:$0x1] %v1949_v10  ;;  %1951 = vmatmul.msk.bf16.vlgmr.msra.gmra.mxu0 %vm1950_vm7, %v2272_v20  ;;  %v1201_v29 = vsub.f32 1.0, %v1949_v10 }
 0x819   : > { %1179 = vst [vmem:[#allocation7 + $0x1c] sm:$0x1] %v1949_v10 }
 0x828   : > { %1330 = vmatmul.f32.vlgmr.msrb.gmra.mxu0 %v1294_v22 }
 0x82b   : > { %v1163_v23 = vpop.f32.mrf.mxu3 }
 0x82c   : > { %v1167_v24 = vadd.f32 %v1163_v23, %v1152_v21 }
 0x82e   : > { %v1169_v26 = vadd.f32 %v1168_v25, %v1167_v24 }
 0x830   : > { %v1199_v28 = vmul.f32 0.141263, %v1169_v26  ;;  %1333 = vmatmul.f32.gmra.mxu0 %v1295_v31  ;;  %v1196_v46 = vmul.f32 0.73742926, %v1169_v26 }
 0x832   : > { %v1200_v30 = vadd.f32 %v1199_v28, %v1198_v27 }
 0x833   : > { %v1165_v32 = vpop.f32.mrf.mxu3 }
 0x834   : > { %v1202_v33 = vmul.f32 %v1201_v29, %v1200_v30 }
 0x836   : > { %vm1203_vm8 = vcmp.gt.f32.partialorder %v1202_v33, 1.0  ;;  %v1226_v48 = vmul.f32 0.858737, %v1202_v33 }
 0x837   : > { %v1952_v34 = vsel %vm1203_vm8, 1.0, %v2271_v18  ;;  %vm1953_vm9 = vmpackc.low %vm1203_vm8, %vm1203_vm8 }
 0x838   : > { %1206 = vst [vmem:[%s2427_s8 + $0x1c] sm:$0x1] %v1952_v34  ;;  %1954 = vmatmul.msk.bf16.vlgmr.msra.gmra.mxu1 %vm1953_vm9, %v2272_v20  ;;  %1336 = vmatmul.f32.gmra.mxu0 %v1296_v35  ;;  %v1229_v50 = vsub.f32 1.0, %v1952_v34 }
 0x839   : > { %1207 = vst [vmem:[#allocation7 + $0x1d] sm:$0x1] %v1952_v34 }
 0x895   : > { %v1191_v44 = vpop.f32.mrf.mxu0 }
 0x896   : > { %v1195_v45 = vadd.f32 %v1191_v44, %v1180_v43 }
 0x898   : > { %v1197_v47 = vadd.f32 %v1196_v46, %v1195_v45 }
 0x89a   : > { %v1227_v49 = vmul.f32 0.141263, %v1197_v47  ;;  %v1224_v14 = vmul.f32 0.73742926, %v1197_v47 }
 0x89c   : > { %v1228_v51 = vadd.f32 %v1227_v49, %v1226_v48 }
 0x89d   : > { %v1193_v52 = vpop.f32.mrf.mxu0 }
 0x89e   : > { %v1230_v53 = vmul.f32 %v1229_v50, %v1228_v51 }
 0x8a0   : > { %vm1231_vm10 = vcmp.gt.f32.partialorder %v1230_v53, 1.0  ;;  %v1254_v59 = vmul.f32 0.858737, %v1230_v53 }
 0x8a1   : > { %v1955_v1 = vsel %vm1231_vm10, 1.0, %v2271_v18  ;;  %vm1956_vm11 = vmpackc.low %vm1231_vm10, %vm1231_vm10 }
 0x8a2   : > { %1234 = vst [vmem:[%s2427_s8 + $0x1d] sm:$0x1] %v1955_v1  ;;  %1957 = vmatmul.msk.bf16.vlgmr.msrb.gmra.mxu2 %vm1956_vm11, %v2272_v20  ;;  %v1257_v3 = vsub.f32 1.0, %v1955_v1 }
 0x8a3   : > { %1235 = vst [vmem:[#allocation7 + $0x1e] sm:$0x1] %v1955_v1 }
 0x8a5   : > { %v2875_v2 = vpop.f32.mrf.mxu0 }
 0x8a6   : > { %v1348_v56 = vadd.f32 %v1347_v55, %v2875_v2  ;;  %1356 = vst [vmem:[#allocation1] sm:$0xff] %v2875_v2 }
 0x8a8   : > { %v1362_v57 = vmul.f32 %v2860_v37, %v1348_v56  ;;  %v1354_v6 = vmul.f32 %v1348_v56, %v2869_v54 }
 0x8aa   : > { %v1363_v5 = vadd.f32 %v1362_v57, %v1361_v4 }
 0x8ac   : > { %1364 = vst [vmem:[%s2429_s16 + $0x1] sm:$0x1] %v1363_v5  ;;  %v1371_v63 = vmul.f32 %v1363_v5, %v2857_v36 }
 0x8ad   : > { %v1358_v61 = vld [vmem:[#allocation1 + $0x1] ss:$9 sm:$0xff]  ;;  %v1334_v52 = vpop.f32.mrf.mxu0 }
 0x8ae   : > { %v1360_v62 = vadd.f32 %v1358_v61, %v1354_v6  ;;  %1366 = vst [vmem:[#allocation1] sm:$0xff] %v2875_v2 }
 0x8b0   : > { %v1372_v0 = vmul.f32 %v1360_v62, %v2860_v37  ;;  %v1365_v7 = vmul.f32 %v1360_v62, %v2869_v54 }
 0x8b2   : > { %v1373_v9 = vadd.f32 %v1372_v0, %v1371_v63 }
 0x8b4   : > { %1374 = vst [vmem:[%s2429_s16 + $0x2] sm:$0x1] %v1373_v9  ;;  %v1381_v60 = vmul.f32 %v1373_v9, %v2857_v36 }
 0x8b5   : > { %v1219_v11 = vpop.f32.mrf.mxu1  ;;  %v1368_v16 = vld [vmem:[#allocation1 + $0x2] ss:$9 sm:$0xff] }
 0x8b6   : > { %v1223_v13 = vadd.f32 %v1219_v11, %v1208_v8  ;;  %v1370_v17 = vadd.f32 %v1368_v16, %v1365_v7  ;;  %1376 = vst [vmem:[#allocation1] sm:$0xff] %v2875_v2 }
 0x8b8   : > { %v2889_v58 = vadd.f32 %v1224_v14, %v1223_v13  ;;  %v1382_v15 = vmul.f32 %v1370_v17, %v2860_v37  ;;  %v1375_v23 = vmul.f32 %v1370_v17, %v2869_v54 }
 0x8ba   : > { %v1255_v19 = vmul.f32 0.141263, %v2889_v58  ;;  %v1383_v10 = vadd.f32 %v1382_v15, %v1381_v60 }
 0x8bc   : > { %v1256_v12 = vadd.f32 %v1255_v19, %v1254_v59  ;;  %1384 = vst [vmem:[%s2429_s16 + $0x3] sm:$0x1] %v1383_v10  ;;  %v1391_v27 = vmul.f32 %v1383_v10, %v2857_v36 }
 0x8bd   : > { %v1221_v21 = vpop.f32.mrf.mxu1  ;;  %v1378_v24 = vld [vmem:[#allocation1 + $0x3] ss:$9 sm:$0xff] }
 0x8be   : > { %v2895_v22 = vmul.f32 %v1257_v3, %v1256_v12  ;;  %v1380_v25 = vadd.f32 %v1378_v24, %v1375_v23  ;;  %1386 = vst [vmem:[#allocation1] sm:$0xff] %v2875_v2 }
 0x8c0   : > { %vm1259_vm12 = vcmp.gt.f32.partialorder %v2895_v22, 1.0  ;;  %v1392_v28 = vmul.f32 %v1380_v25, %v2860_v37  ;;  %v1385_v30 = vmul.f32 %v1380_v25, %v2869_v54 }
 0x8c1   : > { %v2902_v26 = vsel %vm1259_vm12, 1.0, %v2271_v18  ;;  %vm1959_vm13 = vmpackc.low %vm1259_vm12, %vm1259_vm12 }
 0x8c2   : > { %1262 = vst [vmem:[%s2427_s8 + $0x1e] sm:$0x1] %v2902_v26  ;;  %1960 = vmatmul.msk.bf16.vlgmr.msrb.gmra.mxu3 %vm1959_vm13, %v2272_v20  ;;  %v1393_v29 = vadd.f32 %v1392_v28, %v1391_v27 }
 0x8c3   : > { %1263 = vst [vmem:[#allocation7 + $0x1f] sm:$0x1] %v2902_v26 }
 0x8c4   : > { %1394 = vst [vmem:[%s2429_s16 + $0x4] sm:$0x1] %v1393_v29  ;;  %v1401_v34 = vmul.f32 %v1393_v29, %v2857_v36 }
 0x8c5   : > { %v1388_v31 = vld [vmem:[#allocation1 + $0x4] ss:$9 sm:$0xff] }
 0x8c6   : > { %1396 = vst [vmem:[#allocation1] sm:$0xff] %v2875_v2  ;;  %v1390_v32 = vadd.f32 %v1388_v31, %v1385_v30 }
 0x8c8   : > { %v1402_v20 = vmul.f32 %v1390_v32, %v2860_v37  ;;  %v1395_v38 = vmul.f32 %v1390_v32, %v2869_v54 }
 0x8ca   : > { %v1297_v33 = vld [vmem:[#allocation7 + $0x18] sm:$0xff]  ;;  %v1403_v35 = vadd.f32 %v1402_v20, %v1401_v34 }
 0x8cb   : > { %1339 = vmatmul.f32.gmra.mxu0 %v1297_v33 }
 0x8cc   : > { %1404 = vst [vmem:[%s2429_s16 + $0x5] sm:$0x1] %v1403_v35  ;;  %v1411_v41 = vmul.f32 %v1403_v35, %v2857_v36 }
 0x8cd   : > { %v1398_v39 = vld [vmem:[#allocation1 + $0x5] ss:$9 sm:$0xff] }
 0x8ce   : > { %1406 = vst [vmem:[#allocation1] sm:$0xff] %v2875_v2  ;;  %v1400_v40 = vadd.f32 %v1398_v39, %v1395_v38 }
 0x8d0   : > { %v1412_v42 = vmul.f32 %v1400_v40, %v2860_v37  ;;  %v1405_v44 = vmul.f32 %v1400_v40, %v2869_v54 }
 0x8d2   : > { %v1413_v43 = vadd.f32 %v1412_v42, %v1411_v41  ;;  %v2959_v42 = vpop.f32.mrf.mxu0 }
 0x8d4   : > { %1414 = vst [vmem:[%s2429_s16 + $0x6] sm:$0x1] %v1413_v43  ;;  %v1421_v47 = vmul.f32 %v1413_v43, %v2857_v36 }
 0x8d5   : > { %v1408_v45 = vld [vmem:[#allocation1 + $0x6] ss:$9 sm:$0xff] }
 0x8d6   : > { %1416 = vst [vmem:[#allocation1] sm:$0xff] %v2875_v2  ;;  %v1410_v46 = vadd.f32 %v1408_v45, %v1405_v44 }
 0x8d8   : > { %v1422_v48 = vmul.f32 %v1410_v46, %v2860_v37  ;;  %v1415_v50 = vmul.f32 %v1410_v46, %v2869_v54 }
 0x8da   : > { %v1423_v49 = vadd.f32 %v1422_v48, %v1421_v47 }
 0x8dc   : > { %1424 = vst [vmem:[%s2429_s16 + $0x7] sm:$0x1] %v1423_v49  ;;  %v1427_v55 = vmul.f32 %v1423_v49, %v2857_v36 }
 0x8dd   : > { %v1418_v51 = vld [vmem:[#allocation1 + $0x7] ss:$9 sm:$0xff] }
 0x8de   : > { %v1420_v53 = vadd.f32 %v1418_v51, %v1415_v50  ;;  %1433 = vst [vmem:[#allocation1] sm:$0xff] %v1334_v52 }
 0x8e0   : > { %v1425_v1 = vmul.f32 %v1420_v53, %v2869_v54  ;;  %v1428_v2 = vmul.f32 %v1420_v53, %v2860_v37 }
 0x8e2   : > { %v1426_v56 = vadd.f32 %v1425_v1, %v1334_v52  ;;  %v1429_v4 = vadd.f32 %v1428_v2, %v1427_v55 }
 0x8e4   : > { %1430 = vst [vmem:[%s2429_s16 + $0x8] sm:$0x1] %v1429_v4  ;;  %v1431_v57 = vmul.f32 %v1426_v56, %v2869_v54  ;;  %v1438_v5 = vmul.f32 %v1429_v4, %v2857_v36  ;;  %v1439_v6 = vmul.f32 %v1426_v56, %v2860_v37 }
 0x8e5   : > { %v1435_v61 = vld [vmem:[#allocation1 + $0x1] ss:$9 sm:$0xff] }
 0x8e6   : > { %v1437_v62 = vadd.f32 %v1435_v61, %v1431_v57  ;;  %v1440_v63 = vadd.f32 %v1439_v6, %v1438_v5  ;;  %1443 = vst [vmem:[#allocation1] sm:$0xff] %v1334_v52  ;;  %v1236_v57 = vld [vmem:[%s2417_s10 + $0x1e] sm:$0x1] }
 0x8e8   : > { %1441 = vst [vmem:[%s2429_s16 + $0x9] sm:$0x1] %v1440_v63  ;;  %v1448_v0 = vmul.f32 %v1440_v63, %v2857_v36  ;;  %v1449_v8 = vmul.f32 %v1437_v62, %v2860_v37  ;;  %v1442_v11 = vmul.f32 %v1437_v62, %v2869_v54 }
 0x8ea   : > { %v1450_v9 = vadd.f32 %v1449_v8, %v1448_v0  ;;  %v1252_v0 = vmul.f32 0.73742926, %v2889_v58  ;;  %v1285_v58 = vsub.f32 1.0, %v2902_v26 }
 0x8ec   : > { %1451 = vst [vmem:[%s2429_s16 + $0xa] sm:$0x1] %v1450_v9  ;;  %v1458_v7 = vmul.f32 %v1450_v9, %v2857_v36 }
 0x8ed   : > { %v1445_v13 = vld [vmem:[#allocation1 + $0x2] ss:$9 sm:$0xff] }
 0x8ee   : > { %v1447_v14 = vadd.f32 %v1445_v13, %v1442_v11  ;;  %1453 = vst [vmem:[#allocation1] sm:$0xff] %v1334_v52 }
 0x8f0   : > { %v1459_v16 = vmul.f32 %v1447_v14, %v2860_v37  ;;  %v1452_v59 = vmul.f32 %v1447_v14, %v2869_v54  ;;  %v1282_v14 = vmul.f32 0.858737, %v2895_v22 }
 0x8f2   : > { %v1460_v17 = vadd.f32 %v1459_v16, %v1458_v7 }
 0x8f4   : > { %1461 = vst [vmem:[%s2429_s16 + $0xb] sm:$0x1] %v1460_v17  ;;  %v1468_v15 = vmul.f32 %v1460_v17, %v2857_v36 }
 0x8f5   : > { %v1455_v19 = vld [vmem:[#allocation1 + $0x3] ss:$9 sm:$0xff] }
 0x8f6   : > { %v1457_v60 = vadd.f32 %v1455_v19, %v1452_v59  ;;  %1463 = vst [vmem:[#allocation1] sm:$0xff] %v1334_v52 }
 0x8f8   : > { %v1469_v3 = vmul.f32 %v1457_v60, %v2860_v37  ;;  %v1462_v10 = vmul.f32 %v1457_v60, %v2869_v54 }
 0x8fa   : > { %v1470_v12 = vadd.f32 %v1469_v3, %v1468_v15 }
 0x8fc   : > { %1471 = vst [vmem:[%s2429_s16 + $0xc] sm:$0x1] %v1470_v12  ;;  %v1478_v24 = vmul.f32 %v1470_v12, %v2857_v36 }
 0x8fd   : > { %v1465_v21 = vld [vmem:[#allocation1 + $0x4] ss:$9 sm:$0xff] }
 0x8fe   : > { %1473 = vst [vmem:[#allocation1] sm:$0xff] %v1334_v52  ;;  %v1467_v23 = vadd.f32 %v1465_v21, %v1462_v10 }
 0x900   : > { %v1479_v25 = vmul.f32 %v1467_v23, %v2860_v37  ;;  %v1472_v28 = vmul.f32 %v1467_v23, %v2869_v54 }
 0x902   : > { %v1480_v27 = vadd.f32 %v1479_v25, %v1478_v24 }
 0x904   : > { %1481 = vst [vmem:[%s2429_s16 + $0xd] sm:$0x1] %v1480_v27  ;;  %v1488_v31 = vmul.f32 %v1480_v27, %v2857_v36 }
 0x905   : > { %v1475_v29 = vld [vmem:[#allocation1 + $0x5] ss:$9 sm:$0xff] }
 0x906   : > { %1483 = vst [vmem:[#allocation1] sm:$0xff] %v1334_v52  ;;  %v1477_v30 = vadd.f32 %v1475_v29, %v1472_v28 }
 0x908   : > { %v1489_v32 = vmul.f32 %v1477_v30, %v2860_v37  ;;  %v1482_v34 = vmul.f32 %v1477_v30, %v2869_v54 }
 0x90a   : > { %v1490_v33 = vadd.f32 %v1489_v32, %v1488_v31 }
 0x90c   : > { %1491 = vst [vmem:[%s2429_s16 + $0xe] sm:$0x1] %v1490_v33  ;;  %v1498_v38 = vmul.f32 %v1490_v33, %v2857_v36 }
 0x90d   : > { %v1485_v20 = vld [vmem:[#allocation1 + $0x6] ss:$9 sm:$0xff] }
 0x90e   : > { %1493 = vst [vmem:[#allocation1] sm:$0xff] %v1334_v52  ;;  %v1487_v35 = vadd.f32 %v1485_v20, %v1482_v34 }
 0x910   : > { %v1499_v39 = vmul.f32 %v1487_v35, %v2860_v37  ;;  %v1492_v41 = vmul.f32 %v1487_v35, %v2869_v54 }
 0x912   : > { %v1500_v40 = vadd.f32 %v1499_v39, %v1498_v38 }
 0x914   : > { %1501 = vst [vmem:[%s2429_s16 + $0xf] sm:$0x1] %v1500_v40  ;;  %v1504_v46 = vmul.f32 %v1500_v40, %v2857_v36 }
 0x915   : > { %v1495_v43 = vld [vmem:[#allocation1 + $0x7] ss:$9 sm:$0xff] }
 0x916   : > { %v1497_v44 = vadd.f32 %v1495_v43, %v1492_v41  ;;  %1510 = vst [vmem:[#allocation1] sm:$0xff] %v2959_v42 }
 0x918   : > { %v1502_v45 = vmul.f32 %v1497_v44, %v2869_v54  ;;  %v1505_v47 = vmul.f32 %v1497_v44, %v2860_v37 }
 0x91a   : > { %v1503_v48 = vadd.f32 %v1502_v45, %v2959_v42  ;;  %v1506_v49 = vadd.f32 %v1505_v47, %v1504_v46 }
 0x91c   : > { %1507 = vst [vmem:[%s2429_s16 + $0x10] sm:$0x1] %v1506_v49  ;;  %v1508_v50 = vmul.f32 %v1503_v48, %v2869_v54  ;;  %v1515_v51 = vmul.f32 %v1506_v49, %v2857_v36  ;;  %v1516_v52 = vmul.f32 %v1503_v48, %v2860_v37 }
 0x91d   : > { %v1512_v53 = vld [vmem:[#allocation1 + $0x1] ss:$9 sm:$0xff] }
 0x91e   : > { %v1514_v1 = vadd.f32 %v1512_v53, %v1508_v50  ;;  %v1517_v55 = vadd.f32 %v1516_v52, %v1515_v51  ;;  %1520 = vst [vmem:[#allocation1] sm:$0xff] %v2959_v42 }
 0x920   : > { %1518 = vst [vmem:[%s2429_s16 + $0x11] sm:$0x1] %v1517_v55  ;;  %v1525_v2 = vmul.f32 %v1517_v55, %v2857_v36  ;;  %v1526_v56 = vmul.f32 %v1514_v1, %v2860_v37  ;;  %v1519_v5 = vmul.f32 %v1514_v1, %v2869_v54 }
 0x922   : > { %v1527_v4 = vadd.f32 %v1526_v56, %v1525_v2 }
 0x924   : > { %1528 = vst [vmem:[%s2429_s16 + $0x12] sm:$0x1] %v1527_v4  ;;  %v1535_v8 = vmul.f32 %v1527_v4, %v2857_v36 }
 0x925   : > { %v1522_v6 = vld [vmem:[#allocation1 + $0x2] ss:$9 sm:$0xff]  ;;  %v1247_v61 = vpop.f32.mrf.mxu2 }
 0x926   : > { %v1524_v62 = vadd.f32 %v1522_v6, %v1519_v5  ;;  %1530 = vst [vmem:[#allocation1] sm:$0xff] %v2959_v42  ;;  %v1251_v63 = vadd.f32 %v1247_v61, %v1236_v57 }
 0x928   : > { %v1536_v9 = vmul.f32 %v1524_v62, %v2860_v37  ;;  %v1253_v11 = vadd.f32 %v1252_v0, %v1251_v63  ;;  %v1529_v16 = vmul.f32 %v1524_v62, %v2869_v54 }
 0x92a   : > { %v1537_v13 = vadd.f32 %v1536_v9, %v1535_v8  ;;  %v1283_v7 = vmul.f32 0.141263, %v1253_v11 }
 0x92c   : > { %1538 = vst [vmem:[%s2429_s16 + $0x13] sm:$0x1] %v1537_v13  ;;  %v1284_v17 = vadd.f32 %v1283_v7, %v1282_v14  ;;  %v1545_v22 = vmul.f32 %v1537_v13, %v2857_v36 }
 0x92d   : > { %v1532_v59 = vld [vmem:[#allocation1 + $0x3] ss:$9 sm:$0xff]  ;;  %v1249_v19 = vpop.f32.mrf.mxu2 }
 0x92e   : > { %v1534_v60 = vadd.f32 %v1532_v59, %v1529_v16  ;;  %1540 = vst [vmem:[#allocation1] sm:$0xff] %v2959_v42  ;;  %v1286_v15 = vmul.f32 %v1285_v58, %v1284_v17 }
 0x930   : > { %v1546_v3 = vmul.f32 %v1534_v60, %v2860_v37  ;;  %vm1287_vm14 = vcmp.gt.f32.partialorder %v1286_v15, 1.0  ;;  %1293 = vst [vmem:[#allocation4] sm:$0x1] %v1286_v15 }
 0x931   : > { %v1961_v26 = vsel %vm1287_vm14, 1.0, %v2271_v18 }
 0x932   : > { %v1547_v12 = vadd.f32 %v1546_v3, %v1545_v22  ;;  %1290 = vst [vmem:[%s2427_s8 + $0x1f] sm:$0x1] %v1961_v26 }
 0x933   : > { %1291 = vst [vmem:[#allocation2] sm:$0x1] %v1961_v26 }
 0x934   : > { %2187 = shalt.err (!%p2184_p13)
}
 0x935   : > { %s2273_s8 = smov 128   ;;  %s2274_s12 = smov 8   ;;  %1548 = vst [vmem:[%s2429_s16 + $0x14] sm:$0x1] %v1547_v12  ;;  %v1539_v18 = vmul.f32 %v1534_v60, %v2869_v54  ;;  %v1542_v10 = vld [vmem:[#allocation1 + $0x4] ss:$9 sm:$0xff]  ;;  %v1555_v23 = vmul.f32 %v1547_v12, %v2857_v36 }
 0x936   : > { %1991 = dma.vmem_to_hbm [thread:$0]  (%p2383_p7), %s2993_s15, 512, %s1679_s18, %s1659_s19, %s2273_s8, %s2273_s8, %s2274_s12   ;;  %1550 = vst [vmem:[#allocation1] sm:$0xff] %v2959_v42  ;;  %v1280_v35 = vmul.f32 0.73742926, %v1253_v11 }
 0x937   : > { %v1544_v21 = vadd.f32 %v1542_v10, %v1539_v18  ;;  %v1264_v30 = vld [vmem:[%s2417_s10 + $0x1f] sm:$0x1]  ;;  %s3120_s10 = sshll.u32 %s2331_s25, 5  ;;  %s1693_s27 = sshll.u32 %s2429_s16, 4  ;;  %s1694_s27 = int_to_ptr.vmem [resolvable:$true] %s1693_s27 }
 0x938   : > { %s1692_s19 = scalar_lea.hbm %s3108_s6, %s3120_s10  ;;  %s1664_s25 = scalar_lea.sflag [#allocation16], %s2413_s11 }
 0x939   : > { %v1556_v24 = vmul.f32 %v1544_v21, %v2860_v37  ;;  %v1549_v27 = vmul.f32 %v1544_v21, %v2869_v54  ;;  %s1695_s17 = sshll.u32 %s1692_s19, 4  ;;  %s2208_s9 = scalar_lea.hbm %s3108_s6, 64  ;;  %s1696_s17 = int_to_ptr.hbm [resolvable:$true] %s1695_s17 }
 0x93a   : > { %s2202_s26 = sshra.s32 %s1696_s17, 4  ;;  %s2203_s26 = int_to_ptr.hbm [resolvable:$true] %s2202_s26 }
 0x93b   : > { %v1557_v25 = vadd.f32 %v1556_v24, %v1555_v23  ;;  %s2204_s29 = scalar_lea.hbm %s2203_s26, 32  ;;  %p2209_p10 = scmp.lt.s32.totalorder %s2203_s26, %s3108_s6 }
 0x93c   : > { %p2205_p0 = scmp.ne.s32.totalorder %s2203_s26, %s2204_s29  ;;  %p2210_p8 = scmp.lt.s32.totalorder %s2208_s9, %s2204_s29 }
 0x93d   : > { %1558 = vst [vmem:[%s2429_s16 + $0x15] sm:$0x1] %v1557_v25  ;;  %v1552_v28 = vld [vmem:[#allocation1 + $0x5] ss:$9 sm:$0xff]  ;;  %v1565_v31 = vmul.f32 %v1557_v25, %v2857_v36 }
 0x93e   : > { %v1554_v29 = vadd.f32 %v1552_v28, %v1549_v27  ;;  %1560 = vst [vmem:[#allocation1] sm:$0xff] %v2959_v42  ;;  %p2206_p3 = pnand %p2205_p0, %p2383_p7  ;;  %p2211_p1 = por %p2210_p8, %p2209_p10 }
 0x940   : > { %v1566_v32 = vmul.f32 %v1554_v29, %v2860_v37  ;;  %v1559_v38 = vmul.f32 %v1554_v29, %v2869_v54  ;;  %p2207_p5 = pneg %p2206_p3 }
 0x942   : > { %v1567_v34 = vadd.f32 %v1566_v32, %v1565_v31  ;;  %p2212_p4 = pnand %p2211_p1, %p2207_p5 }
 0x944   : > { %1568 = vst [vmem:[%s2429_s16 + $0x16] sm:$0x1] %v1567_v34  ;;  %v1575_v43 = vmul.f32 %v1567_v34, %v2857_v36 }
 0x945   : > { %v1275_v33 = vpop.f32.mrf.mxu3  ;;  %v1562_v40 = vld [vmem:[#allocation1 + $0x6] ss:$9 sm:$0xff] }
 0x946   : > { %v1279_v20 = vadd.f32 %v1275_v33, %v1264_v30  ;;  %v1564_v41 = vadd.f32 %v1562_v40, %v1559_v38  ;;  %1570 = vst [vmem:[#allocation1] sm:$0xff] %v2959_v42 }
 0x948   : > { %v1281_v39 = vadd.f32 %v1280_v35, %v1279_v20  ;;  %v1576_v44 = vmul.f32 %v1564_v41, %v2860_v37  ;;  %v1569_v47 = vmul.f32 %v1564_v41, %v2869_v54  ;;  %v1340_v48 = vpop.f32.mrf.mxu0 }
 0x94a   : > { %1292 = vst [vmem:[#allocation3] sm:$0x1] %v1281_v39  ;;  %v1577_v45 = vadd.f32 %v1576_v44, %v1575_v43 }
 0x94c   : > { %1578 = vst [vmem:[%s2429_s16 + $0x17] sm:$0x1] %v1577_v45  ;;  %v1581_v42 = vmul.f32 %v1577_v45, %v2857_v36 }
 0x94d   : > { %v1277_v46 = vpop.f32.mrf.mxu3  ;;  %v1572_v49 = vld [vmem:[#allocation1 + $0x7] ss:$9 sm:$0xff] }
 0x94e   : > { %v1574_v50 = vadd.f32 %v1572_v49, %v1569_v47  ;;  %1587 = vst [vmem:[#allocation1] sm:$0xff] %v1340_v48 }
 0x950   : > { %v1579_v51 = vmul.f32 %v1574_v50, %v2869_v54  ;;  %v1582_v52 = vmul.f32 %v1574_v50, %v2860_v37 }
 0x952   : > { %v1580_v53 = vadd.f32 %v1579_v51, %v1340_v48  ;;  %v1583_v1 = vadd.f32 %v1582_v52, %v1581_v42 }
 0x954   : > { %1584 = vst [vmem:[%s2429_s16 + $0x18] sm:$0x1] %v1583_v1  ;;  %v1585_v55 = vmul.f32 %v1580_v53, %v2869_v54  ;;  %v1592_v2 = vmul.f32 %v1583_v1, %v2857_v36  ;;  %v1593_v56 = vmul.f32 %v1580_v53, %v2860_v37 }
 0x955   : > { %v1589_v4 = vld [vmem:[#allocation1 + $0x1] ss:$9 sm:$0xff] }
 0x956   : > { %v1591_v57 = vadd.f32 %v1589_v4, %v1585_v55  ;;  %v1594_v5 = vadd.f32 %v1593_v56, %v1592_v2  ;;  %1597 = vst [vmem:[#allocation1] sm:$0xff] %v1340_v48 }
 0x958   : > { %1595 = vst [vmem:[%s2429_s16 + $0x19] sm:$0x1] %v1594_v5  ;;  %v1602_v6 = vmul.f32 %v1594_v5, %v2857_v36  ;;  %v1603_v61 = vmul.f32 %v1591_v57, %v2860_v37  ;;  %v1596_v63 = vmul.f32 %v1591_v57, %v2869_v54 }
 0x95a   : > { %v1604_v62 = vadd.f32 %v1603_v61, %v1602_v6 }
 0x95c   : > { %1605 = vst [vmem:[%s2429_s16 + $0x1a] sm:$0x1] %v1604_v62  ;;  %v1612_v9 = vmul.f32 %v1604_v62, %v2857_v36 }
 0x95d   : > { %v1599_v0 = vld [vmem:[#allocation1 + $0x2] ss:$9 sm:$0xff] }
 0x95e   : > { %v1601_v8 = vadd.f32 %v1599_v0, %v1596_v63  ;;  %1607 = vst [vmem:[#allocation1] sm:$0xff] %v1340_v48 }
 0x960   : > { %v1613_v11 = vmul.f32 %v1601_v8, %v2860_v37  ;;  %v1606_v14 = vmul.f32 %v1601_v8, %v2869_v54 }
 0x962   : > { %v1614_v13 = vadd.f32 %v1613_v11, %v1612_v9 }
 0x964   : > { %1615 = vst [vmem:[%s2429_s16 + $0x1b] sm:$0x1] %v1614_v13  ;;  %v1622_v58 = vmul.f32 %v1614_v13, %v2857_v36 }
 0x965   : > { %v1609_v7 = vld [vmem:[#allocation1 + $0x3] ss:$9 sm:$0xff] }
 0x966   : > { %v1611_v16 = vadd.f32 %v1609_v7, %v1606_v14  ;;  %1617 = vst [vmem:[#allocation1] sm:$0xff] %v1340_v48 }
 0x968   : > { %v1623_v17 = vmul.f32 %v1611_v16, %v2860_v37  ;;  %v1616_v19 = vmul.f32 %v1611_v16, %v2869_v54 }
 0x96a   : > { %v1624_v59 = vadd.f32 %v1623_v17, %v1622_v58 }
 0x96c   : > { %1625 = vst [vmem:[%s2429_s16 + $0x1c] sm:$0x1] %v1624_v59  ;;  %v1632_v22 = vmul.f32 %v1624_v59, %v2857_v36 }
 0x96d   : > { %v1619_v60 = vld [vmem:[#allocation1 + $0x4] ss:$9 sm:$0xff] }
 0x96e   : > { %v1621_v15 = vadd.f32 %v1619_v60, %v1616_v19  ;;  %1627 = vst [vmem:[#allocation1] sm:$0xff] %v1340_v48 }
 0x970   : > { %v1633_v3 = vmul.f32 %v1621_v15, %v2860_v37  ;;  %v1626_v12 = vmul.f32 %v1621_v15, %v2869_v54 }
 0x972   : > { %v1634_v26 = vadd.f32 %v1633_v3, %v1632_v22 }
 0x974   : > { %1635 = vst [vmem:[%s2429_s16 + $0x1d] sm:$0x1] %v1634_v26  ;;  %v1642_v21 = vmul.f32 %v1634_v26, %v2857_v36 }
 0x975   : > { %v1629_v18 = vld [vmem:[#allocation1 + $0x5] ss:$9 sm:$0xff] }
 0x976   : > { %v1631_v10 = vadd.f32 %v1629_v18, %v1626_v12  ;;  %1637 = vst [vmem:[#allocation1] sm:$0xff] %v1340_v48 }
 0x978   : > { %v1643_v23 = vmul.f32 %v1631_v10, %v2860_v37  ;;  %v1636_v25 = vmul.f32 %v1631_v10, %v2869_v54 }
 0x97a   : > { %v1644_v24 = vadd.f32 %v1643_v23, %v1642_v21 }
 0x97c   : > { %1645 = vst [vmem:[%s2429_s16 + $0x1e] sm:$0x1] %v1644_v24  ;;  %v1652_v29 = vmul.f32 %v1644_v24, %v2857_v36 }
 0x97d   : > { %v1639_v27 = vld [vmem:[#allocation1 + $0x6] ss:$9 sm:$0xff] }
 0x97e   : > { %v1641_v28 = vadd.f32 %v1639_v27, %v1636_v25  ;;  %1647 = vst [vmem:[#allocation1] sm:$0xff] %v1340_v48 }
 0x980   : > { %v1653_v30 = vmul.f32 %v1641_v28, %v2860_v37  ;;  %v1646_v32 = vmul.f32 %v1641_v28, %v2869_v54 }
 0x982   : > { %v1654_v31 = vadd.f32 %v1653_v30, %v1652_v29 }
 0x984   : > { %1655 = vst [vmem:[%s2429_s16 + $0x1f] sm:$0x1] %v1654_v31 }
 0x985   : > { %v1649_v33 = vld [vmem:[#allocation1 + $0x7] ss:$9 sm:$0xff]  ;;  %1657 = vst [vmem:[#allocation6] sm:$0x1] %v1654_v31 }
 0x986   : > { %2215 = shalt.err (!%p2212_p4)
}
 0x987   : > { %1992 = dma.vmem_to_hbm [thread:$0]  (%p2383_p7), %s1694_s27, 512, %s1696_s17, %s1664_s25, %s2273_s8, %s2273_s8, %s2274_s12   ;;  %v1651_v36 = vadd.f32 %v1649_v33, %v1646_v32 }
 0x989   : > { %1656 = vst [vmem:[#allocation5] sm:$0x1] %v1651_v36 }
 0x98a PF: > { %s1710_s11 = sand.u32 1, %s2250_s21   ;;  %p3121_p9 = scmp.ge.s32.totalorder %s2262_s24, 2 }
 0x98b   : > { %s1711_s16 = scalar_lea.sflag [#allocation10], %s1710_s11 }
 0x98c   : > { %p2007_p12 = pnand %p3121_p9, %p2345_p6 }
 0x98e   : > { %p2008_p11 = pneg %p2007_p12 }
 0x990   : > { %2241 = dma.done.wait (%p2008_p11), %s1711_s16, 512  }
 0x991   : > { %2243 = vsyncadd (%p2008_p11), %s1711_s16, 4294966784  ;;  %s1721_s18 = scalar_lea.sflag [#allocation16], %s1710_s11 }
 0x992   : > { %2245 = dma.done.wait (%p2008_p11), %s1721_s18, 512  }
 0x993   : > { %2247 = vsyncadd (%p2008_p11), %s1721_s18, 4294966784  ;;  %p24_p7 = scmp.ge.s32.totalorder %s2370_s20, 4   ;;  %s3122_s21 = smov %s2254_s22 }
 0x994   : > { %s3123_s22 = smov %s2258_s23  ;;  %s3124_s23 = smov %s2379_s30 }
 0x995   : > { %s3125_s24 = smov %s2370_s20  ;;  %26 = sbr.rel (!%p24_p7) target bundleno = 8 (0x8), region = 142 }
 0x99a   :  { %1727 = vsyncpa [#allocation9], 1 }
 0x99b   :  { %1729 = vsyncpa [#allocation9 + $0x1], 1 }
 0x99c   :  { %1730 = vsyncpa [#allocation12], 1 }
 0x99d   :  { %1731 = vsyncpa [#allocation10], 1 }
 0x99e   :  { %1733 = vsyncpa [#allocation10 + $0x1], 1 }
 0x99f   :  { %1734 = vsyncpa [#allocation16], 1 }
 0x9a0   :  { %1736 = vsyncpa [#allocation16 + $0x1], 1 }

</bundles_post_ra>
